<compile_context>
chip_gen: v6e
topology: v6e:2x2x1
jax: 0.10.0
libtpu: 0.0.40
codegen_flags: <defaults>
</compile_context>

<pallas_src>
import functools

import jax
import jax.numpy as jnp
from jax import lax
from jax.experimental import pallas as pl
from jax.experimental.pallas import tpu as pltpu


def _round_up(n, m):
    return (n + m - 1) // m * m


def gru_fc_swish_kernel(x_ref, w_ih_ref, w_hh_ref, b_xg_ref, b_hn_ref,
                        w_fc_ref, b_fc_ref, out_ref, xg_ref, h_ref,
                        *, seq_len, unroll, need_mask):
    # x_ref:    (TC, TB, Ip)   bf16  time-major input chunk (zero padded)
    # w_ih_ref: (Ip, 3*Hp)     bf16  pre-transposed, gate blocks at Hp strides
    # w_hh_ref: (Hp, 3*Hp)     bf16  pre-transposed, gate blocks at Hp strides
    # b_xg_ref: (1, 3*Hp)      f32   b_ih + [b_hh_r, b_hh_z, 0]
    # b_hn_ref: (1, Hp)        f32   b_hh_n (must stay inside r*(...))
    # w_fc_ref: (Hp, Cp)       bf16
    # b_fc_ref: (1, Cp)        f32
    # out_ref:  (TB, Cp)       f32   written on the last time chunk only
    # xg_ref:   (TC, TB, 3*Hp) f32   per-chunk input-projection scratch
    # h_ref:    (TB, Hp)       f32   hidden state, persistent across time chunks
    t_chunk = pl.program_id(1)
    TC, TB, Ip = x_ref.shape
    Hp = h_ref.shape[1]

    @pl.when(t_chunk == 0)
    def _():
        h_ref[...] = jnp.zeros_like(h_ref)

    # Per-chunk input projection in one MXU pass. The next chunk's x DMA is
    # pipelined by the grid while the recurrence below runs.
    # TODO(synk): interleave chunk t+1's projection with chunk t's recurrence
    # (manual pipeline) to fully hide this matmul behind the serial h chain.
    x_flat = x_ref[...].reshape(TC * TB, Ip)
    xg = jnp.dot(x_flat, w_ih_ref[...], preferred_element_type=jnp.float32)
    xg_ref[...] = (xg + b_xg_ref[...]).reshape(TC, TB, 3 * Hp)

    w_hh = w_hh_ref[...]                                     # (Hp, 3Hp) bf16
    # Hoisted broadcast (JAX does not CSE broadcast_in_dim inside the loop).
    b_hn = jnp.broadcast_to(b_hn_ref[...], (TB, Hp))         # (TB, Hp) f32
    t_base = t_chunk * TC

    # TODO(synk): keep W_hh resident in the MXU across the loop via
    # pltpu.matmul_push_rhs / matmul_acc_lhs / matmul_pop; at tiny TB the
    # per-step cost is dominated by re-pushing the (Hp, 3Hp) weight.
    def step(t, h):
        gx = xg_ref[t]                                       # (TB, 3Hp) f32
        gh = jnp.dot(h.astype(jnp.bfloat16), w_hh,
                     preferred_element_type=jnp.float32)     # (TB, 3Hp) f32
        # Lane-aligned gate slices (Hp is a multiple of 128).
        r = jax.nn.sigmoid(gx[:, 0 * Hp:1 * Hp] + gh[:, 0 * Hp:1 * Hp])
        z = jax.nn.sigmoid(gx[:, 1 * Hp:2 * Hp] + gh[:, 1 * Hp:2 * Hp])
        n = jnp.tanh(gx[:, 2 * Hp:3 * Hp] + r * (gh[:, 2 * Hp:3 * Hp] + b_hn))
        h_new = (1.0 - z) * n + z * h
        if need_mask:
            # Padded tail timesteps (t_base + t >= seq_len) leave h unchanged.
            h_new = jnp.where(t_base + t < seq_len, h_new, h)
        return h_new

    h_ref[...] = lax.fori_loop(0, TC, step, h_ref[...], unroll=unroll)

    # Fused fc + swish on the final hidden state, once per batch tile.
    @pl.when(t_chunk == pl.num_programs(1) - 1)
    def _():
        logits = jnp.dot(h_ref[...].astype(jnp.bfloat16), w_fc_ref[...],
                         preferred_element_type=jnp.float32) + b_fc_ref[...]
        out_ref[...] = (logits * jax.nn.sigmoid(logits)).astype(out_ref.dtype)


def modified_gru_forward(x, w_ih, w_hh, b_ih, b_hh, w_fc, b_fc, *, t_chunk=None):
    B, T, I = x.shape
    H = w_hh.shape[1]
    C = w_fc.shape[0]

    f32, bf16 = jnp.float32, jnp.bfloat16

    # Hardware-friendly padded sizes (lane = 128, sublane = 8).
    Hp = _round_up(H, 128)
    Ip = _round_up(I, 128)
    Cp = _round_up(C, 128)
    B8 = _round_up(B, 8)

    # Batch tile: whenever B8 > 8, split into >= 2 programs along the
    # "parallel" axis so v7x's two TensorCores both get work (no extra padding
    # work is introduced; harmless on single-TC v5e/v6e).
    if B8 <= 8:
        TB = 8
    else:
        TB = min(128, _round_up((B8 + 1) // 2, 8))
    Bp = _round_up(B8, TB)

    # Time chunk: sized so the f32 xg scratch stays <= ~4 MiB.
    if t_chunk is None:
        t_chunk = max(1, min(T, (4 << 20) // (TB * 3 * Hp * 4), 64))
    TC = max(1, min(t_chunk, T))
    Tp = _round_up(T, TC)
    need_mask = (Tp != T)

    # Unroll depth as a function of the per-step live set (grows with TB).
    if TB <= 32:
        unroll = min(TC, 8)
    elif TB <= 64:
        unroll = min(TC, 4)
    else:
        unroll = min(TC, 2)

    grid = (Bp // TB, Tp // TC)

    # --- wrapper-side layout plumbing (off the kernel critical path) --------
    # time-major, zero-padded, bf16 x: (Tp, Bp, Ip)
    x_t = jnp.transpose(x, (1, 0, 2)).astype(bf16)
    x_p = jnp.zeros((Tp, Bp, Ip), bf16).at[:T, :B, :I].set(x_t)

    def pad_gate_mat(w, in_pad):
        # (3H, In) -> (3Hp, in_pad), each gate block placed at g*Hp.
        out = jnp.zeros((3 * Hp, in_pad), w.dtype)
        for g in range(3):
            out = out.at[g * Hp:g * Hp + H, :w.shape[1]].set(w[g * H:(g + 1) * H])
        return out

    def pad_gate_vec(b):
        out = jnp.zeros((3 * Hp,), b.dtype)
        for g in range(3):
            out = out.at[g * Hp:g * Hp + H].set(b[g * H:(g + 1) * H])
        return out

    w_ih_p = pad_gate_mat(w_ih, Ip).T.astype(bf16)              # (Ip, 3Hp)
    w_hh_p = pad_gate_mat(w_hh, Hp).T.astype(bf16)              # (Hp, 3Hp)

    # Fold b_hh for the r/z gates into the input-projection bias; keep b_hn
    # separate (it must stay inside r*(W_hn h + b_hn) for PyTorch semantics).
    b_hh_rz = jnp.concatenate([b_hh[:2 * H], jnp.zeros((H,), b_hh.dtype)])
    b_xg = (pad_gate_vec(b_ih.astype(f32)) +
            pad_gate_vec(b_hh_rz.astype(f32))).reshape(1, 3 * Hp)
    b_hn = jnp.zeros((1, Hp), f32).at[0, :H].set(b_hh[2 * H:].astype(f32))

    w_fc_p = jnp.zeros((Hp, Cp), bf16).at[:H, :C].set(w_fc.T.astype(bf16))
    b_fc_p = jnp.zeros((1, Cp), f32).at[0, :C].set(b_fc.astype(f32))

    kernel = functools.partial(gru_fc_swish_kernel, seq_len=T,
                               unroll=unroll, need_mask=need_mask)

    # Explicit VMEM budget (upper bound: everything double-buffered) + headroom.
    footprint = (2 * TC * TB * Ip * 2                                 # x chunk
                 + 2 * (Ip * 3 * Hp + Hp * 3 * Hp + Hp * Cp) * 2      # weights
                 + 2 * (3 * Hp + Hp + Cp) * 4                         # biases
                 + 2 * TB * Cp * 4                                    # output
                 + TC * TB * 3 * Hp * 4 + TB * Hp * 4)                # scratch
    vmem_limit = min(64 << 20, max(16 << 20, int(footprint * 1.5) + (2 << 20)))

    def build(single_buffer_invariants):
        inv = dict(pipeline_mode=pl.Buffered(1)) if single_buffer_invariants else {}
        return pl.pallas_call(
            kernel,
            out_shape=jax.ShapeDtypeStruct((Bp, Cp), jnp.float32),
            grid=grid,
            in_specs=[
                pl.BlockSpec((TC, TB, Ip), lambda b, t: (t, b, 0)),        # x
                pl.BlockSpec((Ip, 3 * Hp), lambda b, t: (0, 0), **inv),    # W_ih
                pl.BlockSpec((Hp, 3 * Hp), lambda b, t: (0, 0), **inv),    # W_hh
                pl.BlockSpec((1, 3 * Hp), lambda b, t: (0, 0), **inv),     # b_xg
                pl.BlockSpec((1, Hp), lambda b, t: (0, 0), **inv),         # b_hn
                pl.BlockSpec((Hp, Cp), lambda b, t: (0, 0), **inv),        # W_fc
                pl.BlockSpec((1, Cp), lambda b, t: (0, 0), **inv),         # b_fc
            ],
            out_specs=pl.BlockSpec((TB, Cp), lambda b, t: (b, 0)),
            scratch_shapes=[pltpu.VMEM((TC, TB, 3 * Hp), jnp.float32),  # xg chunk
                            pltpu.VMEM((TB, Hp), jnp.float32)],         # h state
            compiler_params=pltpu.CompilerParams(
                dimension_semantics=("parallel", "arbitrary"),
                vmem_limit_bytes=vmem_limit),
        )

    args = (x_p, w_ih_p, w_hh_p, b_xg, b_hn, w_fc_p, b_fc_p)
    try:
        out = build(True)(*args)
    except Exception:
        # Fallback for builds where pipeline_mode=pl.Buffered(1) is unsupported
        # on TPU BlockSpecs; costs only extra VMEM, never correctness.
        out = build(False)(*args)

    return out[:B, :C]


def modified_gru_reference(x, w_ih, w_hh, b_ih, b_hh, w_fc, b_fc):
    """Pure-JAX f32 reference matching PyTorch nn.GRU semantics."""
    B, T, I = x.shape
    H = w_hh.shape[1]
    h = jnp.zeros((B, H), jnp.float32)
    for t in range(T):
        gx = x[:, t, :] @ w_ih.T + b_ih
        gh = h @ w_hh.T + b_hh
        r = jax.nn.sigmoid(gx[:, :H] + gh[:, :H])
        z = jax.nn.sigmoid(gx[:, H:2 * H] + gh[:, H:2 * H])
        n = jnp.tanh(gx[:, 2 * H:] + r * gh[:, 2 * H:])
        h = (1.0 - z) * n + z * h
    logits = h @ w_fc.T + b_fc
    return logits * jax.nn.sigmoid(logits)


def _make_params(key, I, H, C):
    ks = jax.random.split(key, 7)
    bound = 1.0 / jnp.sqrt(jnp.float32(H))
    u = lambda k, shape: jax.random.uniform(k, shape, jnp.float32, -bound, bound)
    return dict(
        w_ih=u(ks[0], (3 * H, I)),   # weight_ih_l0
        w_hh=u(ks[1], (3 * H, H)),   # weight_hh_l0
        b_ih=u(ks[2], (3 * H,)),     # bias_ih_l0
        b_hh=u(ks[3], (3 * H,)),     # bias_hh_l0
        w_fc=u(ks[4], (C, H)),       # fc.weight
        b_fc=u(ks[5], (C,)),         # fc.bias
    )


def _check_case(key, B, T, I, H, C, t_chunk=None):
    kx, kp = jax.random.split(key)
    x = jax.random.normal(kx, (B, T, I), jnp.float32)
    p = _make_params(kp, I, H, C)

    out = modified_gru_forward(x, p["w_ih"], p["w_hh"], p["b_ih"], p["b_hh"],
                               p["w_fc"], p["b_fc"], t_chunk=t_chunk)
    out = jax.block_until_ready(out)

    ref = modified_gru_reference(x, p["w_ih"], p["w_hh"], p["b_ih"], p["b_hh"],
                                 p["w_fc"], p["b_fc"])
    assert out.shape == (B, C)
    # bf16 MXU feeds (f32 accumulate); h re-quantization error compounds with T,
    # so the tolerance scales with sequence length.
    tol = 2e-2 + 1e-3 * T
    max_err = float(jnp.max(jnp.abs(out - ref)))
    assert jnp.allclose(out, ref, atol=tol, rtol=tol), \
        f"mismatch vs reference (B={B}, T={T}): max abs err {max_err}, tol {tol}"


if __name__ == "__main__":
    key = jax.random.PRNGKey(0)
    k1, k2 = jax.random.split(key)

    # Small shapes implied by the module: (batch, seq, input_size) -> (batch, classes).
    # Case 1: single batch tile, single time chunk, full unroll.
    _check_case(k1, B=2, T=8, I=16, H=32, C=10)
    # Case 2: B > TB (2 batch programs, padded batch tail), T > chunk (3 time
    # chunks with a masked padded tail), partial unroll.
    _check_case(k2, B=20, T=40, I=16, H=32, C=10, t_chunk=16)

    print("KERNEL_OK")
</pallas_src>

<mosaic_0001>
module attributes {stable_mosaic.version = 11 : i64} {
  func.func @gru_fc_swish_kernel(%arg0: i32, %arg1: i32, %arg2: memref<8x8x128xbf16, #tpu.memory_space<vmem>>, %arg3: memref<128x384xbf16, #tpu.memory_space<vmem>>, %arg4: memref<128x384xbf16, #tpu.memory_space<vmem>>, %arg5: memref<1x384xf32, #tpu.memory_space<vmem>>, %arg6: memref<1x128xf32, #tpu.memory_space<vmem>>, %arg7: memref<128x128xbf16, #tpu.memory_space<vmem>>, %arg8: memref<1x128xf32, #tpu.memory_space<vmem>>, %arg9: memref<8x128xf32, #tpu.memory_space<vmem>>, %arg10: memref<8x8x384xf32, #tpu.memory_space<vmem>>, %arg11: memref<8x128xf32, #tpu.memory_space<vmem>>) attributes {dimension_semantics = [#tpu.dimension_semantics<parallel>, #tpu.dimension_semantics<arbitrary>], iteration_bounds = array<i64: 1, 1>, scalar_prefetch = 0 : i64, scratch_operands = 2 : i64, tpu.core_type = #tpu.core_type<tc>, window_params = [{transform_indices = @transform_0, window_bounds = array<i64: 8, 8, 128>}, {pipeline_mode = #tpu.pipeline_mode<synchronous>, transform_indices = @transform_1, window_bounds = array<i64: 128, 384>}, {pipeline_mode = #tpu.pipeline_mode<synchronous>, transform_indices = @transform_2, window_bounds = array<i64: 128, 384>}, {pipeline_mode = #tpu.pipeline_mode<synchronous>, transform_indices = @transform_3, window_bounds = array<i64: 1, 384>}, {pipeline_mode = #tpu.pipeline_mode<synchronous>, transform_indices = @transform_4, window_bounds = array<i64: 1, 128>}, {pipeline_mode = #tpu.pipeline_mode<synchronous>, transform_indices = @transform_5, window_bounds = array<i64: 128, 128>}, {pipeline_mode = #tpu.pipeline_mode<synchronous>, transform_indices = @transform_6, window_bounds = array<i64: 1, 128>}, {transform_indices = @transform_7, window_bounds = array<i64: 8, 128>}]} {
    %c0_i32 = arith.constant 0 : i32
    %0 = arith.cmpi eq, %arg1, %c0_i32 : i32
    %1 = arith.extui %0 : i1 to i32
    %c0_i32_0 = arith.constant 0 : i32
    %2 = arith.cmpi ne, %1, %c0_i32_0 : i32
    scf.if %2 {
      %cst_69 = arith.constant 0.000000e+00 : f32
      %277 = vector.broadcast %cst_69 : f32 to vector<8x128xf32>
      %c0_70 = arith.constant 0 : index
      %c0_71 = arith.constant 0 : index
      %278 = vector.load %arg11[%c0_70, %c0_71] : memref<8x128xf32, #tpu.memory_space<vmem>>, vector<8x128xf32>
      tpu.vector_store %arg11[%c0_70, %c0_71], %277 {strides = array<i32>} : memref<8x128xf32, #tpu.memory_space<vmem>>, vector<8x128xf32>,
    } else {
    }
    %c0 = arith.constant 0 : index
    %c0_1 = arith.constant 0 : index
    %c0_2 = arith.constant 0 : index
    %3 = vector.load %arg2[%c0, %c0_1, %c0_2] : memref<8x8x128xbf16, #tpu.memory_space<vmem>>, vector<8x8x128xbf16>
    %4 = vector.shape_cast %3 : vector<8x8x128xbf16> to vector<64x128xbf16>
    %c0_3 = arith.constant 0 : index
    %c0_4 = arith.constant 0 : index
    %5 = vector.load %arg3[%c0_3, %c0_4] : memref<128x384xbf16, #tpu.memory_space<vmem>>, vector<128x384xbf16>
    %cst = arith.constant dense<0.000000e+00> : vector<64x384xf32>
    %6 = tpu.matmul %4, %5, %cst {dimension_numbers = #tpu.dot_dimension_numbers<[1], [0], [0], [1], [0, 0, 1, 1], [], []>} : vector<64x128xbf16>, vector<128x384xbf16>, vector<64x384xf32> -> vector<64x384xf32>
    %c0_5 = arith.constant 0 : index
    %c0_6 = arith.constant 0 : index
    %7 = vector.load %arg5[%c0_5, %c0_6] : memref<1x384xf32, #tpu.memory_space<vmem>>, vector<1x384xf32>
    %8 = vector.broadcast %7 : vector<1x384xf32> to vector<64x384xf32>
    %9 = arith.addf %6, %8 : vector<64x384xf32>
    %10 = vector.shape_cast %9 : vector<64x384xf32> to vector<8x8x384xf32>
    %c0_7 = arith.constant 0 : index
    %c0_8 = arith.constant 0 : index
    %c0_9 = arith.constant 0 : index
    %11 = vector.load %arg10[%c0_7, %c0_8, %c0_9] : memref<8x8x384xf32, #tpu.memory_space<vmem>>, vector<8x8x384xf32>
    tpu.vector_store %arg10[%c0_7, %c0_8, %c0_9], %10 {strides = array<i32>} : memref<8x8x384xf32, #tpu.memory_space<vmem>>, vector<8x8x384xf32>,
    %c0_10 = arith.constant 0 : index
    %c0_11 = arith.constant 0 : index
    %12 = vector.load %arg4[%c0_10, %c0_11] : memref<128x384xbf16, #tpu.memory_space<vmem>>, vector<128x384xbf16>
    %c0_12 = arith.constant 0 : index
    %c0_13 = arith.constant 0 : index
    %13 = vector.load %arg6[%c0_12, %c0_13] : memref<1x128xf32, #tpu.memory_space<vmem>>, vector<1x128xf32>
    %14 = vector.shape_cast %13 : vector<1x128xf32> to vector<1x128xf32>
    %15 = vector.broadcast %14 : vector<1x128xf32> to vector<8x128xf32>
    %c0_14 = arith.constant 0 : index
    %c0_15 = arith.constant 0 : index
    %16 = vector.load %arg11[%c0_14, %c0_15] : memref<8x128xf32, #tpu.memory_space<vmem>>, vector<8x128xf32>
    %c0_i32_16 = arith.constant 0 : i32
    %17 = arith.index_cast %c0_i32_16 : i32 to index
    %c0_17 = arith.constant 0 : index
    %c0_18 = arith.constant 0 : index
    %18 = vector.load %arg10[%17, %c0_17, %c0_18] : memref<8x8x384xf32, #tpu.memory_space<vmem>>, vector<1x8x384xf32>
    %19 = vector.shape_cast %18 : vector<1x8x384xf32> to vector<8x384xf32>
    %20 = arith.truncf %16 : vector<8x128xf32> to vector<8x128xbf16>
    %cst_19 = arith.constant dense<0.000000e+00> : vector<8x384xf32>
    %21 = tpu.matmul %20, %12, %cst_19 {dimension_numbers = #tpu.dot_dimension_numbers<[1], [0], [0], [1], [0, 0, 1, 1], [], []>} : vector<8x128xbf16>, vector<128x384xbf16>, vector<8x384xf32> -> vector<8x384xf32>
    %22 = vector.extract_strided_slice %19 {offsets = [0, 0], sizes = [8, 128], strides = [1, 1]} : vector<8x384xf32> to vector<8x128xf32>
    %23 = vector.extract_strided_slice %21 {offsets = [0, 0], sizes = [8, 128], strides = [1, 1]} : vector<8x384xf32> to vector<8x128xf32>
    %24 = arith.addf %22, %23 : vector<8x128xf32>
    %25 = arith.negf %24 : vector<8x128xf32>
    %26 = math.exp %25 : vector<8x128xf32>
    %cst_20 = arith.constant 1.000000e+00 : f32
    %27 = vector.broadcast %cst_20 : f32 to vector<8x128xf32>
    %28 = arith.addf %27, %26 : vector<8x128xf32>
    %29 = arith.divf %27, %28 : vector<8x128xf32>
    %30 = vector.extract_strided_slice %19 {offsets = [0, 128], sizes = [8, 128], strides = [1, 1]} : vector<8x384xf32> to vector<8x128xf32>
    %31 = vector.extract_strided_slice %21 {offsets = [0, 128], sizes = [8, 128], strides = [1, 1]} : vector<8x384xf32> to vector<8x128xf32>
    %32 = arith.addf %30, %31 : vector<8x128xf32>
    %33 = arith.negf %32 : vector<8x128xf32>
    %34 = math.exp %33 : vector<8x128xf32>
    %cst_21 = arith.constant 1.000000e+00 : f32
    %35 = vector.broadcast %cst_21 : f32 to vector<8x128xf32>
    %36 = arith.addf %35, %34 : vector<8x128xf32>
    %37 = arith.divf %35, %36 : vector<8x128xf32>
    %38 = vector.extract_strided_slice %19 {offsets = [0, 256], sizes = [8, 128], strides = [1, 1]} : vector<8x384xf32> to vector<8x128xf32>
    %39 = vector.extract_strided_slice %21 {offsets = [0, 256], sizes = [8, 128], strides = [1, 1]} : vector<8x384xf32> to vector<8x128xf32>
    %40 = arith.addf %39, %15 : vector<8x128xf32>
    %41 = arith.mulf %29, %40 : vector<8x128xf32>
    %42 = arith.addf %38, %41 : vector<8x128xf32>
    %43 = math.tanh %42 : vector<8x128xf32>
    %cst_22 = arith.constant 1.000000e+00 : f32
    %44 = vector.broadcast %cst_22 : f32 to vector<8x128xf32>
    %45 = arith.subf %44, %37 : vector<8x128xf32>
    %46 = arith.mulf %45, %43 : vector<8x128xf32>
    %47 = arith.mulf %37, %16 : vector<8x128xf32>
    %48 = arith.addf %46, %47 : vector<8x128xf32>
    %c1_i32 = arith.constant 1 : i32
    %49 = arith.index_cast %c1_i32 : i32 to index
    %c0_23 = arith.constant 0 : index
    %c0_24 = arith.constant 0 : index
    %50 = vector.load %arg10[%49, %c0_23, %c0_24] : memref<8x8x384xf32, #tpu.memory_space<vmem>>, vector<1x8x384xf32>
    %51 = vector.shape_cast %50 : vector<1x8x384xf32> to vector<8x384xf32>
    %52 = arith.truncf %48 : vector<8x128xf32> to vector<8x128xbf16>
    %cst_25 = arith.constant dense<0.000000e+00> : vector<8x384xf32>
    %53 = tpu.matmul %52, %12, %cst_25 {dimension_numbers = #tpu.dot_dimension_numbers<[1], [0], [0], [1], [0, 0, 1, 1], [], []>} : vector<8x128xbf16>, vector<128x384xbf16>, vector<8x384xf32> -> vector<8x384xf32>
    %54 = vector.extract_strided_slice %51 {offsets = [0, 0], sizes = [8, 128], strides = [1, 1]} : vector<8x384xf32> to vector<8x128xf32>
    %55 = vector.extract_strided_slice %53 {offsets = [0, 0], sizes = [8, 128], strides = [1, 1]} : vector<8x384xf32> to vector<8x128xf32>
    %56 = arith.addf %54, %55 : vector<8x128xf32>
    %57 = arith.negf %56 : vector<8x128xf32>
    %58 = math.exp %57 : vector<8x128xf32>
    %cst_26 = arith.constant 1.000000e+00 : f32
    %59 = vector.broadcast %cst_26 : f32 to vector<8x128xf32>
    %60 = arith.addf %59, %58 : vector<8x128xf32>
    %61 = arith.divf %59, %60 : vector<8x128xf32>
    %62 = vector.extract_strided_slice %51 {offsets = [0, 128], sizes = [8, 128], strides = [1, 1]} : vector<8x384xf32> to vector<8x128xf32>
    %63 = vector.extract_strided_slice %53 {offsets = [0, 128], sizes = [8, 128], strides = [1, 1]} : vector<8x384xf32> to vector<8x128xf32>
    %64 = arith.addf %62, %63 : vector<8x128xf32>
    %65 = arith.negf %64 : vector<8x128xf32>
    %66 = math.exp %65 : vector<8x128xf32>
    %cst_27 = arith.constant 1.000000e+00 : f32
    %67 = vector.broadcast %cst_27 : f32 to vector<8x128xf32>
    %68 = arith.addf %67, %66 : vector<8x128xf32>
    %69 = arith.divf %67, %68 : vector<8x128xf32>
    %70 = vector.extract_strided_slice %51 {offsets = [0, 256], sizes = [8, 128], strides = [1, 1]} : vector<8x384xf32> to vector<8x128xf32>
    %71 = vector.extract_strided_slice %53 {offsets = [0, 256], sizes = [8, 128], strides = [1, 1]} : vector<8x384xf32> to vector<8x128xf32>
    %72 = arith.addf %71, %15 : vector<8x128xf32>
    %73 = arith.mulf %61, %72 : vector<8x128xf32>
    %74 = arith.addf %70, %73 : vector<8x128xf32>
    %75 = math.tanh %74 : vector<8x128xf32>
    %cst_28 = arith.constant 1.000000e+00 : f32
    %76 = vector.broadcast %cst_28 : f32 to vector<8x128xf32>
    %77 = arith.subf %76, %69 : vector<8x128xf32>
    %78 = arith.mulf %77, %75 : vector<8x128xf32>
    %79 = arith.mulf %69, %48 : vector<8x128xf32>
    %80 = arith.addf %78, %79 : vector<8x128xf32>
    %c2_i32 = arith.constant 2 : i32
    %81 = arith.index_cast %c2_i32 : i32 to index
    %c0_29 = arith.constant 0 : index
    %c0_30 = arith.constant 0 : index
    %82 = vector.load %arg10[%81, %c0_29, %c0_30] : memref<8x8x384xf32, #tpu.memory_space<vmem>>, vector<1x8x384xf32>
    %83 = vector.shape_cast %82 : vector<1x8x384xf32> to vector<8x384xf32>
    %84 = arith.truncf %80 : vector<8x128xf32> to vector<8x128xbf16>
    %cst_31 = arith.constant dense<0.000000e+00> : vector<8x384xf32>
    %85 = tpu.matmul %84, %12, %cst_31 {dimension_numbers = #tpu.dot_dimension_numbers<[1], [0], [0], [1], [0, 0, 1, 1], [], []>} : vector<8x128xbf16>, vector<128x384xbf16>, vector<8x384xf32> -> vector<8x384xf32>
    %86 = vector.extract_strided_slice %83 {offsets = [0, 0], sizes = [8, 128], strides = [1, 1]} : vector<8x384xf32> to vector<8x128xf32>
    %87 = vector.extract_strided_slice %85 {offsets = [0, 0], sizes = [8, 128], strides = [1, 1]} : vector<8x384xf32> to vector<8x128xf32>
    %88 = arith.addf %86, %87 : vector<8x128xf32>
    %89 = arith.negf %88 : vector<8x128xf32>
    %90 = math.exp %89 : vector<8x128xf32>
    %cst_32 = arith.constant 1.000000e+00 : f32
    %91 = vector.broadcast %cst_32 : f32 to vector<8x128xf32>
    %92 = arith.addf %91, %90 : vector<8x128xf32>
    %93 = arith.divf %91, %92 : vector<8x128xf32>
    %94 = vector.extract_strided_slice %83 {offsets = [0, 128], sizes = [8, 128], strides = [1, 1]} : vector<8x384xf32> to vector<8x128xf32>
    %95 = vector.extract_strided_slice %85 {offsets = [0, 128], sizes = [8, 128], strides = [1, 1]} : vector<8x384xf32> to vector<8x128xf32>
    %96 = arith.addf %94, %95 : vector<8x128xf32>
    %97 = arith.negf %96 : vector<8x128xf32>
    %98 = math.exp %97 : vector<8x128xf32>
    %cst_33 = arith.constant 1.000000e+00 : f32
    %99 = vector.broadcast %cst_33 : f32 to vector<8x128xf32>
    %100 = arith.addf %99, %98 : vector<8x128xf32>
    %101 = arith.divf %99, %100 : vector<8x128xf32>
    %102 = vector.extract_strided_slice %83 {offsets = [0, 256], sizes = [8, 128], strides = [1, 1]} : vector<8x384xf32> to vector<8x128xf32>
    %103 = vector.extract_strided_slice %85 {offsets = [0, 256], sizes = [8, 128], strides = [1, 1]} : vector<8x384xf32> to vector<8x128xf32>
    %104 = arith.addf %103, %15 : vector<8x128xf32>
    %105 = arith.mulf %93, %104 : vector<8x128xf32>
    %106 = arith.addf %102, %105 : vector<8x128xf32>
    %107 = math.tanh %106 : vector<8x128xf32>
    %cst_34 = arith.constant 1.000000e+00 : f32
    %108 = vector.broadcast %cst_34 : f32 to vector<8x128xf32>
    %109 = arith.subf %108, %101 : vector<8x128xf32>
    %110 = arith.mulf %109, %107 : vector<8x128xf32>
    %111 = arith.mulf %101, %80 : vector<8x128xf32>
    %112 = arith.addf %110, %111 : vector<8x128xf32>
    %c3_i32 = arith.constant 3 : i32
    %113 = arith.index_cast %c3_i32 : i32 to index
    %c0_35 = arith.constant 0 : index
    %c0_36 = arith.constant 0 : index
    %114 = vector.load %arg10[%113, %c0_35, %c0_36] : memref<8x8x384xf32, #tpu.memory_space<vmem>>, vector<1x8x384xf32>
    %115 = vector.shape_cast %114 : vector<1x8x384xf32> to vector<8x384xf32>
    %116 = arith.truncf %112 : vector<8x128xf32> to vector<8x128xbf16>
    %cst_37 = arith.constant dense<0.000000e+00> : vector<8x384xf32>
    %117 = tpu.matmul %116, %12, %cst_37 {dimension_numbers = #tpu.dot_dimension_numbers<[1], [0], [0], [1], [0, 0, 1, 1], [], []>} : vector<8x128xbf16>, vector<128x384xbf16>, vector<8x384xf32> -> vector<8x384xf32>
    %118 = vector.extract_strided_slice %115 {offsets = [0, 0], sizes = [8, 128], strides = [1, 1]} : vector<8x384xf32> to vector<8x128xf32>
    %119 = vector.extract_strided_slice %117 {offsets = [0, 0], sizes = [8, 128], strides = [1, 1]} : vector<8x384xf32> to vector<8x128xf32>
    %120 = arith.addf %118, %119 : vector<8x128xf32>
    %121 = arith.negf %120 : vector<8x128xf32>
    %122 = math.exp %121 : vector<8x128xf32>
    %cst_38 = arith.constant 1.000000e+00 : f32
    %123 = vector.broadcast %cst_38 : f32 to vector<8x128xf32>
    %124 = arith.addf %123, %122 : vector<8x128xf32>
    %125 = arith.divf %123, %124 : vector<8x128xf32>
    %126 = vector.extract_strided_slice %115 {offsets = [0, 128], sizes = [8, 128], strides = [1, 1]} : vector<8x384xf32> to vector<8x128xf32>
    %127 = vector.extract_strided_slice %117 {offsets = [0, 128], sizes = [8, 128], strides = [1, 1]} : vector<8x384xf32> to vector<8x128xf32>
    %128 = arith.addf %126, %127 : vector<8x128xf32>
    %129 = arith.negf %128 : vector<8x128xf32>
    %130 = math.exp %129 : vector<8x128xf32>
    %cst_39 = arith.constant 1.000000e+00 : f32
    %131 = vector.broadcast %cst_39 : f32 to vector<8x128xf32>
    %132 = arith.addf %131, %130 : vector<8x128xf32>
    %133 = arith.divf %131, %132 : vector<8x128xf32>
    %134 = vector.extract_strided_slice %115 {offsets = [0, 256], sizes = [8, 128], strides = [1, 1]} : vector<8x384xf32> to vector<8x128xf32>
    %135 = vector.extract_strided_slice %117 {offsets = [0, 256], sizes = [8, 128], strides = [1, 1]} : vector<8x384xf32> to vector<8x128xf32>
    %136 = arith.addf %135, %15 : vector<8x128xf32>
    %137 = arith.mulf %125, %136 : vector<8x128xf32>
    %138 = arith.addf %134, %137 : vector<8x128xf32>
    %139 = math.tanh %138 : vector<8x128xf32>
    %cst_40 = arith.constant 1.000000e+00 : f32
    %140 = vector.broadcast %cst_40 : f32 to vector<8x128xf32>
    %141 = arith.subf %140, %133 : vector<8x128xf32>
    %142 = arith.mulf %141, %139 : vector<8x128xf32>
    %143 = arith.mulf %133, %112 : vector<8x128xf32>
    %144 = arith.addf %142, %143 : vector<8x128xf32>
    %c4_i32 = arith.constant 4 : i32
    %145 = arith.index_cast %c4_i32 : i32 to index
    %c0_41 = arith.constant 0 : index
    %c0_42 = arith.constant 0 : index
    %146 = vector.load %arg10[%145, %c0_41, %c0_42] : memref<8x8x384xf32, #tpu.memory_space<vmem>>, vector<1x8x384xf32>
    %147 = vector.shape_cast %146 : vector<1x8x384xf32> to vector<8x384xf32>
    %148 = arith.truncf %144 : vector<8x128xf32> to vector<8x128xbf16>
    %cst_43 = arith.constant dense<0.000000e+00> : vector<8x384xf32>
    %149 = tpu.matmul %148, %12, %cst_43 {dimension_numbers = #tpu.dot_dimension_numbers<[1], [0], [0], [1], [0, 0, 1, 1], [], []>} : vector<8x128xbf16>, vector<128x384xbf16>, vector<8x384xf32> -> vector<8x384xf32>
    %150 = vector.extract_strided_slice %147 {offsets = [0, 0], sizes = [8, 128], strides = [1, 1]} : vector<8x384xf32> to vector<8x128xf32>
    %151 = vector.extract_strided_slice %149 {offsets = [0, 0], sizes = [8, 128], strides = [1, 1]} : vector<8x384xf32> to vector<8x128xf32>
    %152 = arith.addf %150, %151 : vector<8x128xf32>
    %153 = arith.negf %152 : vector<8x128xf32>
    %154 = math.exp %153 : vector<8x128xf32>
    %cst_44 = arith.constant 1.000000e+00 : f32
    %155 = vector.broadcast %cst_44 : f32 to vector<8x128xf32>
    %156 = arith.addf %155, %154 : vector<8x128xf32>
    %157 = arith.divf %155, %156 : vector<8x128xf32>
    %158 = vector.extract_strided_slice %147 {offsets = [0, 128], sizes = [8, 128], strides = [1, 1]} : vector<8x384xf32> to vector<8x128xf32>
    %159 = vector.extract_strided_slice %149 {offsets = [0, 128], sizes = [8, 128], strides = [1, 1]} : vector<8x384xf32> to vector<8x128xf32>
    %160 = arith.addf %158, %159 : vector<8x128xf32>
    %161 = arith.negf %160 : vector<8x128xf32>
    %162 = math.exp %161 : vector<8x128xf32>
    %cst_45 = arith.constant 1.000000e+00 : f32
    %163 = vector.broadcast %cst_45 : f32 to vector<8x128xf32>
    %164 = arith.addf %163, %162 : vector<8x128xf32>
    %165 = arith.divf %163, %164 : vector<8x128xf32>
    %166 = vector.extract_strided_slice %147 {offsets = [0, 256], sizes = [8, 128], strides = [1, 1]} : vector<8x384xf32> to vector<8x128xf32>
    %167 = vector.extract_strided_slice %149 {offsets = [0, 256], sizes = [8, 128], strides = [1, 1]} : vector<8x384xf32> to vector<8x128xf32>
    %168 = arith.addf %167, %15 : vector<8x128xf32>
    %169 = arith.mulf %157, %168 : vector<8x128xf32>
    %170 = arith.addf %166, %169 : vector<8x128xf32>
    %171 = math.tanh %170 : vector<8x128xf32>
    %cst_46 = arith.constant 1.000000e+00 : f32
    %172 = vector.broadcast %cst_46 : f32 to vector<8x128xf32>
    %173 = arith.subf %172, %165 : vector<8x128xf32>
    %174 = arith.mulf %173, %171 : vector<8x128xf32>
    %175 = arith.mulf %165, %144 : vector<8x128xf32>
    %176 = arith.addf %174, %175 : vector<8x128xf32>
    %c5_i32 = arith.constant 5 : i32
    %177 = arith.index_cast %c5_i32 : i32 to index
    %c0_47 = arith.constant 0 : index
    %c0_48 = arith.constant 0 : index
    %178 = vector.load %arg10[%177, %c0_47, %c0_48] : memref<8x8x384xf32, #tpu.memory_space<vmem>>, vector<1x8x384xf32>
    %179 = vector.shape_cast %178 : vector<1x8x384xf32> to vector<8x384xf32>
    %180 = arith.truncf %176 : vector<8x128xf32> to vector<8x128xbf16>
    %cst_49 = arith.constant dense<0.000000e+00> : vector<8x384xf32>
    %181 = tpu.matmul %180, %12, %cst_49 {dimension_numbers = #tpu.dot_dimension_numbers<[1], [0], [0], [1], [0, 0, 1, 1], [], []>} : vector<8x128xbf16>, vector<128x384xbf16>, vector<8x384xf32> -> vector<8x384xf32>
    %182 = vector.extract_strided_slice %179 {offsets = [0, 0], sizes = [8, 128], strides = [1, 1]} : vector<8x384xf32> to vector<8x128xf32>
    %183 = vector.extract_strided_slice %181 {offsets = [0, 0], sizes = [8, 128], strides = [1, 1]} : vector<8x384xf32> to vector<8x128xf32>
    %184 = arith.addf %182, %183 : vector<8x128xf32>
    %185 = arith.negf %184 : vector<8x128xf32>
    %186 = math.exp %185 : vector<8x128xf32>
    %cst_50 = arith.constant 1.000000e+00 : f32
    %187 = vector.broadcast %cst_50 : f32 to vector<8x128xf32>
    %188 = arith.addf %187, %186 : vector<8x128xf32>
    %189 = arith.divf %187, %188 : vector<8x128xf32>
    %190 = vector.extract_strided_slice %179 {offsets = [0, 128], sizes = [8, 128], strides = [1, 1]} : vector<8x384xf32> to vector<8x128xf32>
    %191 = vector.extract_strided_slice %181 {offsets = [0, 128], sizes = [8, 128], strides = [1, 1]} : vector<8x384xf32> to vector<8x128xf32>
    %192 = arith.addf %190, %191 : vector<8x128xf32>
    %193 = arith.negf %192 : vector<8x128xf32>
    %194 = math.exp %193 : vector<8x128xf32>
    %cst_51 = arith.constant 1.000000e+00 : f32
    %195 = vector.broadcast %cst_51 : f32 to vector<8x128xf32>
    %196 = arith.addf %195, %194 : vector<8x128xf32>
    %197 = arith.divf %195, %196 : vector<8x128xf32>
    %198 = vector.extract_strided_slice %179 {offsets = [0, 256], sizes = [8, 128], strides = [1, 1]} : vector<8x384xf32> to vector<8x128xf32>
    %199 = vector.extract_strided_slice %181 {offsets = [0, 256], sizes = [8, 128], strides = [1, 1]} : vector<8x384xf32> to vector<8x128xf32>
    %200 = arith.addf %199, %15 : vector<8x128xf32>
    %201 = arith.mulf %189, %200 : vector<8x128xf32>
    %202 = arith.addf %198, %201 : vector<8x128xf32>
    %203 = math.tanh %202 : vector<8x128xf32>
    %cst_52 = arith.constant 1.000000e+00 : f32
    %204 = vector.broadcast %cst_52 : f32 to vector<8x128xf32>
    %205 = arith.subf %204, %197 : vector<8x128xf32>
    %206 = arith.mulf %205, %203 : vector<8x128xf32>
    %207 = arith.mulf %197, %176 : vector<8x128xf32>
    %208 = arith.addf %206, %207 : vector<8x128xf32>
    %c6_i32 = arith.constant 6 : i32
    %209 = arith.index_cast %c6_i32 : i32 to index
    %c0_53 = arith.constant 0 : index
    %c0_54 = arith.constant 0 : index
    %210 = vector.load %arg10[%209, %c0_53, %c0_54] : memref<8x8x384xf32, #tpu.memory_space<vmem>>, vector<1x8x384xf32>
    %211 = vector.shape_cast %210 : vector<1x8x384xf32> to vector<8x384xf32>
    %212 = arith.truncf %208 : vector<8x128xf32> to vector<8x128xbf16>
    %cst_55 = arith.constant dense<0.000000e+00> : vector<8x384xf32>
    %213 = tpu.matmul %212, %12, %cst_55 {dimension_numbers = #tpu.dot_dimension_numbers<[1], [0], [0], [1], [0, 0, 1, 1], [], []>} : vector<8x128xbf16>, vector<128x384xbf16>, vector<8x384xf32> -> vector<8x384xf32>
    %214 = vector.extract_strided_slice %211 {offsets = [0, 0], sizes = [8, 128], strides = [1, 1]} : vector<8x384xf32> to vector<8x128xf32>
    %215 = vector.extract_strided_slice %213 {offsets = [0, 0], sizes = [8, 128], strides = [1, 1]} : vector<8x384xf32> to vector<8x128xf32>
    %216 = arith.addf %214, %215 : vector<8x128xf32>
    %217 = arith.negf %216 : vector<8x128xf32>
    %218 = math.exp %217 : vector<8x128xf32>
    %cst_56 = arith.constant 1.000000e+00 : f32
    %219 = vector.broadcast %cst_56 : f32 to vector<8x128xf32>
    %220 = arith.addf %219, %218 : vector<8x128xf32>
    %221 = arith.divf %219, %220 : vector<8x128xf32>
    %222 = vector.extract_strided_slice %211 {offsets = [0, 128], sizes = [8, 128], strides = [1, 1]} : vector<8x384xf32> to vector<8x128xf32>
    %223 = vector.extract_strided_slice %213 {offsets = [0, 128], sizes = [8, 128], strides = [1, 1]} : vector<8x384xf32> to vector<8x128xf32>
    %224 = arith.addf %222, %223 : vector<8x128xf32>
    %225 = arith.negf %224 : vector<8x128xf32>
    %226 = math.exp %225 : vector<8x128xf32>
    %cst_57 = arith.constant 1.000000e+00 : f32
    %227 = vector.broadcast %cst_57 : f32 to vector<8x128xf32>
    %228 = arith.addf %227, %226 : vector<8x128xf32>
    %229 = arith.divf %227, %228 : vector<8x128xf32>
    %230 = vector.extract_strided_slice %211 {offsets = [0, 256], sizes = [8, 128], strides = [1, 1]} : vector<8x384xf32> to vector<8x128xf32>
    %231 = vector.extract_strided_slice %213 {offsets = [0, 256], sizes = [8, 128], strides = [1, 1]} : vector<8x384xf32> to vector<8x128xf32>
    %232 = arith.addf %231, %15 : vector<8x128xf32>
    %233 = arith.mulf %221, %232 : vector<8x128xf32>
    %234 = arith.addf %230, %233 : vector<8x128xf32>
    %235 = math.tanh %234 : vector<8x128xf32>
    %cst_58 = arith.constant 1.000000e+00 : f32
    %236 = vector.broadcast %cst_58 : f32 to vector<8x128xf32>
    %237 = arith.subf %236, %229 : vector<8x128xf32>
    %238 = arith.mulf %237, %235 : vector<8x128xf32>
    %239 = arith.mulf %229, %208 : vector<8x128xf32>
    %240 = arith.addf %238, %239 : vector<8x128xf32>
    %c7_i32 = arith.constant 7 : i32
    %241 = arith.index_cast %c7_i32 : i32 to index
    %c0_59 = arith.constant 0 : index
    %c0_60 = arith.constant 0 : index
    %242 = vector.load %arg10[%241, %c0_59, %c0_60] : memref<8x8x384xf32, #tpu.memory_space<vmem>>, vector<1x8x384xf32>
    %243 = vector.shape_cast %242 : vector<1x8x384xf32> to vector<8x384xf32>
    %244 = arith.truncf %240 : vector<8x128xf32> to vector<8x128xbf16>
    %cst_61 = arith.constant dense<0.000000e+00> : vector<8x384xf32>
    %245 = tpu.matmul %244, %12, %cst_61 {dimension_numbers = #tpu.dot_dimension_numbers<[1], [0], [0], [1], [0, 0, 1, 1], [], []>} : vector<8x128xbf16>, vector<128x384xbf16>, vector<8x384xf32> -> vector<8x384xf32>
    %246 = vector.extract_strided_slice %243 {offsets = [0, 0], sizes = [8, 128], strides = [1, 1]} : vector<8x384xf32> to vector<8x128xf32>
    %247 = vector.extract_strided_slice %245 {offsets = [0, 0], sizes = [8, 128], strides = [1, 1]} : vector<8x384xf32> to vector<8x128xf32>
    %248 = arith.addf %246, %247 : vector<8x128xf32>
    %249 = arith.negf %248 : vector<8x128xf32>
    %250 = math.exp %249 : vector<8x128xf32>
    %cst_62 = arith.constant 1.000000e+00 : f32
    %251 = vector.broadcast %cst_62 : f32 to vector<8x128xf32>
    %252 = arith.addf %251, %250 : vector<8x128xf32>
    %253 = arith.divf %251, %252 : vector<8x128xf32>
    %254 = vector.extract_strided_slice %243 {offsets = [0, 128], sizes = [8, 128], strides = [1, 1]} : vector<8x384xf32> to vector<8x128xf32>
    %255 = vector.extract_strided_slice %245 {offsets = [0, 128], sizes = [8, 128], strides = [1, 1]} : vector<8x384xf32> to vector<8x128xf32>
    %256 = arith.addf %254, %255 : vector<8x128xf32>
    %257 = arith.negf %256 : vector<8x128xf32>
    %258 = math.exp %257 : vector<8x128xf32>
    %cst_63 = arith.constant 1.000000e+00 : f32
    %259 = vector.broadcast %cst_63 : f32 to vector<8x128xf32>
    %260 = arith.addf %259, %258 : vector<8x128xf32>
    %261 = arith.divf %259, %260 : vector<8x128xf32>
    %262 = vector.extract_strided_slice %243 {offsets = [0, 256], sizes = [8, 128], strides = [1, 1]} : vector<8x384xf32> to vector<8x128xf32>
    %263 = vector.extract_strided_slice %245 {offsets = [0, 256], sizes = [8, 128], strides = [1, 1]} : vector<8x384xf32> to vector<8x128xf32>
    %264 = arith.addf %263, %15 : vector<8x128xf32>
    %265 = arith.mulf %253, %264 : vector<8x128xf32>
    %266 = arith.addf %262, %265 : vector<8x128xf32>
    %267 = math.tanh %266 : vector<8x128xf32>
    %cst_64 = arith.constant 1.000000e+00 : f32
    %268 = vector.broadcast %cst_64 : f32 to vector<8x128xf32>
    %269 = arith.subf %268, %261 : vector<8x128xf32>
    %270 = arith.mulf %269, %267 : vector<8x128xf32>
    %271 = arith.mulf %261, %240 : vector<8x128xf32>
    %272 = arith.addf %270, %271 : vector<8x128xf32>
    %c8_i32 = arith.constant 8 : i32
    %c0_65 = arith.constant 0 : index
    %c0_66 = arith.constant 0 : index
    %273 = vector.load %arg11[%c0_65, %c0_66] : memref<8x128xf32, #tpu.memory_space<vmem>>, vector<8x128xf32>
    tpu.vector_store %arg11[%c0_65, %c0_66], %272 {strides = array<i32>} : memref<8x128xf32, #tpu.memory_space<vmem>>, vector<8x128xf32>,
    %c0_i32_67 = arith.constant 0 : i32
    %274 = arith.cmpi eq, %arg1, %c0_i32_67 : i32
    %275 = arith.extui %274 : i1 to i32
    %c0_i32_68 = arith.constant 0 : i32
    %276 = arith.cmpi ne, %275, %c0_i32_68 : i32
    scf.if %276 {
      %c0_69 = arith.constant 0 : index
      %c0_70 = arith.constant 0 : index
      %277 = vector.load %arg11[%c0_69, %c0_70] : memref<8x128xf32, #tpu.memory_space<vmem>>, vector<8x128xf32>
      %278 = arith.truncf %277 : vector<8x128xf32> to vector<8x128xbf16>
      %c0_71 = arith.constant 0 : index
      %c0_72 = arith.constant 0 : index
      %279 = vector.load %arg7[%c0_71, %c0_72] : memref<128x128xbf16, #tpu.memory_space<vmem>>, vector<128x128xbf16>
      %cst_73 = arith.constant dense<0.000000e+00> : vector<8x128xf32>
      %280 = tpu.matmul %278, %279, %cst_73 {dimension_numbers = #tpu.dot_dimension_numbers<[1], [0], [0], [1], [0, 0, 1, 1], [], []>} : vector<8x128xbf16>, vector<128x128xbf16>, vector<8x128xf32> -> vector<8x128xf32>
      %c0_74 = arith.constant 0 : index
      %c0_75 = arith.constant 0 : index
      %281 = vector.load %arg8[%c0_74, %c0_75] : memref<1x128xf32, #tpu.memory_space<vmem>>, vector<1x128xf32>
      %282 = vector.broadcast %281 : vector<1x128xf32> to vector<8x128xf32>
      %283 = arith.addf %280, %282 : vector<8x128xf32>
      %284 = arith.negf %283 : vector<8x128xf32>
      %285 = math.exp %284 : vector<8x128xf32>
      %cst_76 = arith.constant 1.000000e+00 : f32
      %286 = vector.broadcast %cst_76 : f32 to vector<8x128xf32>
      %287 = arith.addf %286, %285 : vector<8x128xf32>
      %288 = arith.divf %286, %287 : vector<8x128xf32>
      %289 = arith.mulf %283, %288 : vector<8x128xf32>
      %c0_77 = arith.constant 0 : index
      %c0_78 = arith.constant 0 : index
      %290 = vector.load %arg9[%c0_77, %c0_78] : memref<8x128xf32, #tpu.memory_space<vmem>>, vector<8x128xf32>
      tpu.vector_store %arg9[%c0_77, %c0_78], %289 {strides = array<i32>} : memref<8x128xf32, #tpu.memory_space<vmem>>, vector<8x128xf32>,
    } else {
    }
    return
  }
  func.func @transform_0(%arg0: i32, %arg1: i32) -> (i32, i32, i32) {
    %c0_i32 = arith.constant 0 : i32
    %c0_i32_0 = arith.constant 0 : i32
    return %arg1, %arg0, %c0_i32 : i32, i32, i32
  }
  func.func @transform_1(%arg0: i32, %arg1: i32) -> (i32, i32) {
    %c0_i32 = arith.constant 0 : i32
    %c0_i32_0 = arith.constant 0 : i32
    %c0_i32_1 = arith.constant 0 : i32
    return %c0_i32, %c0_i32_0 : i32, i32
  }
  func.func @transform_2(%arg0: i32, %arg1: i32) -> (i32, i32) {
    %c0_i32 = arith.constant 0 : i32
    %c0_i32_0 = arith.constant 0 : i32
    %c0_i32_1 = arith.constant 0 : i32
    return %c0_i32, %c0_i32_0 : i32, i32
  }
  func.func @transform_3(%arg0: i32, %arg1: i32) -> (i32, i32) {
    %c0_i32 = arith.constant 0 : i32
    %c0_i32_0 = arith.constant 0 : i32
    %c0_i32_1 = arith.constant 0 : i32
    return %c0_i32, %c0_i32_0 : i32, i32
  }
  func.func @transform_4(%arg0: i32, %arg1: i32) -> (i32, i32) {
    %c0_i32 = arith.constant 0 : i32
    %c0_i32_0 = arith.constant 0 : i32
    %c0_i32_1 = arith.constant 0 : i32
    return %c0_i32, %c0_i32_0 : i32, i32
  }
  func.func @transform_5(%arg0: i32, %arg1: i32) -> (i32, i32) {
    %c0_i32 = arith.constant 0 : i32
    %c0_i32_0 = arith.constant 0 : i32
    %c0_i32_1 = arith.constant 0 : i32
    return %c0_i32, %c0_i32_0 : i32, i32
  }
  func.func @transform_6(%arg0: i32, %arg1: i32) -> (i32, i32) {
    %c0_i32 = arith.constant 0 : i32
    %c0_i32_0 = arith.constant 0 : i32
    %c0_i32_1 = arith.constant 0 : i32
    return %c0_i32, %c0_i32_0 : i32, i32
  }
  func.func @transform_7(%arg0: i32, %arg1: i32) -> (i32, i32) {
    %c0_i32 = arith.constant 0 : i32
    %c0_i32_0 = arith.constant 0 : i32
    return %arg0, %c0_i32 : i32, i32
  }
}

module attributes {stable_mosaic.version = 11 : i64} {
  func.func @gru_fc_swish_kernel(%arg0: i32, %arg1: i32, %arg2: memref<8x8x128xbf16, #tpu.memory_space<vmem>>, %arg3: memref<128x384xbf16, #tpu.memory_space<vmem>>, %arg4: memref<128x384xbf16, #tpu.memory_space<vmem>>, %arg5: memref<1x384xf32, #tpu.memory_space<vmem>>, %arg6: memref<1x128xf32, #tpu.memory_space<vmem>>, %arg7: memref<128x128xbf16, #tpu.memory_space<vmem>>, %arg8: memref<1x128xf32, #tpu.memory_space<vmem>>, %arg9: memref<8x128xf32, #tpu.memory_space<vmem>>, %arg10: memref<8x8x384xf32, #tpu.memory_space<vmem>>, %arg11: memref<8x128xf32, #tpu.memory_space<vmem>>) attributes {dimension_semantics = [#tpu.dimension_semantics<parallel>, #tpu.dimension_semantics<arbitrary>], iteration_bounds = array<i64: 1, 1>, scalar_prefetch = 0 : i64, scratch_operands = 2 : i64, tpu.core_type = #tpu.core_type<tc>, window_params = [{transform_indices = @transform_0, window_bounds = array<i64: 8, 8, 128>}, {pipeline_mode = #tpu.pipeline_mode<synchronous>, transform_indices = @transform_1, window_bounds = array<i64: 128, 384>}, {pipeline_mode = #tpu.pipeline_mode<synchronous>, transform_indices = @transform_2, window_bounds = array<i64: 128, 384>}, {pipeline_mode = #tpu.pipeline_mode<synchronous>, transform_indices = @transform_3, window_bounds = array<i64: 1, 384>}, {pipeline_mode = #tpu.pipeline_mode<synchronous>, transform_indices = @transform_4, window_bounds = array<i64: 1, 128>}, {pipeline_mode = #tpu.pipeline_mode<synchronous>, transform_indices = @transform_5, window_bounds = array<i64: 128, 128>}, {pipeline_mode = #tpu.pipeline_mode<synchronous>, transform_indices = @transform_6, window_bounds = array<i64: 1, 128>}, {transform_indices = @transform_7, window_bounds = array<i64: 8, 128>}]} {
    %c0_i32 = arith.constant 0 : i32
    %0 = arith.cmpi eq, %arg1, %c0_i32 : i32
    %1 = arith.extui %0 : i1 to i32
    %c0_i32_0 = arith.constant 0 : i32
    %2 = arith.cmpi ne, %1, %c0_i32_0 : i32
    scf.if %2 {
      %cst_69 = arith.constant 0.000000e+00 : f32
      %277 = vector.broadcast %cst_69 : f32 to vector<8x128xf32>
      %c0_70 = arith.constant 0 : index
      %c0_71 = arith.constant 0 : index
      %278 = vector.load %arg11[%c0_70, %c0_71] : memref<8x128xf32, #tpu.memory_space<vmem>>, vector<8x128xf32>
      tpu.vector_store %arg11[%c0_70, %c0_71], %277 {strides = array<i32>} : memref<8x128xf32, #tpu.memory_space<vmem>>, vector<8x128xf32>,
    } else {
    }
    %c0 = arith.constant 0 : index
    %c0_1 = arith.constant 0 : index
    %c0_2 = arith.constant 0 : index
    %3 = vector.load %arg2[%c0, %c0_1, %c0_2] : memref<8x8x128xbf16, #tpu.memory_space<vmem>>, vector<8x8x128xbf16>
    %4 = vector.shape_cast %3 : vector<8x8x128xbf16> to vector<64x128xbf16>
    %c0_3 = arith.constant 0 : index
    %c0_4 = arith.constant 0 : index
    %5 = vector.load %arg3[%c0_3, %c0_4] : memref<128x384xbf16, #tpu.memory_space<vmem>>, vector<128x384xbf16>
    %cst = arith.constant dense<0.000000e+00> : vector<64x384xf32>
    %6 = tpu.matmul %4, %5, %cst {dimension_numbers = #tpu.dot_dimension_numbers<[1], [0], [0], [1], [0, 0, 1, 1], [], []>} : vector<64x128xbf16>, vector<128x384xbf16>, vector<64x384xf32> -> vector<64x384xf32>
    %c0_5 = arith.constant 0 : index
    %c0_6 = arith.constant 0 : index
    %7 = vector.load %arg5[%c0_5, %c0_6] : memref<1x384xf32, #tpu.memory_space<vmem>>, vector<1x384xf32>
    %8 = vector.broadcast %7 : vector<1x384xf32> to vector<64x384xf32>
    %9 = arith.addf %6, %8 : vector<64x384xf32>
    %10 = vector.shape_cast %9 : vector<64x384xf32> to vector<8x8x384xf32>
    %c0_7 = arith.constant 0 : index
    %c0_8 = arith.constant 0 : index
    %c0_9 = arith.constant 0 : index
    %11 = vector.load %arg10[%c0_7, %c0_8, %c0_9] : memref<8x8x384xf32, #tpu.memory_space<vmem>>, vector<8x8x384xf32>
    tpu.vector_store %arg10[%c0_7, %c0_8, %c0_9], %10 {strides = array<i32>} : memref<8x8x384xf32, #tpu.memory_space<vmem>>, vector<8x8x384xf32>,
    %c0_10 = arith.constant 0 : index
    %c0_11 = arith.constant 0 : index
    %12 = vector.load %arg4[%c0_10, %c0_11] : memref<128x384xbf16, #tpu.memory_space<vmem>>, vector<128x384xbf16>
    %c0_12 = arith.constant 0 : index
    %c0_13 = arith.constant 0 : index
    %13 = vector.load %arg6[%c0_12, %c0_13] : memref<1x128xf32, #tpu.memory_space<vmem>>, vector<1x128xf32>
    %14 = vector.shape_cast %13 : vector<1x128xf32> to vector<1x128xf32>
    %15 = vector.broadcast %14 : vector<1x128xf32> to vector<8x128xf32>
    %c0_14 = arith.constant 0 : index
    %c0_15 = arith.constant 0 : index
    %16 = vector.load %arg11[%c0_14, %c0_15] : memref<8x128xf32, #tpu.memory_space<vmem>>, vector<8x128xf32>
    %c0_i32_16 = arith.constant 0 : i32
    %17 = arith.index_cast %c0_i32_16 : i32 to index
    %c0_17 = arith.constant 0 : index
    %c0_18 = arith.constant 0 : index
    %18 = vector.load %arg10[%17, %c0_17, %c0_18] : memref<8x8x384xf32, #tpu.memory_space<vmem>>, vector<1x8x384xf32>
    %19 = vector.shape_cast %18 : vector<1x8x384xf32> to vector<8x384xf32>
    %20 = arith.truncf %16 : vector<8x128xf32> to vector<8x128xbf16>
    %cst_19 = arith.constant dense<0.000000e+00> : vector<8x384xf32>
    %21 = tpu.matmul %20, %12, %cst_19 {dimension_numbers = #tpu.dot_dimension_numbers<[1], [0], [0], [1], [0, 0, 1, 1], [], []>} : vector<8x128xbf16>, vector<128x384xbf16>, vector<8x384xf32> -> vector<8x384xf32>
    %22 = vector.extract_strided_slice %19 {offsets = [0, 0], sizes = [8, 128], strides = [1, 1]} : vector<8x384xf32> to vector<8x128xf32>
    %23 = vector.extract_strided_slice %21 {offsets = [0, 0], sizes = [8, 128], strides = [1, 1]} : vector<8x384xf32> to vector<8x128xf32>
    %24 = arith.addf %22, %23 : vector<8x128xf32>
    %25 = arith.negf %24 : vector<8x128xf32>
    %26 = math.exp %25 : vector<8x128xf32>
    %cst_20 = arith.constant 1.000000e+00 : f32
    %27 = vector.broadcast %cst_20 : f32 to vector<8x128xf32>
    %28 = arith.addf %27, %26 : vector<8x128xf32>
    %29 = arith.divf %27, %28 : vector<8x128xf32>
    %30 = vector.extract_strided_slice %19 {offsets = [0, 128], sizes = [8, 128], strides = [1, 1]} : vector<8x384xf32> to vector<8x128xf32>
    %31 = vector.extract_strided_slice %21 {offsets = [0, 128], sizes = [8, 128], strides = [1, 1]} : vector<8x384xf32> to vector<8x128xf32>
    %32 = arith.addf %30, %31 : vector<8x128xf32>
    %33 = arith.negf %32 : vector<8x128xf32>
    %34 = math.exp %33 : vector<8x128xf32>
    %cst_21 = arith.constant 1.000000e+00 : f32
    %35 = vector.broadcast %cst_21 : f32 to vector<8x128xf32>
    %36 = arith.addf %35, %34 : vector<8x128xf32>
    %37 = arith.divf %35, %36 : vector<8x128xf32>
    %38 = vector.extract_strided_slice %19 {offsets = [0, 256], sizes = [8, 128], strides = [1, 1]} : vector<8x384xf32> to vector<8x128xf32>
    %39 = vector.extract_strided_slice %21 {offsets = [0, 256], sizes = [8, 128], strides = [1, 1]} : vector<8x384xf32> to vector<8x128xf32>
    %40 = arith.addf %39, %15 : vector<8x128xf32>
    %41 = arith.mulf %29, %40 : vector<8x128xf32>
    %42 = arith.addf %38, %41 : vector<8x128xf32>
    %43 = math.tanh %42 : vector<8x128xf32>
    %cst_22 = arith.constant 1.000000e+00 : f32
    %44 = vector.broadcast %cst_22 : f32 to vector<8x128xf32>
    %45 = arith.subf %44, %37 : vector<8x128xf32>
    %46 = arith.mulf %45, %43 : vector<8x128xf32>
    %47 = arith.mulf %37, %16 : vector<8x128xf32>
    %48 = arith.addf %46, %47 : vector<8x128xf32>
    %c1_i32 = arith.constant 1 : i32
    %49 = arith.index_cast %c1_i32 : i32 to index
    %c0_23 = arith.constant 0 : index
    %c0_24 = arith.constant 0 : index
    %50 = vector.load %arg10[%49, %c0_23, %c0_24] : memref<8x8x384xf32, #tpu.memory_space<vmem>>, vector<1x8x384xf32>
    %51 = vector.shape_cast %50 : vector<1x8x384xf32> to vector<8x384xf32>
    %52 = arith.truncf %48 : vector<8x128xf32> to vector<8x128xbf16>
    %cst_25 = arith.constant dense<0.000000e+00> : vector<8x384xf32>
    %53 = tpu.matmul %52, %12, %cst_25 {dimension_numbers = #tpu.dot_dimension_numbers<[1], [0], [0], [1], [0, 0, 1, 1], [], []>} : vector<8x128xbf16>, vector<128x384xbf16>, vector<8x384xf32> -> vector<8x384xf32>
    %54 = vector.extract_strided_slice %51 {offsets = [0, 0], sizes = [8, 128], strides = [1, 1]} : vector<8x384xf32> to vector<8x128xf32>
    %55 = vector.extract_strided_slice %53 {offsets = [0, 0], sizes = [8, 128], strides = [1, 1]} : vector<8x384xf32> to vector<8x128xf32>
    %56 = arith.addf %54, %55 : vector<8x128xf32>
    %57 = arith.negf %56 : vector<8x128xf32>
    %58 = math.exp %57 : vector<8x128xf32>
    %cst_26 = arith.constant 1.000000e+00 : f32
    %59 = vector.broadcast %cst_26 : f32 to vector<8x128xf32>
    %60 = arith.addf %59, %58 : vector<8x128xf32>
    %61 = arith.divf %59, %60 : vector<8x128xf32>
    %62 = vector.extract_strided_slice %51 {offsets = [0, 128], sizes = [8, 128], strides = [1, 1]} : vector<8x384xf32> to vector<8x128xf32>
    %63 = vector.extract_strided_slice %53 {offsets = [0, 128], sizes = [8, 128], strides = [1, 1]} : vector<8x384xf32> to vector<8x128xf32>
    %64 = arith.addf %62, %63 : vector<8x128xf32>
    %65 = arith.negf %64 : vector<8x128xf32>
    %66 = math.exp %65 : vector<8x128xf32>
    %cst_27 = arith.constant 1.000000e+00 : f32
    %67 = vector.broadcast %cst_27 : f32 to vector<8x128xf32>
    %68 = arith.addf %67, %66 : vector<8x128xf32>
    %69 = arith.divf %67, %68 : vector<8x128xf32>
    %70 = vector.extract_strided_slice %51 {offsets = [0, 256], sizes = [8, 128], strides = [1, 1]} : vector<8x384xf32> to vector<8x128xf32>
    %71 = vector.extract_strided_slice %53 {offsets = [0, 256], sizes = [8, 128], strides = [1, 1]} : vector<8x384xf32> to vector<8x128xf32>
    %72 = arith.addf %71, %15 : vector<8x128xf32>
    %73 = arith.mulf %61, %72 : vector<8x128xf32>
    %74 = arith.addf %70, %73 : vector<8x128xf32>
    %75 = math.tanh %74 : vector<8x128xf32>
    %cst_28 = arith.constant 1.000000e+00 : f32
    %76 = vector.broadcast %cst_28 : f32 to vector<8x128xf32>
    %77 = arith.subf %76, %69 : vector<8x128xf32>
    %78 = arith.mulf %77, %75 : vector<8x128xf32>
    %79 = arith.mulf %69, %48 : vector<8x128xf32>
    %80 = arith.addf %78, %79 : vector<8x128xf32>
    %c2_i32 = arith.constant 2 : i32
    %81 = arith.index_cast %c2_i32 : i32 to index
    %c0_29 = arith.constant 0 : index
    %c0_30 = arith.constant 0 : index
    %82 = vector.load %arg10[%81, %c0_29, %c0_30] : memref<8x8x384xf32, #tpu.memory_space<vmem>>, vector<1x8x384xf32>
    %83 = vector.shape_cast %82 : vector<1x8x384xf32> to vector<8x384xf32>
    %84 = arith.truncf %80 : vector<8x128xf32> to vector<8x128xbf16>
    %cst_31 = arith.constant dense<0.000000e+00> : vector<8x384xf32>
    %85 = tpu.matmul %84, %12, %cst_31 {dimension_numbers = #tpu.dot_dimension_numbers<[1], [0], [0], [1], [0, 0, 1, 1], [], []>} : vector<8x128xbf16>, vector<128x384xbf16>, vector<8x384xf32> -> vector<8x384xf32>
    %86 = vector.extract_strided_slice %83 {offsets = [0, 0], sizes = [8, 128], strides = [1, 1]} : vector<8x384xf32> to vector<8x128xf32>
    %87 = vector.extract_strided_slice %85 {offsets = [0, 0], sizes = [8, 128], strides = [1, 1]} : vector<8x384xf32> to vector<8x128xf32>
    %88 = arith.addf %86, %87 : vector<8x128xf32>
    %89 = arith.negf %88 : vector<8x128xf32>
    %90 = math.exp %89 : vector<8x128xf32>
    %cst_32 = arith.constant 1.000000e+00 : f32
    %91 = vector.broadcast %cst_32 : f32 to vector<8x128xf32>
    %92 = arith.addf %91, %90 : vector<8x128xf32>
    %93 = arith.divf %91, %92 : vector<8x128xf32>
    %94 = vector.extract_strided_slice %83 {offsets = [0, 128], sizes = [8, 128], strides = [1, 1]} : vector<8x384xf32> to vector<8x128xf32>
    %95 = vector.extract_strided_slice %85 {offsets = [0, 128], sizes = [8, 128], strides = [1, 1]} : vector<8x384xf32> to vector<8x128xf32>
    %96 = arith.addf %94, %95 : vector<8x128xf32>
    %97 = arith.negf %96 : vector<8x128xf32>
    %98 = math.exp %97 : vector<8x128xf32>
    %cst_33 = arith.constant 1.000000e+00 : f32
    %99 = vector.broadcast %cst_33 : f32 to vector<8x128xf32>
    %100 = arith.addf %99, %98 : vector<8x128xf32>
    %101 = arith.divf %99, %100 : vector<8x128xf32>
    %102 = vector.extract_strided_slice %83 {offsets = [0, 256], sizes = [8, 128], strides = [1, 1]} : vector<8x384xf32> to vector<8x128xf32>
    %103 = vector.extract_strided_slice %85 {offsets = [0, 256], sizes = [8, 128], strides = [1, 1]} : vector<8x384xf32> to vector<8x128xf32>
    %104 = arith.addf %103, %15 : vector<8x128xf32>
    %105 = arith.mulf %93, %104 : vector<8x128xf32>
    %106 = arith.addf %102, %105 : vector<8x128xf32>
    %107 = math.tanh %106 : vector<8x128xf32>
    %cst_34 = arith.constant 1.000000e+00 : f32
    %108 = vector.broadcast %cst_34 : f32 to vector<8x128xf32>
    %109 = arith.subf %108, %101 : vector<8x128xf32>
    %110 = arith.mulf %109, %107 : vector<8x128xf32>
    %111 = arith.mulf %101, %80 : vector<8x128xf32>
    %112 = arith.addf %110, %111 : vector<8x128xf32>
    %c3_i32 = arith.constant 3 : i32
    %113 = arith.index_cast %c3_i32 : i32 to index
    %c0_35 = arith.constant 0 : index
    %c0_36 = arith.constant 0 : index
    %114 = vector.load %arg10[%113, %c0_35, %c0_36] : memref<8x8x384xf32, #tpu.memory_space<vmem>>, vector<1x8x384xf32>
    %115 = vector.shape_cast %114 : vector<1x8x384xf32> to vector<8x384xf32>
    %116 = arith.truncf %112 : vector<8x128xf32> to vector<8x128xbf16>
    %cst_37 = arith.constant dense<0.000000e+00> : vector<8x384xf32>
    %117 = tpu.matmul %116, %12, %cst_37 {dimension_numbers = #tpu.dot_dimension_numbers<[1], [0], [0], [1], [0, 0, 1, 1], [], []>} : vector<8x128xbf16>, vector<128x384xbf16>, vector<8x384xf32> -> vector<8x384xf32>
    %118 = vector.extract_strided_slice %115 {offsets = [0, 0], sizes = [8, 128], strides = [1, 1]} : vector<8x384xf32> to vector<8x128xf32>
    %119 = vector.extract_strided_slice %117 {offsets = [0, 0], sizes = [8, 128], strides = [1, 1]} : vector<8x384xf32> to vector<8x128xf32>
    %120 = arith.addf %118, %119 : vector<8x128xf32>
    %121 = arith.negf %120 : vector<8x128xf32>
    %122 = math.exp %121 : vector<8x128xf32>
    %cst_38 = arith.constant 1.000000e+00 : f32
    %123 = vector.broadcast %cst_38 : f32 to vector<8x128xf32>
    %124 = arith.addf %123, %122 : vector<8x128xf32>
    %125 = arith.divf %123, %124 : vector<8x128xf32>
    %126 = vector.extract_strided_slice %115 {offsets = [0, 128], sizes = [8, 128], strides = [1, 1]} : vector<8x384xf32> to vector<8x128xf32>
    %127 = vector.extract_strided_slice %117 {offsets = [0, 128], sizes = [8, 128], strides = [1, 1]} : vector<8x384xf32> to vector<8x128xf32>
    %128 = arith.addf %126, %127 : vector<8x128xf32>
    %129 = arith.negf %128 : vector<8x128xf32>
    %130 = math.exp %129 : vector<8x128xf32>
    %cst_39 = arith.constant 1.000000e+00 : f32
    %131 = vector.broadcast %cst_39 : f32 to vector<8x128xf32>
    %132 = arith.addf %131, %130 : vector<8x128xf32>
    %133 = arith.divf %131, %132 : vector<8x128xf32>
    %134 = vector.extract_strided_slice %115 {offsets = [0, 256], sizes = [8, 128], strides = [1, 1]} : vector<8x384xf32> to vector<8x128xf32>
    %135 = vector.extract_strided_slice %117 {offsets = [0, 256], sizes = [8, 128], strides = [1, 1]} : vector<8x384xf32> to vector<8x128xf32>
    %136 = arith.addf %135, %15 : vector<8x128xf32>
    %137 = arith.mulf %125, %136 : vector<8x128xf32>
    %138 = arith.addf %134, %137 : vector<8x128xf32>
    %139 = math.tanh %138 : vector<8x128xf32>
    %cst_40 = arith.constant 1.000000e+00 : f32
    %140 = vector.broadcast %cst_40 : f32 to vector<8x128xf32>
    %141 = arith.subf %140, %133 : vector<8x128xf32>
    %142 = arith.mulf %141, %139 : vector<8x128xf32>
    %143 = arith.mulf %133, %112 : vector<8x128xf32>
    %144 = arith.addf %142, %143 : vector<8x128xf32>
    %c4_i32 = arith.constant 4 : i32
    %145 = arith.index_cast %c4_i32 : i32 to index
    %c0_41 = arith.constant 0 : index
    %c0_42 = arith.constant 0 : index
    %146 = vector.load %arg10[%145, %c0_41, %c0_42] : memref<8x8x384xf32, #tpu.memory_space<vmem>>, vector<1x8x384xf32>
    %147 = vector.shape_cast %146 : vector<1x8x384xf32> to vector<8x384xf32>
    %148 = arith.truncf %144 : vector<8x128xf32> to vector<8x128xbf16>
    %cst_43 = arith.constant dense<0.000000e+00> : vector<8x384xf32>
    %149 = tpu.matmul %148, %12, %cst_43 {dimension_numbers = #tpu.dot_dimension_numbers<[1], [0], [0], [1], [0, 0, 1, 1], [], []>} : vector<8x128xbf16>, vector<128x384xbf16>, vector<8x384xf32> -> vector<8x384xf32>
    %150 = vector.extract_strided_slice %147 {offsets = [0, 0], sizes = [8, 128], strides = [1, 1]} : vector<8x384xf32> to vector<8x128xf32>
    %151 = vector.extract_strided_slice %149 {offsets = [0, 0], sizes = [8, 128], strides = [1, 1]} : vector<8x384xf32> to vector<8x128xf32>
    %152 = arith.addf %150, %151 : vector<8x128xf32>
    %153 = arith.negf %152 : vector<8x128xf32>
    %154 = math.exp %153 : vector<8x128xf32>
    %cst_44 = arith.constant 1.000000e+00 : f32
    %155 = vector.broadcast %cst_44 : f32 to vector<8x128xf32>
    %156 = arith.addf %155, %154 : vector<8x128xf32>
    %157 = arith.divf %155, %156 : vector<8x128xf32>
    %158 = vector.extract_strided_slice %147 {offsets = [0, 128], sizes = [8, 128], strides = [1, 1]} : vector<8x384xf32> to vector<8x128xf32>
    %159 = vector.extract_strided_slice %149 {offsets = [0, 128], sizes = [8, 128], strides = [1, 1]} : vector<8x384xf32> to vector<8x128xf32>
    %160 = arith.addf %158, %159 : vector<8x128xf32>
    %161 = arith.negf %160 : vector<8x128xf32>
    %162 = math.exp %161 : vector<8x128xf32>
    %cst_45 = arith.constant 1.000000e+00 : f32
    %163 = vector.broadcast %cst_45 : f32 to vector<8x128xf32>
    %164 = arith.addf %163, %162 : vector<8x128xf32>
    %165 = arith.divf %163, %164 : vector<8x128xf32>
    %166 = vector.extract_strided_slice %147 {offsets = [0, 256], sizes = [8, 128], strides = [1, 1]} : vector<8x384xf32> to vector<8x128xf32>
    %167 = vector.extract_strided_slice %149 {offsets = [0, 256], sizes = [8, 128], strides = [1, 1]} : vector<8x384xf32> to vector<8x128xf32>
    %168 = arith.addf %167, %15 : vector<8x128xf32>
    %169 = arith.mulf %157, %168 : vector<8x128xf32>
    %170 = arith.addf %166, %169 : vector<8x128xf32>
    %171 = math.tanh %170 : vector<8x128xf32>
    %cst_46 = arith.constant 1.000000e+00 : f32
    %172 = vector.broadcast %cst_46 : f32 to vector<8x128xf32>
    %173 = arith.subf %172, %165 : vector<8x128xf32>
    %174 = arith.mulf %173, %171 : vector<8x128xf32>
    %175 = arith.mulf %165, %144 : vector<8x128xf32>
    %176 = arith.addf %174, %175 : vector<8x128xf32>
    %c5_i32 = arith.constant 5 : i32
    %177 = arith.index_cast %c5_i32 : i32 to index
    %c0_47 = arith.constant 0 : index
    %c0_48 = arith.constant 0 : index
    %178 = vector.load %arg10[%177, %c0_47, %c0_48] : memref<8x8x384xf32, #tpu.memory_space<vmem>>, vector<1x8x384xf32>
    %179 = vector.shape_cast %178 : vector<1x8x384xf32> to vector<8x384xf32>
    %180 = arith.truncf %176 : vector<8x128xf32> to vector<8x128xbf16>
    %cst_49 = arith.constant dense<0.000000e+00> : vector<8x384xf32>
    %181 = tpu.matmul %180, %12, %cst_49 {dimension_numbers = #tpu.dot_dimension_numbers<[1], [0], [0], [1], [0, 0, 1, 1], [], []>} : vector<8x128xbf16>, vector<128x384xbf16>, vector<8x384xf32> -> vector<8x384xf32>
    %182 = vector.extract_strided_slice %179 {offsets = [0, 0], sizes = [8, 128], strides = [1, 1]} : vector<8x384xf32> to vector<8x128xf32>
    %183 = vector.extract_strided_slice %181 {offsets = [0, 0], sizes = [8, 128], strides = [1, 1]} : vector<8x384xf32> to vector<8x128xf32>
    %184 = arith.addf %182, %183 : vector<8x128xf32>
    %185 = arith.negf %184 : vector<8x128xf32>
    %186 = math.exp %185 : vector<8x128xf32>
    %cst_50 = arith.constant 1.000000e+00 : f32
    %187 = vector.broadcast %cst_50 : f32 to vector<8x128xf32>
    %188 = arith.addf %187, %186 : vector<8x128xf32>
    %189 = arith.divf %187, %188 : vector<8x128xf32>
    %190 = vector.extract_strided_slice %179 {offsets = [0, 128], sizes = [8, 128], strides = [1, 1]} : vector<8x384xf32> to vector<8x128xf32>
    %191 = vector.extract_strided_slice %181 {offsets = [0, 128], sizes = [8, 128], strides = [1, 1]} : vector<8x384xf32> to vector<8x128xf32>
    %192 = arith.addf %190, %191 : vector<8x128xf32>
    %193 = arith.negf %192 : vector<8x128xf32>
    %194 = math.exp %193 : vector<8x128xf32>
    %cst_51 = arith.constant 1.000000e+00 : f32
    %195 = vector.broadcast %cst_51 : f32 to vector<8x128xf32>
    %196 = arith.addf %195, %194 : vector<8x128xf32>
    %197 = arith.divf %195, %196 : vector<8x128xf32>
    %198 = vector.extract_strided_slice %179 {offsets = [0, 256], sizes = [8, 128], strides = [1, 1]} : vector<8x384xf32> to vector<8x128xf32>
    %199 = vector.extract_strided_slice %181 {offsets = [0, 256], sizes = [8, 128], strides = [1, 1]} : vector<8x384xf32> to vector<8x128xf32>
    %200 = arith.addf %199, %15 : vector<8x128xf32>
    %201 = arith.mulf %189, %200 : vector<8x128xf32>
    %202 = arith.addf %198, %201 : vector<8x128xf32>
    %203 = math.tanh %202 : vector<8x128xf32>
    %cst_52 = arith.constant 1.000000e+00 : f32
    %204 = vector.broadcast %cst_52 : f32 to vector<8x128xf32>
    %205 = arith.subf %204, %197 : vector<8x128xf32>
    %206 = arith.mulf %205, %203 : vector<8x128xf32>
    %207 = arith.mulf %197, %176 : vector<8x128xf32>
    %208 = arith.addf %206, %207 : vector<8x128xf32>
    %c6_i32 = arith.constant 6 : i32
    %209 = arith.index_cast %c6_i32 : i32 to index
    %c0_53 = arith.constant 0 : index
    %c0_54 = arith.constant 0 : index
    %210 = vector.load %arg10[%209, %c0_53, %c0_54] : memref<8x8x384xf32, #tpu.memory_space<vmem>>, vector<1x8x384xf32>
    %211 = vector.shape_cast %210 : vector<1x8x384xf32> to vector<8x384xf32>
    %212 = arith.truncf %208 : vector<8x128xf32> to vector<8x128xbf16>
    %cst_55 = arith.constant dense<0.000000e+00> : vector<8x384xf32>
    %213 = tpu.matmul %212, %12, %cst_55 {dimension_numbers = #tpu.dot_dimension_numbers<[1], [0], [0], [1], [0, 0, 1, 1], [], []>} : vector<8x128xbf16>, vector<128x384xbf16>, vector<8x384xf32> -> vector<8x384xf32>
    %214 = vector.extract_strided_slice %211 {offsets = [0, 0], sizes = [8, 128], strides = [1, 1]} : vector<8x384xf32> to vector<8x128xf32>
    %215 = vector.extract_strided_slice %213 {offsets = [0, 0], sizes = [8, 128], strides = [1, 1]} : vector<8x384xf32> to vector<8x128xf32>
    %216 = arith.addf %214, %215 : vector<8x128xf32>
    %217 = arith.negf %216 : vector<8x128xf32>
    %218 = math.exp %217 : vector<8x128xf32>
    %cst_56 = arith.constant 1.000000e+00 : f32
    %219 = vector.broadcast %cst_56 : f32 to vector<8x128xf32>
    %220 = arith.addf %219, %218 : vector<8x128xf32>
    %221 = arith.divf %219, %220 : vector<8x128xf32>
    %222 = vector.extract_strided_slice %211 {offsets = [0, 128], sizes = [8, 128], strides = [1, 1]} : vector<8x384xf32> to vector<8x128xf32>
    %223 = vector.extract_strided_slice %213 {offsets = [0, 128], sizes = [8, 128], strides = [1, 1]} : vector<8x384xf32> to vector<8x128xf32>
    %224 = arith.addf %222, %223 : vector<8x128xf32>
    %225 = arith.negf %224 : vector<8x128xf32>
    %226 = math.exp %225 : vector<8x128xf32>
    %cst_57 = arith.constant 1.000000e+00 : f32
    %227 = vector.broadcast %cst_57 : f32 to vector<8x128xf32>
    %228 = arith.addf %227, %226 : vector<8x128xf32>
    %229 = arith.divf %227, %228 : vector<8x128xf32>
    %230 = vector.extract_strided_slice %211 {offsets = [0, 256], sizes = [8, 128], strides = [1, 1]} : vector<8x384xf32> to vector<8x128xf32>
    %231 = vector.extract_strided_slice %213 {offsets = [0, 256], sizes = [8, 128], strides = [1, 1]} : vector<8x384xf32> to vector<8x128xf32>
    %232 = arith.addf %231, %15 : vector<8x128xf32>
    %233 = arith.mulf %221, %232 : vector<8x128xf32>
    %234 = arith.addf %230, %233 : vector<8x128xf32>
    %235 = math.tanh %234 : vector<8x128xf32>
    %cst_58 = arith.constant 1.000000e+00 : f32
    %236 = vector.broadcast %cst_58 : f32 to vector<8x128xf32>
    %237 = arith.subf %236, %229 : vector<8x128xf32>
    %238 = arith.mulf %237, %235 : vector<8x128xf32>
    %239 = arith.mulf %229, %208 : vector<8x128xf32>
    %240 = arith.addf %238, %239 : vector<8x128xf32>
    %c7_i32 = arith.constant 7 : i32
    %241 = arith.index_cast %c7_i32 : i32 to index
    %c0_59 = arith.constant 0 : index
    %c0_60 = arith.constant 0 : index
    %242 = vector.load %arg10[%241, %c0_59, %c0_60] : memref<8x8x384xf32, #tpu.memory_space<vmem>>, vector<1x8x384xf32>
    %243 = vector.shape_cast %242 : vector<1x8x384xf32> to vector<8x384xf32>
    %244 = arith.truncf %240 : vector<8x128xf32> to vector<8x128xbf16>
    %cst_61 = arith.constant dense<0.000000e+00> : vector<8x384xf32>
    %245 = tpu.matmul %244, %12, %cst_61 {dimension_numbers = #tpu.dot_dimension_numbers<[1], [0], [0], [1], [0, 0, 1, 1], [], []>} : vector<8x128xbf16>, vector<128x384xbf16>, vector<8x384xf32> -> vector<8x384xf32>
    %246 = vector.extract_strided_slice %243 {offsets = [0, 0], sizes = [8, 128], strides = [1, 1]} : vector<8x384xf32> to vector<8x128xf32>
    %247 = vector.extract_strided_slice %245 {offsets = [0, 0], sizes = [8, 128], strides = [1, 1]} : vector<8x384xf32> to vector<8x128xf32>
    %248 = arith.addf %246, %247 : vector<8x128xf32>
    %249 = arith.negf %248 : vector<8x128xf32>
    %250 = math.exp %249 : vector<8x128xf32>
    %cst_62 = arith.constant 1.000000e+00 : f32
    %251 = vector.broadcast %cst_62 : f32 to vector<8x128xf32>
    %252 = arith.addf %251, %250 : vector<8x128xf32>
    %253 = arith.divf %251, %252 : vector<8x128xf32>
    %254 = vector.extract_strided_slice %243 {offsets = [0, 128], sizes = [8, 128], strides = [1, 1]} : vector<8x384xf32> to vector<8x128xf32>
    %255 = vector.extract_strided_slice %245 {offsets = [0, 128], sizes = [8, 128], strides = [1, 1]} : vector<8x384xf32> to vector<8x128xf32>
    %256 = arith.addf %254, %255 : vector<8x128xf32>
    %257 = arith.negf %256 : vector<8x128xf32>
    %258 = math.exp %257 : vector<8x128xf32>
    %cst_63 = arith.constant 1.000000e+00 : f32
    %259 = vector.broadcast %cst_63 : f32 to vector<8x128xf32>
    %260 = arith.addf %259, %258 : vector<8x128xf32>
    %261 = arith.divf %259, %260 : vector<8x128xf32>
    %262 = vector.extract_strided_slice %243 {offsets = [0, 256], sizes = [8, 128], strides = [1, 1]} : vector<8x384xf32> to vector<8x128xf32>
    %263 = vector.extract_strided_slice %245 {offsets = [0, 256], sizes = [8, 128], strides = [1, 1]} : vector<8x384xf32> to vector<8x128xf32>
    %264 = arith.addf %263, %15 : vector<8x128xf32>
    %265 = arith.mulf %253, %264 : vector<8x128xf32>
    %266 = arith.addf %262, %265 : vector<8x128xf32>
    %267 = math.tanh %266 : vector<8x128xf32>
    %cst_64 = arith.constant 1.000000e+00 : f32
    %268 = vector.broadcast %cst_64 : f32 to vector<8x128xf32>
    %269 = arith.subf %268, %261 : vector<8x128xf32>
    %270 = arith.mulf %269, %267 : vector<8x128xf32>
    %271 = arith.mulf %261, %240 : vector<8x128xf32>
    %272 = arith.addf %270, %271 : vector<8x128xf32>
    %c8_i32 = arith.constant 8 : i32
    %c0_65 = arith.constant 0 : index
    %c0_66 = arith.constant 0 : index
    %273 = vector.load %arg11[%c0_65, %c0_66] : memref<8x128xf32, #tpu.memory_space<vmem>>, vector<8x128xf32>
    tpu.vector_store %arg11[%c0_65, %c0_66], %272 {strides = array<i32>} : memref<8x128xf32, #tpu.memory_space<vmem>>, vector<8x128xf32>,
    %c0_i32_67 = arith.constant 0 : i32
    %274 = arith.cmpi eq, %arg1, %c0_i32_67 : i32
    %275 = arith.extui %274 : i1 to i32
    %c0_i32_68 = arith.constant 0 : i32
    %276 = arith.cmpi ne, %275, %c0_i32_68 : i32
    scf.if %276 {
      %c0_69 = arith.constant 0 : index
      %c0_70 = arith.constant 0 : index
      %277 = vector.load %arg11[%c0_69, %c0_70] : memref<8x128xf32, #tpu.memory_space<vmem>>, vector<8x128xf32>
      %278 = arith.truncf %277 : vector<8x128xf32> to vector<8x128xbf16>
      %c0_71 = arith.constant 0 : index
      %c0_72 = arith.constant 0 : index
      %279 = vector.load %arg7[%c0_71, %c0_72] : memref<128x128xbf16, #tpu.memory_space<vmem>>, vector<128x128xbf16>
      %cst_73 = arith.constant dense<0.000000e+00> : vector<8x128xf32>
      %280 = tpu.matmul %278, %279, %cst_73 {dimension_numbers = #tpu.dot_dimension_numbers<[1], [0], [0], [1], [0, 0, 1, 1], [], []>} : vector<8x128xbf16>, vector<128x128xbf16>, vector<8x128xf32> -> vector<8x128xf32>
      %c0_74 = arith.constant 0 : index
      %c0_75 = arith.constant 0 : index
      %281 = vector.load %arg8[%c0_74, %c0_75] : memref<1x128xf32, #tpu.memory_space<vmem>>, vector<1x128xf32>
      %282 = vector.broadcast %281 : vector<1x128xf32> to vector<8x128xf32>
      %283 = arith.addf %280, %282 : vector<8x128xf32>
      %284 = arith.negf %283 : vector<8x128xf32>
      %285 = math.exp %284 : vector<8x128xf32>
      %cst_76 = arith.constant 1.000000e+00 : f32
      %286 = vector.broadcast %cst_76 : f32 to vector<8x128xf32>
      %287 = arith.addf %286, %285 : vector<8x128xf32>
      %288 = arith.divf %286, %287 : vector<8x128xf32>
      %289 = arith.mulf %283, %288 : vector<8x128xf32>
      %c0_77 = arith.constant 0 : index
      %c0_78 = arith.constant 0 : index
      %290 = vector.load %arg9[%c0_77, %c0_78] : memref<8x128xf32, #tpu.memory_space<vmem>>, vector<8x128xf32>
      tpu.vector_store %arg9[%c0_77, %c0_78], %289 {strides = array<i32>} : memref<8x128xf32, #tpu.memory_space<vmem>>, vector<8x128xf32>,
    } else {
    }
    return
  }
  func.func @transform_0(%arg0: i32, %arg1: i32) -> (i32, i32, i32) {
    %c0_i32 = arith.constant 0 : i32
    %c0_i32_0 = arith.constant 0 : i32
    return %arg1, %arg0, %c0_i32 : i32, i32, i32
  }
  func.func @transform_1(%arg0: i32, %arg1: i32) -> (i32, i32) {
    %c0_i32 = arith.constant 0 : i32
    %c0_i32_0 = arith.constant 0 : i32
    %c0_i32_1 = arith.constant 0 : i32
    return %c0_i32, %c0_i32_0 : i32, i32
  }
  func.func @transform_2(%arg0: i32, %arg1: i32) -> (i32, i32) {
    %c0_i32 = arith.constant 0 : i32
    %c0_i32_0 = arith.constant 0 : i32
    %c0_i32_1 = arith.constant 0 : i32
    return %c0_i32, %c0_i32_0 : i32, i32
  }
  func.func @transform_3(%arg0: i32, %arg1: i32) -> (i32, i32) {
    %c0_i32 = arith.constant 0 : i32
    %c0_i32_0 = arith.constant 0 : i32
    %c0_i32_1 = arith.constant 0 : i32
    return %c0_i32, %c0_i32_0 : i32, i32
  }
  func.func @transform_4(%arg0: i32, %arg1: i32) -> (i32, i32) {
    %c0_i32 = arith.constant 0 : i32
    %c0_i32_0 = arith.constant 0 : i32
    %c0_i32_1 = arith.constant 0 : i32
    return %c0_i32, %c0_i32_0 : i32, i32
  }
  func.func @transform_5(%arg0: i32, %arg1: i32) -> (i32, i32) {
    %c0_i32 = arith.constant 0 : i32
    %c0_i32_0 = arith.constant 0 : i32
    %c0_i32_1 = arith.constant 0 : i32
    return %c0_i32, %c0_i32_0 : i32, i32
  }
  func.func @transform_6(%arg0: i32, %arg1: i32) -> (i32, i32) {
    %c0_i32 = arith.constant 0 : i32
    %c0_i32_0 = arith.constant 0 : i32
    %c0_i32_1 = arith.constant 0 : i32
    return %c0_i32, %c0_i32_0 : i32, i32
  }
  func.func @transform_7(%arg0: i32, %arg1: i32) -> (i32, i32) {
    %c0_i32 = arith.constant 0 : i32
    %c0_i32_0 = arith.constant 0 : i32
    return %arg0, %c0_i32 : i32, i32
  }
}

</mosaic_0001>

<bundles_post_ra>
// kernel: tpu_custom_call.1
= control target key start
LH: loop header
LB: loop body
LE: loop exit
PB: predicated region body
PF: predicated region fallthrough
CT: control target
= control target key end

     0   :  { %12 = vsyncpa [#allocation5], 0  ;;  %s2833_s0 = inlined_call_operand.hbm [shape: bf16[8,8,128], index: 0, kind: input, shape index: {}]   ;;  %s2834_s1 = inlined_call_operand.hbm [shape: bf16[128,384], index: 1, kind: input, shape index: {}]   ;;  %s2835_s2 = inlined_call_operand.hbm [shape: bf16[128,384], index: 2, kind: input, shape index: {}]   ;;  %s2836_s3 = inlined_call_operand.vmem [shape: f32[1,384], index: 3, kind: input, shape index: {}]   ;;  %s2837_s4 = inlined_call_operand.vmem [shape: f32[1,128], index: 4, kind: input, shape index: {}]   ;;  %s2838_s5 = inlined_call_operand.hbm [shape: bf16[128,128], index: 5, kind: input, shape index: {}]   ;;  %s2839_s6 = inlined_call_operand.vmem [shape: f32[1,128], index: 6, kind: input, shape index: {}]   ;;  %s2840_s7 = inlined_call_operand.hbm [shape: f32[8,128], index: 7, kind: output, shape index: {}]  }
   0x1   :  { %13 = vsyncpa [#allocation8], 0 }
   0x2   :  { %14 = vsyncpa [#allocation11], 0 }
   0x3   :  { %15 = vsyncpa [#allocation6], 0  ;;  %s2309_s24 = smov [#allocation7]  }
   0x4   :  { %s33_s25 = sshll.u32 %s2309_s24, 4  ;;  %s34_s25 = int_to_ptr.vmem [resolvable:$true] %s33_s25 }
   0x5   :  { %s2209_s26 = scalar_lea.vmem %s34_s25, 3072  ;;  %p2214_p1 = scmp.lt.s32.totalorder %s34_s25, %s34_s25 }
   0x6   :  { %p2210_p0 = scmp.ne.s32.totalorder %s34_s25, %s2209_s26  ;;  %p2215_p2 = scmp.lt.s32.totalorder %s2209_s26, %s2209_s26 }
   0x8   :  { %p2216_p3 = por %p2215_p2, %p2214_p1 }
   0xa   :  { %p2217_p4 = pnand %p2216_p3, %p2210_p0 }
   0xc   :  { %2220 = shalt.err (!%p2217_p4)
}
   0xd   :  { %s2310_s27 = smov 192   ;;  %s2311_s28 = smov 12  }
   0xe   :  { %39 = dma.hbm_to_vmem [thread:$0]  %s2834_s1, 3072, %s34_s25, [#allocation8], %s2310_s27, %s2310_s27, %s2311_s28  }
   0xf   :  { %s2312_s8 = smov [#allocation4]  }
  0x10   :  { %s21_s9 = sshll.u32 %s2312_s8, 4  ;;  %s22_s9 = int_to_ptr.vmem [resolvable:$true] %s21_s9 }
  0x11   :  { %s2229_s10 = scalar_lea.vmem %s22_s9, 512  ;;  %p2234_p6 = scmp.lt.s32.totalorder %s22_s9, %s22_s9 }
  0x12   :  { %p2230_p5 = scmp.ne.s32.totalorder %s22_s9, %s2229_s10  ;;  %p2235_p7 = scmp.lt.s32.totalorder %s2229_s10, %s2229_s10 }
  0x14   :  { %p2236_p8 = por %p2235_p7, %p2234_p6 }
  0x16   :  { %p2237_p9 = pnand %p2236_p8, %p2230_p5 }
  0x18   :  { %2240 = shalt.err (!%p2237_p9)
}
  0x19   :  { %s2313_s11 = smov 64   ;;  %s2314_s12 = smov 4  }
  0x1a   :  { %27 = dma.hbm_to_vmem [thread:$0]  %s2833_s0, 512, %s22_s9, [#allocation5], %s2313_s11, %s2313_s11, %s2314_s12  }
  0x1b   :  { %s2315_s15 = smov [#allocation9]   ;;  %s2316_s17 = smov [#allocation10]  }
  0x1c   :  { %s45_s16 = sshll.u32 %s2315_s15, 4  ;;  %s61_s1 = sshll.u32 %s2316_s17, 4  ;;  %s46_s16 = int_to_ptr.vmem [resolvable:$true] %s45_s16  ;;  %s62_s1 = int_to_ptr.vmem [resolvable:$true] %s61_s1 }
  0x1d   :  { %s2249_s18 = scalar_lea.vmem %s46_s16, 3072  ;;  %p2254_p11 = scmp.lt.s32.totalorder %s46_s16, %s46_s16 }
  0x1e   :  { %p2250_p10 = scmp.ne.s32.totalorder %s46_s16, %s2249_s18  ;;  %p2255_p12 = scmp.lt.s32.totalorder %s2249_s18, %s2249_s18 }
  0x20   :  { %p2256_p13 = por %p2255_p12, %p2254_p11 }
  0x22   :  { %p2257_p0 = pnand %p2256_p13, %p2250_p10 }
  0x24   :  { %2260 = shalt.err (!%p2257_p0)
}
  0x25   :  { %51 = dma.hbm_to_vmem [thread:$0]  %s2835_s2, 3072, %s46_s16, [#allocation8], %s2310_s27, %s2310_s27, %s2311_s28  }
  0x26   :  { %s2269_s0 = scalar_lea.vmem %s62_s1, 1024  ;;  %p2274_p2 = scmp.lt.s32.totalorder %s62_s1, %s62_s1 }
  0x27   :  { %p2270_p1 = scmp.ne.s32.totalorder %s62_s1, %s2269_s0  ;;  %p2275_p3 = scmp.lt.s32.totalorder %s2269_s0, %s2269_s0 }
  0x29   :  { %p2276_p4 = por %p2275_p3, %p2274_p2 }
  0x2b   :  { %p2277_p5 = pnand %p2276_p4, %p2270_p1 }
  0x2d   :  { %2280 = shalt.err (!%p2277_p5)
}
  0x2e   :  { %67 = dma.hbm_to_vmem [thread:$0]  %s2838_s5, 1024, %s62_s1, [#allocation11], %s2313_s11, %s2313_s11, %s2314_s12  }
  0x2f   :  { %2301 = dma.done.wait [#allocation5], 512  }
  0x30   :  { %2302 = vsyncadd [#allocation5], 4294966784 }
  0x31   :  { %2303 = dma.done.wait [#allocation8], 6144  }
  0x32   :  { %2304 = vsyncadd [#allocation8], 4294961152 }
  0x33   :  { %2305 = dma.done.wait [#allocation11], 1024  }
  0x34   :  { %2306 = vsyncadd [#allocation11], 4294966272  ;;  %v2841_v0 = vmov 0   ;;  %v2021_v1 = vld [vmem:[#allocation7 + $0xac] ss:$12 sps:$4 sm:$0xff]   ;;  %v2047_v12 = vld [vmem:[#allocation4] sm:$0xff]   ;;  %v130_v55 = vlaneseq }
  0x35   :  { %329 = vmatprep.mubr.bf16.mxu0 %v2841_v0  ;;  %v2023_v2 = vld [vmem:[#allocation7 + $0xa8] ss:$12 sps:$4 sm:$0xff]   ;;  %297 = vmatprep.subr.bf16.mxu0 %v2021_v1  ;;  %v2026_v4 = vld [vmem:[#allocation7 + $0x90] ss:$12 sps:$4 sm:$0xff]   ;;  %v2029_v6 = vld [vmem:[#allocation7 + $0x78] ss:$12 sps:$4 sm:$0xff]  }
  0x36   :  { %v2024_v3 = vld [vmem:[#allocation7 + $0x94] ss:$12 sps:$4 sm:$0xff]   ;;  %298 = vmatpush1.bf16.msra.mxu0 %v2023_v2  ;;  %v2027_v5 = vld [vmem:[#allocation7 + $0x7c] ss:$12 sps:$4 sm:$0xff]   ;;  %v2030_v7 = vld [vmem:[#allocation7 + $0x64] ss:$12 sps:$4 sm:$0xff]   ;;  %1820 = vmatprep.mubr.bf16.mxu1 %v2047_v12 }
  0x37   :  { %299 = vmatprep.subr.bf16.mxu0 %v2024_v3  ;;  %v2042_v8 = vld [vmem:[#allocation7 + $0xb0] ss:$12 sps:$4 sm:$0xff]   ;;  %v2032_v9 = vld [vmem:[#allocation7 + $0x60] ss:$12 sps:$4 sm:$0xff]   ;;  %v2046_v11 = vld [vmem:[#allocation7 + $0x98] ss:$12 sps:$4 sm:$0xff]  }
  0x38   :  { %v2033_v10 = vld [vmem:[#allocation7 + $0x4c] ss:$12 sps:$4 sm:$0xff]   ;;  %1804 = vmatprep.subr.bf16.mxu1 %v2042_v8  ;;  %v2035_v13 = vld [vmem:[#allocation7 + $0x48] ss:$12 sps:$4 sm:$0xff]   ;;  %v2038_v17 = vld [vmem:[#allocation7 + $0x30] ss:$12 sps:$4 sm:$0xff]  }
  0x39   :  { %1805 = vmatpush3.bf16.msra.mxu1 %v2042_v8  ;;  %v2051_v14 = vld [vmem:[#allocation7 + $0x80] ss:$12 sps:$4 sm:$0xff]   ;;  %v2055_v16 = vld [vmem:[#allocation7 + $0x68] ss:$12 sps:$4 sm:$0xff]   ;;  %v2060_v19 = vld [vmem:[#allocation7 + $0x50] ss:$12 sps:$4 sm:$0xff]  }
  0x3a   :  { %300 = vmatpush1.bf16.msra.mxu0 %v2026_v4  ;;  %1806 = vmatprep.subr.bf16.mxu1 %v2046_v11  ;;  %v2036_v15 = vld [vmem:[#allocation7 + $0x34] ss:$12 sps:$4 sm:$0xff]   ;;  %v2039_v18 = vld [vmem:[#allocation7 + $0x1c] ss:$12 sps:$4 sm:$0xff]   ;;  %v2041_v20 = vld [vmem:[#allocation7 + $0x18] ss:$12 sps:$4 sm:$0xff]  }
  0x3b   :  { %301 = vmatprep.subr.bf16.mxu0 %v2027_v5  ;;  %v2043_v21 = vld [vmem:[#allocation7 + $0x4] ss:$12 sps:$4 sm:$0xff]   ;;  %v2045_v23 = vld [vmem:[#allocation7] ss:$12 sps:$4 sm:$0xff]   ;;  %v2383_v26 = vld [vmem:[#allocation9 + $0xa8] ss:$12 sps:$4 sm:$0xff]  }
  0x3c   :  { %v2064_v22 = vld [vmem:[#allocation7 + $0x38] ss:$12 sps:$4 sm:$0xff]   ;;  %v2069_v25 = vld [vmem:[#allocation7 + $0x20] ss:$12 sps:$4 sm:$0xff]   ;;  %v2073_v28 = vld [vmem:[#allocation7 + $0x8] ss:$12 sps:$4 sm:$0xff]  }
  0x3d   :  { %1807 = vmatpush3.bf16.msra.mxu1 %v2046_v11  ;;  %v2381_v24 = vld [vmem:[#allocation9 + $0xac] ss:$12 sps:$4 sm:$0xff]   ;;  %v2386_v27 = vld [vmem:[#allocation9 + $0x94] ss:$12 sps:$4 sm:$0xff]   ;;  %v2389_v29 = vld [vmem:[#allocation9 + $0x90] ss:$12 sps:$4 sm:$0xff]  }
  0x3e   :  { %302 = vmatpush1.bf16.msra.mxu0 %v2029_v6  ;;  %1808 = vmatprep.subr.bf16.mxu1 %v2051_v14  ;;  %v2393_v30 = vld [vmem:[#allocation9 + $0x7c] ss:$12 sps:$4 sm:$0xff]   ;;  %v2396_v32 = vld [vmem:[#allocation9 + $0x78] ss:$12 sps:$4 sm:$0xff]   ;;  %v2401_v34 = vld [vmem:[#allocation9 + $0x60] ss:$12 sps:$4 sm:$0xff]  }
  0x3f   :  { %303 = vmatprep.subr.bf16.mxu0 %v2030_v7  ;;  %v2056_v31 = vld [vmem:[#allocation4 + $0x8] sm:$0xff]   ;;  %v2399_v33 = vld [vmem:[#allocation9 + $0x64] ss:$12 sps:$4 sm:$0xff]   ;;  %v2843_v38 = vmov 0.0   ;;  %v2419_v41 = vld [vmem:[#allocation9 + $0x34] ss:$12 sps:$4 sm:$0xff]  }
  0x40   :  { %v2065_v35 = vld [vmem:[#allocation4 + $0x10] sm:$0xff]   ;;  %v2405_v37 = vld [vmem:[#allocation9 + $0x4c] ss:$12 sps:$4 sm:$0xff]   ;;  %v2430_v45 = vld [vmem:[#allocation9 + $0x1c] ss:$12 sps:$4 sm:$0xff]   ;;  %vm2319_vm0 = vmmov 0  }
  0x41   :  { %1809 = vmatpush3.bf16.msra.mxu1 %v2051_v14  ;;  %v2403_v36 = vld [vmem:[#allocation9 + $0xb0] ss:$12 sps:$4 sm:$0xff]   ;;  %v2410_v39 = vld [vmem:[#allocation9 + $0x98] ss:$12 sps:$4 sm:$0xff]   ;;  %v2416_v40 = vld [vmem:[#allocation9 + $0x48] ss:$12 sps:$4 sm:$0xff]  }
  0x42   :  { %304 = vmatpush1.bf16.msra.mxu0 %v2032_v9  ;;  %1810 = vmatprep.subr.bf16.mxu1 %v2055_v16  ;;  %v2422_v42 = vld [vmem:[#allocation9 + $0x80] ss:$12 sps:$4 sm:$0xff]   ;;  %v2074_v43 = vld [vmem:[#allocation4 + $0x18] sm:$0xff]   ;;  %v2433_v46 = vld [vmem:[#allocation9 + $0x68] ss:$12 sps:$4 sm:$0xff]   ;;  %v2320_v53 = vmov 0.0|0.0  }
  0x43   :  { %305 = vmatprep.subr.bf16.mxu0 %v2033_v10  ;;  %v2426_v44 = vld [vmem:[#allocation9 + $0x30] ss:$12 sps:$4 sm:$0xff]   ;;  %v2439_v47 = vld [vmem:[#allocation9 + $0x18] ss:$12 sps:$4 sm:$0xff]   ;;  %v2449_v50 = vld [vmem:[#allocation9] ss:$12 sps:$4 sm:$0xff]  }
  0x44   :  { %v2442_v48 = vld [vmem:[#allocation9 + $0x4] ss:$12 sps:$4 sm:$0xff]   ;;  %v2460_v52 = vld [vmem:[#allocation9 + $0x20] ss:$12 sps:$4 sm:$0xff]   ;;  %v2467_v54 = vld [vmem:[#allocation9 + $0x8] ss:$12 sps:$4 sm:$0xff]  }
  0x45   :  { %1811 = vmatpush3.bf16.msra.mxu1 %v2055_v16  ;;  %v2445_v49 = vld [vmem:[#allocation9 + $0x50] ss:$12 sps:$4 sm:$0xff]   ;;  %v2454_v51 = vld [vmem:[#allocation9 + $0x38] ss:$12 sps:$4 sm:$0xff]   ;;  %v131_v56 = vshrl.u32 %v130_v55, 7  ;;  %s2321_s25 = smov [#allocation12]  }
  0x46   :  { %306 = vmatpush1.bf16.msra.mxu0 %v2035_v13  ;;  %1812 = vmatprep.subr.bf16.mxu1 %v2060_v19  ;;  %v128_v58 = vld [vmem:[%s2836_s3] sm:$0x7]  ;;  %s1621_s26 = sshll.u32 %s2321_s25, 4  ;;  %s1622_s26 = int_to_ptr.vmem [resolvable:$true] %s1621_s26 }
  0x47   :  { %307 = vmatprep.subr.bf16.mxu0 %v2036_v15  ;;  %v132_v57 = vsub.s32 0, %v131_v56  ;;  %v136_v60 = vsub.s32 1, %v131_v56  ;;  %v140_v63 = vsub.s32 2, %v131_v56  ;;  %s2281_s27 = scalar_lea.vmem %s1622_s26, 128  ;;  %p2286_p7 = scmp.lt.s32.totalorder %s1622_s26, %s1622_s26 }
  0x48   :  { %p2282_p6 = scmp.ne.s32.totalorder %s1622_s26, %s2281_s27  ;;  %p2287_p8 = scmp.lt.s32.totalorder %s2281_s27, %s2281_s27 }
  0x49   :  { %1813 = vmatpush3.bf16.msra.mxu1 %v2060_v19  ;;  %v133_v62 = vrot.slane %v128_v58, %v132_v57  ;;  %v137_v2 = vrot.slane %v128_v58, %v136_v60  ;;  %v2511_v6 = vrot.slane %v128_v58, %v140_v63 }
  0x4a   :  { %308 = vmatpush1.bf16.msra.mxu0 %v2038_v17  ;;  %1814 = vmatprep.subr.bf16.mxu1 %v2064_v22  ;;  %p2288_p9 = por %p2287_p8, %p2286_p7 }
  0x4b   :  { %309 = vmatprep.subr.bf16.mxu0 %v2039_v18 }
  0x4c   :  { %p2289_p10 = pnand %p2288_p9, %p2282_p6 }
  0x4d   :  { %1815 = vmatpush3.bf16.msra.mxu1 %v2064_v22 }
  0x4e   :  { %310 = vmatpush1.bf16.msra.mxu0 %v2041_v20  ;;  %1816 = vmatprep.subr.bf16.mxu1 %v2069_v25 }
  0x4f   :  { %311 = vmatprep.subr.bf16.mxu0 %v2043_v21 }
  0x51   :  { %1817 = vmatpush3.bf16.msra.mxu1 %v2069_v25 }
  0x52   :  { %312 = vmatpush1.bf16.msra.mxu0 %v2045_v23  ;;  %1818 = vmatprep.subr.bf16.mxu1 %v2073_v28 }
  0x53   :  { %631 = vmatprep.subr.bf16.mxu0 %v2381_v24 }
  0x55   :  { %330 = vmatmul.mubr.bf16.vlgmr.msra.gmra.mxu0 %v2047_v12  ;;  %1819 = vmatpush3.bf16.msra.mxu1 %v2073_v28 }
  0x56   :  { %632 = vmatpush1.bf16.msra.mxu0 %v2383_v26  ;;  %339 = vmatprep.mubr.bf16.mxu0 %v2841_v0 }
  0x57   :  { %633 = vmatprep.subr.bf16.mxu0 %v2386_v27  ;;  %1828 = vmatprep.subr.bf16.mxu1 %v2843_v38 }
  0x58   :  { %1821 = vmatmul.mubr.bf16.vlgmr.msra.gmra.mxu1 %v2056_v31 }
  0x59   :  { %1829 = vmatpush3.bf16.msra.mxu1 %v2403_v36  ;;  %1824 = vmatprep.mubr.bf16.mxu1 %v2065_v35 }
  0x5a   :  { %634 = vmatpush1.bf16.msra.mxu0 %v2389_v29  ;;  %1830 = vmatprep.subr.bf16.mxu1 %v2843_v38 }
  0x5b   :  { %635 = vmatprep.subr.bf16.mxu0 %v2393_v30 }
  0x5d   :  { %340 = vmatmul.mubr.bf16.gmra.mxu0 %v2056_v31  ;;  %1831 = vmatpush3.bf16.msra.mxu1 %v2410_v39 }
  0x5e   :  { %636 = vmatpush1.bf16.msra.mxu0 %v2396_v32  ;;  %349 = vmatprep.mubr.bf16.mxu0 %v2841_v0 }
  0x5f   :  { %637 = vmatprep.subr.bf16.mxu0 %v2399_v33  ;;  %1832 = vmatprep.subr.bf16.mxu1 %v2843_v38 }
  0x60   :  { %1825 = vmatmul.mubr.bf16.gmra.mxu1 %v2074_v43 }
  0x61   :  { %1833 = vmatpush3.bf16.msra.mxu1 %v2422_v42  ;;  %1844 = vmatprep.mubr.msk.bf16.mxu1 %vm2319_vm0, %v2843_v38 }
  0x62   :  { %638 = vmatpush1.bf16.msra.mxu0 %v2401_v34  ;;  %1834 = vmatprep.subr.bf16.mxu1 %v2843_v38 }
  0x63   :  { %639 = vmatprep.subr.bf16.mxu0 %v2405_v37 }
  0x65   :  { %350 = vmatmul.mubr.bf16.gmra.mxu0 %v2065_v35  ;;  %1835 = vmatpush3.bf16.msra.mxu1 %v2433_v46 }
  0x66   :  { %640 = vmatpush1.bf16.msra.mxu0 %v2416_v40  ;;  %359 = vmatprep.mubr.bf16.mxu0 %v2841_v0 }
  0x67   :  { %641 = vmatprep.subr.bf16.mxu0 %v2419_v41  ;;  %1836 = vmatprep.subr.bf16.mxu1 %v2843_v38 }
  0x69   :  { %1837 = vmatpush3.bf16.msra.mxu1 %v2445_v49 }
  0x6a   :  { %642 = vmatpush1.bf16.msra.mxu0 %v2426_v44  ;;  %1838 = vmatprep.subr.bf16.mxu1 %v2843_v38 }
  0x6b   :  { %643 = vmatprep.subr.bf16.mxu0 %v2430_v45 }
  0x6d   :  { %360 = vmatmul.mubr.bf16.gmra.mxu0 %v2074_v43  ;;  %1839 = vmatpush3.bf16.msra.mxu1 %v2454_v51 }
  0x6e   :  { %644 = vmatpush1.bf16.msra.mxu0 %v2439_v47  ;;  %663 = vmatprep.mubr.bf16.mxu0 %v2841_v0 }
  0x6f   :  { %645 = vmatprep.subr.bf16.mxu0 %v2442_v48  ;;  %1840 = vmatprep.subr.bf16.mxu1 %v2843_v38 }
  0x71   :  { %1841 = vmatpush3.bf16.msra.mxu1 %v2460_v52 }
  0x72   :  { %646 = vmatpush1.bf16.msra.mxu0 %v2449_v50  ;;  %1842 = vmatprep.subr.bf16.mxu1 %v2843_v38 }
  0x73   :  { %739 = vmatprep.subr.bf16.mxu0 %v2381_v24 }
  0x75   :  { %664 = vmatmul.mubr.bf16.vlgmr.msra.gmra.mxu0 %v2320_v53  ;;  %1843 = vmatpush3.bf16.msra.mxu1 %v2467_v54 }
  0x76   :  { %740 = vmatpush1.bf16.msra.mxu0 %v2383_v26  ;;  %771 = vmatprep.mubr.bf16.mxu0 %v2841_v0 }
  0x77   :  { %741 = vmatprep.subr.bf16.mxu0 %v2386_v27  ;;  %1848 = vmatprep.subr.bf16.mxu1 %v2843_v38 }
  0x78   :  { %1845 = vmatmul.mubr.bf16.vlgmr.msra.gmra.mxu1 %v2320_v53 }
  0x79   :  { %1849 = vmatpush3.bf16.msra.mxu1 %v2403_v36  ;;  %1864 = vmatprep.mubr.msk.bf16.mxu1 %vm2319_vm0, %v2843_v38 }
  0x7a   :  { %742 = vmatpush1.bf16.msra.mxu0 %v2389_v29  ;;  %1850 = vmatprep.subr.bf16.mxu1 %v2843_v38 }
  0x7b   :  { %743 = vmatprep.subr.bf16.mxu0 %v2393_v30 }
  0x7d   :  { %1851 = vmatpush3.bf16.msra.mxu1 %v2410_v39 }
  0x7e   :  { %744 = vmatpush1.bf16.msra.mxu0 %v2396_v32  ;;  %1852 = vmatprep.subr.bf16.mxu1 %v2843_v38 }
  0x7f   :  { %745 = vmatprep.subr.bf16.mxu0 %v2399_v33 }
  0x81   :  { %1853 = vmatpush3.bf16.msra.mxu1 %v2422_v42 }
  0x82   :  { %746 = vmatpush1.bf16.msra.mxu0 %v2401_v34  ;;  %1854 = vmatprep.subr.bf16.mxu1 %v2843_v38 }
  0x83   :  { %747 = vmatprep.subr.bf16.mxu0 %v2405_v37 }
  0x85   :  { %1855 = vmatpush3.bf16.msra.mxu1 %v2433_v46 }
  0x86   :  { %748 = vmatpush1.bf16.msra.mxu0 %v2416_v40  ;;  %1856 = vmatprep.subr.bf16.mxu1 %v2843_v38 }
  0x87   :  { %749 = vmatprep.subr.bf16.mxu0 %v2419_v41 }
  0x89   :  { %1857 = vmatpush3.bf16.msra.mxu1 %v2445_v49 }
  0x8a   :  { %750 = vmatpush1.bf16.msra.mxu0 %v2426_v44  ;;  %1858 = vmatprep.subr.bf16.mxu1 %v2843_v38 }
  0x8b   :  { %751 = vmatprep.subr.bf16.mxu0 %v2430_v45 }
  0x8d   :  { %1859 = vmatpush3.bf16.msra.mxu1 %v2454_v51 }
  0x8e   :  { %752 = vmatpush1.bf16.msra.mxu0 %v2439_v47  ;;  %1860 = vmatprep.subr.bf16.mxu1 %v2843_v38 }
  0x8f   :  { %753 = vmatprep.subr.bf16.mxu0 %v2442_v48 }
  0x91   :  { %1861 = vmatpush3.bf16.msra.mxu1 %v2460_v52 }
  0x92   :  { %754 = vmatpush1.bf16.msra.mxu0 %v2449_v50  ;;  %1862 = vmatprep.subr.bf16.mxu1 %v2843_v38 }
  0x93   :  { %847 = vmatprep.subr.bf16.mxu0 %v2381_v24 }
  0x95   :  { %1863 = vmatpush3.bf16.msra.mxu1 %v2467_v54 }
  0x96   :  { %1868 = vmatprep.subr.bf16.mxu1 %v2843_v38 }
 0x115   :  { %v331_v59 = vpop.f32.mrf.mxu0 }
 0x117   :  { %v333_v61 = vpop.f32.mrf.mxu0 }
 0x118   :  { %v1822_v10 = vpop.f32.mrf.mxu1 }
 0x119   :  { %v335_v1 = vpop.f32.mrf.mxu0  ;;  %v2518_v12 = vadd.f32 %v1822_v10, %v2511_v6 }
 0x11a   :  { %v2507_v3 = vadd.f32 %v335_v1, %v133_v62  ;;  %v404_v14 = vpop.f32.mrf.mxu1 }
 0x11b   :  { %v337_v4 = vpop.f32.mrf.mxu0 }
 0x11c   :  { %v2509_v5 = vadd.f32 %v337_v4, %v137_v2  ;;  %v1823_v17 = vpop.f32.mrf.mxu1 }
 0x11d   :  { %v341_v7 = vpop.f32.mrf.mxu0  ;;  %v2525_v19 = vadd.f32 %v1823_v17, %v2511_v6 }
 0x11e   :  { %v2513_v8 = vadd.f32 %v341_v7, %v133_v62  ;;  %v407_v21 = vpop.f32.mrf.mxu1 }
 0x11f   :  { %v343_v9 = vpop.f32.mrf.mxu0  ;;  %v2530_v23 = vadd.f32 %v407_v21, %v2511_v6  ;;  %v332_v21 = vadd.f32 %v331_v59, %v133_v62 }
 0x120   :  { %v2515_v11 = vadd.f32 %v343_v9, %v137_v2  ;;  %v1826_v28 = vpop.f32.mrf.mxu1 }
 0x121   :  { %v345_v13 = vpop.f32.mrf.mxu0  ;;  %v2535_v35 = vadd.f32 %v1826_v28, %v2511_v6 }
 0x122   :  { %v2520_v15 = vadd.f32 %v345_v13, %v133_v62  ;;  %v420_v53 = vpop.f32.mrf.mxu1 }
 0x123   :  { %v347_v16 = vpop.f32.mrf.mxu0  ;;  %2845 = vst [vmem:[#allocation17_spill] sm:$0xff] %v2535_v35  ;;  %v2540_v56 = vadd.f32 %v420_v53, %v2511_v6 }
 0x124   :  { %v2522_v18 = vadd.f32 %v347_v16, %v137_v2  ;;  %v1827_v58 = vpop.f32.mrf.mxu1 }
 0x125   :  { %v351_v20 = vpop.f32.mrf.mxu0  ;;  %v2545_v63 = vadd.f32 %v1827_v58, %v2511_v6 }
 0x126   :  { %v2527_v22 = vadd.f32 %v351_v20, %v133_v62  ;;  %v423_v4 = vpop.f32.mrf.mxu1 }
 0x127   :  { %v353_v25 = vpop.f32.mrf.mxu0  ;;  %2846 = vst [vmem:[#allocation18_spill] sm:$0xff] %v2545_v63  ;;  %v2550_v9 = vadd.f32 %v423_v4, %v2511_v6 }
 0x128   :  { %v2532_v31 = vadd.f32 %v353_v25, %v137_v2 }
 0x129   :  { %v355_v43 = vpop.f32.mrf.mxu0 }
 0x12a   :  { %v2537_v55 = vadd.f32 %v355_v43, %v133_v62 }
 0x12b   :  { %v357_v57 = vpop.f32.mrf.mxu0 }
 0x12c   :  { %v2542_v60 = vadd.f32 %v357_v57, %v137_v2 }
 0x12d   :  { %v361_v1 = vpop.f32.mrf.mxu0 }
 0x12e   :  { %v2547_v7 = vadd.f32 %v361_v1, %v133_v62  ;;  %v334_v1 = vadd.f32 %v333_v61, %v137_v2 }
 0x12f   :  { %v363_v10 = vpop.f32.mrf.mxu0 }
 0x130   :  { %v2552_v13 = vadd.f32 %v363_v10, %v137_v2 }
 0x131   :  { %v365_v16 = vpop.f32.mrf.mxu0 }
 0x132   :  { %2847 = vst [vmem:[#allocation19_spill] sm:$0xff] %v2552_v13  ;;  %v2554_v17 = vadd.f32 %v365_v16, %v133_v62  ;;  %v2561_v62 = vld [vmem:[%s2837_s4] ss:$0 sm:$0xff] }
 0x133   :  { %v367_v20 = vpop.f32.mrf.mxu0 }
 0x134   :  { %2848 = vst [vmem:[#allocation20_spill] sm:$0xff] %v2554_v17  ;;  %v2556_v25 = vadd.f32 %v367_v20, %v137_v2  ;;  %v405_v2 = vadd.f32 %v404_v14, %v2511_v6  ;;  %v2850_v6 = vmov 0  }
 0x135   :  { %v665_v28 = vpop.f32.mrf.mxu0 }
 0x136   :  { %v712_v43 = vadd.f32 %v665_v28, %v332_v21 }
 0x137   :  { %v667_v53 = vpop.f32.mrf.mxu0 }
 0x138   :  { %v1685_v57 = vmul.f32 -1.442695, %v712_v43  ;;  %v719_v4 = vadd.f32 %v667_v53, %v334_v1  ;;  %v706_v38 = vpop.f32.mrf.mxu1 }
 0x139   :  { %v669_v58 = vpop.f32.mrf.mxu0  ;;  %v726_v61 = vadd.f32 %v2561_v62, %v706_v38  ;;  %v2849_v38 = vmov 0.0  }
 0x13a   :  { %2097 = vpow2.f32 %v1685_v57  ;;  %v1686_v63 = vmul.f32 -1.442695, %v719_v4  ;;  %v1846_v10 = vpop.f32.mrf.mxu1 }
 0x13b   :  { %v670_v0 = vpop.f32.mrf.mxu0 }
 0x13c   :  { %v709_v35 = vpop.f32.mrf.mxu1  ;;  %2099 = vpow2.f32 %v1686_v63 }
 0x13e   :  { %v1847_v16 = vpop.f32.mrf.mxu1 }
 0x147   :  { %v2098_v17 = vpop.eup %2097 }
 0x148   :  { %v716_v13 = vadd.f32 1.0, %v2098_v17 }
 0x149   :  { %v2100_v59 = vpop.eup %2099 }
 0x14a   :  { %2101 = vrcp.f32 %v716_v13  ;;  %v723_v20 = vadd.f32 1.0, %v2100_v59 }
 0x14c   :  { %2103 = vrcp.f32 %v723_v20 }
 0x157   :  { %v2102_v0 = vpop.eup %2101 }
 0x158   :  { %v727_v21 = vmul.f32 %v2102_v0, %v726_v61 }
 0x159   :  { %v2104_v63 = vpop.eup %2103 }
 0x15a   :  { %v728_v35 = vadd.f32 %v727_v21, %v405_v2  ;;  %v730_v28 = vsub.f32 1.0, %v2104_v63  ;;  %v732_v43 = vmul.f32 0.0, %v2104_v63 }
 0x15c   :  { %2105 = vtanh.f32 %v728_v35 }
 0x169   :  { %v2106_v17 = vpop.eup %2105 }
 0x16a   :  { %v731_v13 = vmul.f32 %v2106_v17, %v730_v28 }
 0x16c   :  { %v2565_v53 = vadd.f32 %v732_v43, %v731_v13 }
 0x16e   :  { %v738_v57 = vpack.c.bf16 %v2565_v53, %v2565_v53 }
 0x170   :  { %772 = vmatmul.mubr.bf16.vlgmr.msra.gmra.mxu0 %v738_v57  ;;  %1865 = vmatmul.mubr.bf16.vlgmr.msra.gmra.mxu1 %v738_v57 }
 0x171   :  { %848 = vmatpush1.bf16.msra.mxu0 %v2383_v26  ;;  %1869 = vmatpush3.bf16.msra.mxu1 %v2403_v36 }
 0x172   :  { %849 = vmatprep.subr.bf16.mxu0 %v2386_v27  ;;  %1870 = vmatprep.subr.bf16.mxu1 %v2849_v38 }
 0x173   :  { %879 = vmatprep.mubr.bf16.mxu0 %v2850_v6  ;;  %1884 = vmatprep.mubr.msk.bf16.mxu1 %vm2319_vm0, %v2849_v38 }
 0x175   :  { %850 = vmatpush1.bf16.msra.mxu0 %v2389_v29  ;;  %1871 = vmatpush3.bf16.msra.mxu1 %v2410_v39 }
 0x176   :  { %851 = vmatprep.subr.bf16.mxu0 %v2393_v30  ;;  %1872 = vmatprep.subr.bf16.mxu1 %v2849_v38 }
 0x179   :  { %852 = vmatpush1.bf16.msra.mxu0 %v2396_v32  ;;  %1873 = vmatpush3.bf16.msra.mxu1 %v2422_v42 }
 0x17a   :  { %853 = vmatprep.subr.bf16.mxu0 %v2399_v33  ;;  %1874 = vmatprep.subr.bf16.mxu1 %v2849_v38 }
 0x17d   :  { %854 = vmatpush1.bf16.msra.mxu0 %v2401_v34  ;;  %1875 = vmatpush3.bf16.msra.mxu1 %v2433_v46 }
 0x17e   :  { %855 = vmatprep.subr.bf16.mxu0 %v2405_v37  ;;  %1876 = vmatprep.subr.bf16.mxu1 %v2849_v38 }
 0x181   :  { %856 = vmatpush1.bf16.msra.mxu0 %v2416_v40  ;;  %1877 = vmatpush3.bf16.msra.mxu1 %v2445_v49 }
 0x182   :  { %857 = vmatprep.subr.bf16.mxu0 %v2419_v41  ;;  %1878 = vmatprep.subr.bf16.mxu1 %v2849_v38 }
 0x185   :  { %858 = vmatpush1.bf16.msra.mxu0 %v2426_v44  ;;  %1879 = vmatpush3.bf16.msra.mxu1 %v2454_v51 }
 0x186   :  { %859 = vmatprep.subr.bf16.mxu0 %v2430_v45  ;;  %1880 = vmatprep.subr.bf16.mxu1 %v2849_v38 }
 0x189   :  { %860 = vmatpush1.bf16.msra.mxu0 %v2439_v47  ;;  %1881 = vmatpush3.bf16.msra.mxu1 %v2460_v52 }
 0x18a   :  { %861 = vmatprep.subr.bf16.mxu0 %v2442_v48  ;;  %1882 = vmatprep.subr.bf16.mxu1 %v2849_v38 }
 0x18d   :  { %862 = vmatpush1.bf16.msra.mxu0 %v2449_v50  ;;  %1883 = vmatpush3.bf16.msra.mxu1 %v2467_v54 }
 0x18e   :  { %955 = vmatprep.subr.bf16.mxu0 %v2381_v24  ;;  %1888 = vmatprep.subr.bf16.mxu1 %v2849_v38 }
 0x230   :  { %v773_v14 = vpop.f32.mrf.mxu0  ;;  %v814_v58 = vpop.f32.mrf.mxu1 }
 0x231   :  { %v820_v1 = vadd.f32 %v773_v14, %v2507_v3  ;;  %v834_v13 = vadd.f32 %v2561_v62, %v814_v58 }
 0x232   :  { %v775_v4 = vpop.f32.mrf.mxu0  ;;  %v1866_v10 = vpop.f32.mrf.mxu1 }
 0x233   :  { %v1687_v16 = vmul.f32 -1.442695, %v820_v1  ;;  %v827_v2 = vadd.f32 %v775_v4, %v2509_v5 }
 0x234   :  { %v777_v59 = vpop.f32.mrf.mxu0  ;;  %v817_v20 = vpop.f32.mrf.mxu1 }
 0x235   :  { %2107 = vpow2.f32 %v1687_v16  ;;  %v1688_v21 = vmul.f32 -1.442695, %v827_v2 }
 0x236   :  { %v778_v61 = vpop.f32.mrf.mxu0  ;;  %v1867_v0 = vpop.f32.mrf.mxu1 }
 0x237   :  { %2109 = vpow2.f32 %v1688_v21 }
 0x242   :  { %v2108_v35 = vpop.eup %2107 }
 0x243   :  { %v824_v63 = vadd.f32 1.0, %v2108_v35 }
 0x244   :  { %v2110_v28 = vpop.eup %2109 }
 0x245   :  { %2111 = vrcp.f32 %v824_v63  ;;  %v831_v17 = vadd.f32 1.0, %v2110_v28 }
 0x247   :  { %2113 = vrcp.f32 %v831_v17 }
 0x252   :  { %v2112_v3 = vpop.eup %2111 }
 0x253   :  { %v835_v43 = vmul.f32 %v2112_v3, %v834_v13 }
 0x254   :  { %v2114_v14 = vpop.eup %2113 }
 0x255   :  { %v836_v57 = vadd.f32 %v835_v43, %v2530_v23  ;;  %v838_v1 = vsub.f32 1.0, %v2114_v14  ;;  %v840_v5 = vmul.f32 %v2114_v14, %v2565_v53 }
 0x257   :  { %2115 = vtanh.f32 %v836_v57 }
 0x264   :  { %v2116_v10 = vpop.eup %2115 }
 0x265   :  { %v839_v16 = vmul.f32 %v2116_v10, %v838_v1 }
 0x267   :  { %v2609_v4 = vadd.f32 %v840_v5, %v839_v16 }
 0x269   :  { %v846_v59 = vpack.c.bf16 %v2609_v4, %v2609_v4 }
 0x26b   :  { %880 = vmatmul.mubr.bf16.vlgmr.msra.gmra.mxu0 %v846_v59  ;;  %1885 = vmatmul.mubr.bf16.vlgmr.msra.gmra.mxu1 %v846_v59 }
 0x26c   :  { %956 = vmatpush1.bf16.msra.mxu0 %v2383_v26  ;;  %1889 = vmatpush3.bf16.msra.mxu1 %v2403_v36 }
 0x26d   :  { %957 = vmatprep.subr.bf16.mxu0 %v2386_v27  ;;  %1890 = vmatprep.subr.bf16.mxu1 %v2849_v38 }
 0x26e   :  { %987 = vmatprep.mubr.bf16.mxu0 %v2850_v6  ;;  %1904 = vmatprep.mubr.msk.bf16.mxu1 %vm2319_vm0, %v2849_v38 }
 0x270   :  { %958 = vmatpush1.bf16.msra.mxu0 %v2389_v29  ;;  %1891 = vmatpush3.bf16.msra.mxu1 %v2410_v39 }
 0x271   :  { %959 = vmatprep.subr.bf16.mxu0 %v2393_v30  ;;  %1892 = vmatprep.subr.bf16.mxu1 %v2849_v38 }
 0x274   :  { %960 = vmatpush1.bf16.msra.mxu0 %v2396_v32  ;;  %1893 = vmatpush3.bf16.msra.mxu1 %v2422_v42 }
 0x275   :  { %961 = vmatprep.subr.bf16.mxu0 %v2399_v33  ;;  %1894 = vmatprep.subr.bf16.mxu1 %v2849_v38 }
 0x278   :  { %962 = vmatpush1.bf16.msra.mxu0 %v2401_v34  ;;  %1895 = vmatpush3.bf16.msra.mxu1 %v2433_v46 }
 0x279   :  { %963 = vmatprep.subr.bf16.mxu0 %v2405_v37  ;;  %1896 = vmatprep.subr.bf16.mxu1 %v2849_v38 }
 0x27c   :  { %964 = vmatpush1.bf16.msra.mxu0 %v2416_v40  ;;  %1897 = vmatpush3.bf16.msra.mxu1 %v2445_v49 }
 0x27d   :  { %965 = vmatprep.subr.bf16.mxu0 %v2419_v41  ;;  %1898 = vmatprep.subr.bf16.mxu1 %v2849_v38 }
 0x280   :  { %966 = vmatpush1.bf16.msra.mxu0 %v2426_v44  ;;  %1899 = vmatpush3.bf16.msra.mxu1 %v2454_v51 }
 0x281   :  { %967 = vmatprep.subr.bf16.mxu0 %v2430_v45  ;;  %1900 = vmatprep.subr.bf16.mxu1 %v2849_v38 }
 0x284   :  { %968 = vmatpush1.bf16.msra.mxu0 %v2439_v47  ;;  %1901 = vmatpush3.bf16.msra.mxu1 %v2460_v52 }
 0x285   :  { %969 = vmatprep.subr.bf16.mxu0 %v2442_v48  ;;  %1902 = vmatprep.subr.bf16.mxu1 %v2849_v38 }
 0x288   :  { %970 = vmatpush1.bf16.msra.mxu0 %v2449_v50  ;;  %1903 = vmatpush3.bf16.msra.mxu1 %v2467_v54 }
 0x289   :  { %1063 = vmatprep.subr.bf16.mxu0 %v2381_v24  ;;  %1908 = vmatprep.subr.bf16.mxu1 %v2849_v38 }
 0x32b   :  { %v881_v23 = vpop.f32.mrf.mxu0  ;;  %v922_v53 = vpop.f32.mrf.mxu1 }
 0x32c   :  { %v928_v58 = vadd.f32 %v881_v23, %v2513_v8  ;;  %v942_v14 = vadd.f32 %v2561_v62, %v922_v53 }
 0x32d   :  { %v883_v20 = vpop.f32.mrf.mxu0  ;;  %v1886_v61 = vpop.f32.mrf.mxu1 }
 0x32e   :  { %v1689_v0 = vmul.f32 -1.442695, %v928_v58  ;;  %v935_v28 = vadd.f32 %v883_v20, %v2515_v11 }
 0x32f   :  { %v885_v2 = vpop.f32.mrf.mxu0  ;;  %v925_v21 = vpop.f32.mrf.mxu1 }
 0x330   :  { %2117 = vpow2.f32 %v1689_v0  ;;  %v1690_v17 = vmul.f32 -1.442695, %v935_v28 }
 0x331   :  { %v886_v35 = vpop.f32.mrf.mxu0  ;;  %v1887_v63 = vpop.f32.mrf.mxu1 }
 0x332   :  { %2119 = vpow2.f32 %v1690_v17 }
 0x33d   :  { %v2118_v13 = vpop.eup %2117 }
 0x33e   :  { %v932_v3 = vadd.f32 1.0, %v2118_v13 }
 0x33f   :  { %v2120_v43 = vpop.eup %2119 }
 0x340   :  { %2121 = vrcp.f32 %v932_v3  ;;  %v939_v57 = vadd.f32 1.0, %v2120_v43 }
 0x342   :  { %2123 = vrcp.f32 %v939_v57 }
 0x34d   :  { %v2122_v8 = vpop.eup %2121 }
 0x34e   :  { %v943_v1 = vmul.f32 %v2122_v8, %v942_v14 }
 0x34f   :  { %v2124_v16 = vpop.eup %2123 }
 0x350   :  { %v944_v10 = vadd.f32 %v943_v1, %v2518_v12  ;;  %v946_v5 = vsub.f32 1.0, %v2124_v16  ;;  %v948_v11 = vmul.f32 %v2124_v16, %v2609_v4 }
 0x352   :  { %2125 = vtanh.f32 %v944_v10 }
 0x35f   :  { %v2126_v59 = vpop.eup %2125 }
 0x360   :  { %v947_v23 = vmul.f32 %v2126_v59, %v946_v5 }
 0x362   :  { %v2653_v58 = vadd.f32 %v948_v11, %v947_v23 }
 0x364   :  { %v954_v20 = vpack.c.bf16 %v2653_v58, %v2653_v58 }
 0x366   :  { %988 = vmatmul.mubr.bf16.vlgmr.msra.gmra.mxu0 %v954_v20  ;;  %1905 = vmatmul.mubr.bf16.vlgmr.msra.gmra.mxu1 %v954_v20 }
 0x367   :  { %1064 = vmatpush1.bf16.msra.mxu0 %v2383_v26  ;;  %1909 = vmatpush3.bf16.msra.mxu1 %v2403_v36 }
 0x368   :  { %1065 = vmatprep.subr.bf16.mxu0 %v2386_v27  ;;  %1910 = vmatprep.subr.bf16.mxu1 %v2849_v38 }
 0x369   :  { %1095 = vmatprep.mubr.bf16.mxu0 %v2850_v6  ;;  %1924 = vmatprep.mubr.msk.bf16.mxu1 %vm2319_vm0, %v2849_v38 }
 0x36b   :  { %1066 = vmatpush1.bf16.msra.mxu0 %v2389_v29  ;;  %1911 = vmatpush3.bf16.msra.mxu1 %v2410_v39 }
 0x36c   :  { %1067 = vmatprep.subr.bf16.mxu0 %v2393_v30  ;;  %1912 = vmatprep.subr.bf16.mxu1 %v2849_v38 }
 0x36f   :  { %1068 = vmatpush1.bf16.msra.mxu0 %v2396_v32  ;;  %1913 = vmatpush3.bf16.msra.mxu1 %v2422_v42 }
 0x370   :  { %1069 = vmatprep.subr.bf16.mxu0 %v2399_v33  ;;  %1914 = vmatprep.subr.bf16.mxu1 %v2849_v38 }
 0x373   :  { %1070 = vmatpush1.bf16.msra.mxu0 %v2401_v34  ;;  %1915 = vmatpush3.bf16.msra.mxu1 %v2433_v46 }
 0x374   :  { %1071 = vmatprep.subr.bf16.mxu0 %v2405_v37  ;;  %1916 = vmatprep.subr.bf16.mxu1 %v2849_v38 }
 0x377   :  { %1072 = vmatpush1.bf16.msra.mxu0 %v2416_v40  ;;  %1917 = vmatpush3.bf16.msra.mxu1 %v2445_v49 }
 0x378   :  { %1073 = vmatprep.subr.bf16.mxu0 %v2419_v41  ;;  %1918 = vmatprep.subr.bf16.mxu1 %v2849_v38 }
 0x37b   :  { %1074 = vmatpush1.bf16.msra.mxu0 %v2426_v44  ;;  %1919 = vmatpush3.bf16.msra.mxu1 %v2454_v51 }
 0x37c   :  { %1075 = vmatprep.subr.bf16.mxu0 %v2430_v45  ;;  %1920 = vmatprep.subr.bf16.mxu1 %v2849_v38 }
 0x37f   :  { %1076 = vmatpush1.bf16.msra.mxu0 %v2439_v47  ;;  %1921 = vmatpush3.bf16.msra.mxu1 %v2460_v52 }
 0x380   :  { %1077 = vmatprep.subr.bf16.mxu0 %v2442_v48  ;;  %1922 = vmatprep.subr.bf16.mxu1 %v2849_v38 }
 0x383   :  { %1078 = vmatpush1.bf16.msra.mxu0 %v2449_v50  ;;  %1923 = vmatpush3.bf16.msra.mxu1 %v2467_v54 }
 0x384   :  { %1171 = vmatprep.subr.bf16.mxu0 %v2381_v24  ;;  %1928 = vmatprep.subr.bf16.mxu1 %v2849_v38 }
 0x426   :  { %v989_v12 = vpop.f32.mrf.mxu0  ;;  %v1030_v4 = vpop.f32.mrf.mxu1 }
 0x427   :  { %v1036_v53 = vadd.f32 %v989_v12, %v2520_v15  ;;  %v1050_v8 = vadd.f32 %v2561_v62, %v1030_v4 }
 0x428   :  { %v991_v61 = vpop.f32.mrf.mxu0  ;;  %v1906_v0 = vpop.f32.mrf.mxu1 }
 0x429   :  { %v1691_v2 = vmul.f32 -1.442695, %v1036_v53  ;;  %v1043_v17 = vadd.f32 %v991_v61, %v2522_v18 }
 0x42a   :  { %v993_v21 = vpop.f32.mrf.mxu0  ;;  %v1033_v35 = vpop.f32.mrf.mxu1 }
 0x42b   :  { %2127 = vpow2.f32 %v1691_v2  ;;  %v1692_v13 = vmul.f32 -1.442695, %v1043_v17 }
 0x42c   :  { %v994_v63 = vpop.f32.mrf.mxu0  ;;  %v1907_v28 = vpop.f32.mrf.mxu1 }
 0x42d   :  { %2129 = vpow2.f32 %v1692_v13 }
 0x438   :  { %v2128_v3 = vpop.eup %2127 }
 0x439   :  { %v1040_v43 = vadd.f32 1.0, %v2128_v3 }
 0x43a   :  { %v2130_v57 = vpop.eup %2129 }
 0x43b   :  { %2131 = vrcp.f32 %v1040_v43  ;;  %v1047_v14 = vadd.f32 1.0, %v2130_v57 }
 0x43d   :  { %2133 = vrcp.f32 %v1047_v14 }
 0x448   :  { %v2132_v15 = vpop.eup %2131 }
 0x449   :  { %v1051_v1 = vmul.f32 %v2132_v15, %v1050_v8 }
 0x44a   :  { %v2134_v16 = vpop.eup %2133 }
 0x44b   :  { %v1052_v10 = vadd.f32 %v1051_v1, %v2525_v19  ;;  %v1054_v5 = vsub.f32 1.0, %v2134_v16  ;;  %v1056_v18 = vmul.f32 %v2134_v16, %v2653_v58  ;;  %v2745_v16 = vld [vmem:[#allocation9 + $0xa8] ss:$12 sps:$4 sm:$0xff]  }
 0x44d   :  { %2135 = vtanh.f32 %v1052_v10 }
 0x45a   :  { %v2136_v59 = vpop.eup %2135 }
 0x45b   :  { %v1055_v23 = vmul.f32 %v2136_v59, %v1054_v5 }
 0x45d   :  { %v2697_v11 = vadd.f32 %v1056_v18, %v1055_v23 }
 0x45f   :  { %v1062_v20 = vpack.c.bf16 %v2697_v11, %v2697_v11 }
 0x461   :  { %1096 = vmatmul.mubr.bf16.vlgmr.msra.gmra.mxu0 %v1062_v20  ;;  %1925 = vmatmul.mubr.bf16.vlgmr.msra.gmra.mxu1 %v1062_v20 }
 0x462   :  { %1172 = vmatpush1.bf16.msra.mxu0 %v2383_v26  ;;  %1929 = vmatpush3.bf16.msra.mxu1 %v2403_v36 }
 0x463   :  { %1173 = vmatprep.subr.bf16.mxu0 %v2386_v27  ;;  %1930 = vmatprep.subr.bf16.mxu1 %v2849_v38 }
 0x464   :  { %1203 = vmatprep.mubr.bf16.mxu0 %v2850_v6  ;;  %1944 = vmatprep.mubr.msk.bf16.mxu1 %vm2319_vm0, %v2849_v38 }
 0x466   :  { %1174 = vmatpush1.bf16.msra.mxu0 %v2389_v29  ;;  %1931 = vmatpush3.bf16.msra.mxu1 %v2410_v39 }
 0x467   :  { %1175 = vmatprep.subr.bf16.mxu0 %v2393_v30  ;;  %1932 = vmatprep.subr.bf16.mxu1 %v2849_v38 }
 0x46a   :  { %1176 = vmatpush1.bf16.msra.mxu0 %v2396_v32  ;;  %1933 = vmatpush3.bf16.msra.mxu1 %v2422_v42 }
 0x46b   :  { %1177 = vmatprep.subr.bf16.mxu0 %v2399_v33  ;;  %1934 = vmatprep.subr.bf16.mxu1 %v2849_v38 }
 0x46e   :  { %1178 = vmatpush1.bf16.msra.mxu0 %v2401_v34  ;;  %1935 = vmatpush3.bf16.msra.mxu1 %v2433_v46 }
 0x46f   :  { %1179 = vmatprep.subr.bf16.mxu0 %v2405_v37  ;;  %1936 = vmatprep.subr.bf16.mxu1 %v2849_v38 }
 0x472   :  { %1180 = vmatpush1.bf16.msra.mxu0 %v2416_v40  ;;  %1937 = vmatpush3.bf16.msra.mxu1 %v2445_v49 }
 0x473   :  { %1181 = vmatprep.subr.bf16.mxu0 %v2419_v41  ;;  %1938 = vmatprep.subr.bf16.mxu1 %v2849_v38 }
 0x476   :  { %1182 = vmatpush1.bf16.msra.mxu0 %v2426_v44  ;;  %1939 = vmatpush3.bf16.msra.mxu1 %v2454_v51 }
 0x477   :  { %1183 = vmatprep.subr.bf16.mxu0 %v2430_v45  ;;  %1940 = vmatprep.subr.bf16.mxu1 %v2849_v38 }
 0x47a   :  { %1184 = vmatpush1.bf16.msra.mxu0 %v2439_v47  ;;  %1941 = vmatpush3.bf16.msra.mxu1 %v2460_v52 }
 0x47b   :  { %1185 = vmatprep.subr.bf16.mxu0 %v2442_v48  ;;  %1942 = vmatprep.subr.bf16.mxu1 %v2849_v38 }
 0x47e   :  { %1186 = vmatpush1.bf16.msra.mxu0 %v2449_v50  ;;  %1943 = vmatpush3.bf16.msra.mxu1 %v2467_v54 }
 0x47f   :  { %1279 = vmatprep.subr.bf16.mxu0 %v2381_v24  ;;  %1948 = vmatprep.subr.bf16.mxu1 %v2849_v38 }
 0x521   :  { %v1097_v26 = vpop.f32.mrf.mxu0  ;;  %v1138_v27 = vpop.f32.mrf.mxu1 }
 0x522   :  { %v1144_v19 = vadd.f32 %v1097_v26, %v2527_v22  ;;  %v1158_v13 = vadd.f32 %v2561_v62, %v1138_v27 }
 0x523   :  { %v1099_v58 = vpop.f32.mrf.mxu0  ;;  %v1926_v12 = vpop.f32.mrf.mxu1 }
 0x524   :  { %v1693_v4 = vmul.f32 -1.442695, %v1144_v19  ;;  %v1151_v21 = vadd.f32 %v1099_v58, %v2532_v31  ;;  %v2184_v58 = vld [vmem:[#allocation9 + $0xb0] ss:$12 sps:$4 sm:$0xff]   ;;  %v2186_v12 = vld [vmem:[#allocation9 + $0x98] ss:$12 sps:$4 sm:$0xff]  }
 0x525   :  { %v1101_v53 = vpop.f32.mrf.mxu0  ;;  %v1141_v61 = vpop.f32.mrf.mxu1 }
 0x526   :  { %2137 = vpow2.f32 %v1693_v4  ;;  %v1694_v35 = vmul.f32 -1.442695, %v1151_v21  ;;  %v2187_v4 = vld [vmem:[#allocation9 + $0x7c] ss:$12 sps:$4 sm:$0xff]   ;;  %v2188_v53 = vld [vmem:[#allocation9 + $0x78] ss:$12 sps:$4 sm:$0xff]  }
 0x527   :  { %v1102_v0 = vpop.f32.mrf.mxu0  ;;  %v1927_v2 = vpop.f32.mrf.mxu1  ;;  %v2189_v61 = vld [vmem:[#allocation9 + $0x80] ss:$12 sps:$4 sm:$0xff]  }
 0x528   :  { %2139 = vpow2.f32 %v1694_v35  ;;  %v2190_v0 = vld [vmem:[#allocation9 + $0x64] ss:$12 sps:$4 sm:$0xff]   ;;  %v2192_v2 = vld [vmem:[#allocation9 + $0x68] ss:$12 sps:$4 sm:$0xff]   ;;  %v2193_v21 = vld [vmem:[#allocation9 + $0x4c] ss:$12 sps:$4 sm:$0xff]  }
 0x529   :  { %v2194_v35 = vld [vmem:[#allocation9 + $0x48] ss:$12 sps:$4 sm:$0xff]  }
 0x533   :  { %v2138_v63 = vpop.eup %2137 }
 0x534   :  { %v1148_v24 = vadd.f32 1.0, %v2138_v63  ;;  %v2195_v63 = vld [vmem:[#allocation9 + $0x34] ss:$12 sps:$4 sm:$0xff]  }
 0x535   :  { %v2140_v28 = vpop.eup %2139 }
 0x536   :  { %2141 = vrcp.f32 %v1148_v24  ;;  %v1155_v17 = vadd.f32 1.0, %v2140_v28  ;;  %v2196_v24 = vld [vmem:[#allocation9 + $0x30] ss:$12 sps:$4 sm:$0xff]  }
 0x537   :  { %v2197_v28 = vld [vmem:[#allocation9 + $0x1c] ss:$12 sps:$4 sm:$0xff]  }
 0x538   :  { %2143 = vrcp.f32 %v1155_v17  ;;  %v2198_v17 = vld [vmem:[#allocation9 + $0x18] ss:$12 sps:$4 sm:$0xff]  }
 0x543   :  { %v2142_v22 = vpop.eup %2141 }
 0x544   :  { %v1159_v3 = vmul.f32 %v2142_v22, %v1158_v13  ;;  %v2199_v13 = vld [vmem:[#allocation9 + $0x4] ss:$12 sps:$4 sm:$0xff]  }
 0x545   :  { %v2144_v57 = vpop.eup %2143 }
 0x546   :  { %v1160_v43 = vadd.f32 %v1159_v3, %v2540_v56  ;;  %v1162_v14 = vsub.f32 1.0, %v2144_v57  ;;  %v1164_v31 = vmul.f32 %v2144_v57, %v2697_v11  ;;  %v2749_v56 = vld [vmem:[#allocation9 + $0x94] ss:$12 sps:$4 sm:$0xff]  }
 0x548   :  { %2145 = vtanh.f32 %v1160_v43 }
 0x555   :  { %v2146_v8 = vpop.eup %2145 }
 0x556   :  { %v1163_v15 = vmul.f32 %v2146_v8, %v1162_v14 }
 0x558   :  { %v2741_v1 = vadd.f32 %v1164_v31, %v1163_v15 }
 0x55a   :  { %v1170_v10 = vpack.c.bf16 %v2741_v1, %v2741_v1 }
 0x55c   :  { %1204 = vmatmul.mubr.bf16.vlgmr.msra.gmra.mxu0 %v1170_v10  ;;  %1945 = vmatmul.mubr.bf16.vlgmr.msra.gmra.mxu1 %v1170_v10 }
 0x55d   :  { %1280 = vmatpush1.bf16.msra.mxu0 %v2745_v16  ;;  %1949 = vmatpush3.bf16.msra.mxu1 %v2403_v36 }
 0x55e   :  { %1281 = vmatprep.subr.bf16.mxu0 %v2749_v56  ;;  %1950 = vmatprep.subr.bf16.mxu1 %v2849_v38 }
 0x55f   :  { %1311 = vmatprep.mubr.bf16.mxu0 %v2850_v6  ;;  %1964 = vmatprep.mubr.msk.bf16.mxu1 %vm2319_vm0, %v2849_v38 }
 0x561   :  { %1282 = vmatpush1.bf16.msra.mxu0 %v2389_v29  ;;  %1951 = vmatpush3.bf16.msra.mxu1 %v2410_v39  ;;  %v2183_v29 = vld [vmem:[#allocation9 + $0xac] ss:$12 sps:$4 sm:$0xff]  }
 0x562   :  { %1283 = vmatprep.subr.bf16.mxu0 %v2393_v30  ;;  %1952 = vmatprep.subr.bf16.mxu1 %v2849_v38 }
 0x565   :  { %1284 = vmatpush1.bf16.msra.mxu0 %v2396_v32  ;;  %1953 = vmatpush3.bf16.msra.mxu1 %v2422_v42 }
 0x566   :  { %1285 = vmatprep.subr.bf16.mxu0 %v2399_v33  ;;  %1954 = vmatprep.subr.bf16.mxu1 %v2849_v38 }
 0x569   :  { %1286 = vmatpush1.bf16.msra.mxu0 %v2401_v34  ;;  %1955 = vmatpush3.bf16.msra.mxu1 %v2433_v46 }
 0x56a   :  { %1287 = vmatprep.subr.bf16.mxu0 %v2405_v37  ;;  %1956 = vmatprep.subr.bf16.mxu1 %v2849_v38 }
 0x56d   :  { %1288 = vmatpush1.bf16.msra.mxu0 %v2416_v40  ;;  %1957 = vmatpush3.bf16.msra.mxu1 %v2445_v49 }
 0x56e   :  { %1289 = vmatprep.subr.bf16.mxu0 %v2419_v41  ;;  %1958 = vmatprep.subr.bf16.mxu1 %v2849_v38 }
 0x571   :  { %1290 = vmatpush1.bf16.msra.mxu0 %v2426_v44  ;;  %1959 = vmatpush3.bf16.msra.mxu1 %v2454_v51 }
 0x572   :  { %1291 = vmatprep.subr.bf16.mxu0 %v2430_v45  ;;  %1960 = vmatprep.subr.bf16.mxu1 %v2849_v38 }
 0x575   :  { %1292 = vmatpush1.bf16.msra.mxu0 %v2439_v47  ;;  %1961 = vmatpush3.bf16.msra.mxu1 %v2460_v52 }
 0x576   :  { %1293 = vmatprep.subr.bf16.mxu0 %v2442_v48  ;;  %1962 = vmatprep.subr.bf16.mxu1 %v2849_v38 }
 0x579   :  { %1294 = vmatpush1.bf16.msra.mxu0 %v2449_v50  ;;  %1963 = vmatpush3.bf16.msra.mxu1 %v2467_v54 }
 0x57a   :  { %1387 = vmatprep.subr.bf16.mxu0 %v2183_v29  ;;  %1968 = vmatprep.subr.bf16.mxu1 %v2849_v38 }
 0x61c   :  { %v1205_v30 = vpop.f32.mrf.mxu0  ;;  %v1246_v32 = vpop.f32.mrf.mxu1 }
 0x61d   :  { %v1252_v33 = vadd.f32 %v1205_v30, %v2537_v55  ;;  %v1266_v5 = vadd.f32 %v2561_v62, %v1246_v32 }
 0x61e   :  { %v1207_v34 = vpop.f32.mrf.mxu0  ;;  %v1946_v36 = vpop.f32.mrf.mxu1 }
 0x61f   :  { %v1695_v37 = vmul.f32 -1.442695, %v1252_v33  ;;  %v1259_v44 = vadd.f32 %v1207_v34, %v2542_v60  ;;  %v2852_v34 = vld [vmem:[#allocation17_spill] sm:$0xff] }
 0x620   :  { %v1209_v39 = vpop.f32.mrf.mxu0  ;;  %v1249_v40 = vpop.f32.mrf.mxu1 }
 0x621   :  { %2147 = vpow2.f32 %v1695_v37  ;;  %v1696_v45 = vmul.f32 -1.442695, %v1259_v44 }
 0x622   :  { %v1210_v41 = vpop.f32.mrf.mxu0  ;;  %v1947_v42 = vpop.f32.mrf.mxu1 }
 0x623   :  { %2149 = vpow2.f32 %v1696_v45 }
 0x62e   :  { %v2148_v46 = vpop.eup %2147 }
 0x62f   :  { %v1256_v47 = vadd.f32 1.0, %v2148_v46  ;;  %v2089_v46 = vld [vmem:[#allocation10 + $0x38] sm:$0xff]  }
 0x630   :  { %v2150_v48 = vpop.eup %2149 }
 0x631   :  { %2151 = vrcp.f32 %v1256_v47  ;;  %v1263_v50 = vadd.f32 1.0, %v2150_v48  ;;  %v2090_v47 = vld [vmem:[#allocation10 + $0x30] sm:$0xff]   ;;  %v2091_v48 = vld [vmem:[#allocation10 + $0x28] sm:$0xff]  }
 0x633   :  { %2153 = vrcp.f32 %v1263_v50  ;;  %v2092_v50 = vld [vmem:[#allocation10 + $0x20] sm:$0xff]  }
 0x63e   :  { %v2152_v55 = vpop.eup %2151 }
 0x63f   :  { %v1267_v59 = vmul.f32 %v2152_v55, %v1266_v5  ;;  %v2093_v5 = vld [vmem:[#allocation10 + $0x18] sm:$0xff]   ;;  %v2094_v55 = vld [vmem:[#allocation10 + $0x10] sm:$0xff]  }
 0x640   :  { %v2154_v18 = vpop.eup %2153 }
 0x641   :  { %v1268_v23 = vadd.f32 %v1267_v59, %v2550_v9  ;;  %v1270_v11 = vsub.f32 1.0, %v2154_v18  ;;  %v1272_v60 = vmul.f32 %v2154_v18, %v2741_v1  ;;  %v2185_v9 = vld [vmem:[#allocation9 + $0x90] ss:$12 sps:$4 sm:$0xff]   ;;  %v2095_v59 = vld [vmem:[#allocation10 + $0x8] sm:$0xff]  }
 0x642   :  { %v2851_v1 = vld [vmem:[#allocation19_spill] sm:$0xff] }
 0x643   :  { %2155 = vtanh.f32 %v1268_v23  ;;  %v2096_v23 = vld [vmem:[#allocation10] sm:$0xff]  }
 0x650   :  { %v2156_v20 = vpop.eup %2155 }
 0x651   :  { %v1271_v26 = vmul.f32 %v2156_v20, %v1270_v11  ;;  %v2853_v20 = vld [vmem:[#allocation20_spill] sm:$0xff] }
 0x653   :  { %v2788_v27 = vadd.f32 %v1272_v60, %v1271_v26 }
 0x655   :  { %v1278_v19 = vpack.c.bf16 %v2788_v27, %v2788_v27 }
 0x657   :  { %1312 = vmatmul.mubr.bf16.vlgmr.msra.gmra.mxu0 %v1278_v19  ;;  %1965 = vmatmul.mubr.bf16.vlgmr.msra.gmra.mxu1 %v1278_v19 }
 0x658   :  { %1388 = vmatpush1.bf16.msra.mxu0 %v2745_v16  ;;  %1969 = vmatpush3.bf16.msra.mxu1 %v2184_v58 }
 0x659   :  { %1389 = vmatprep.subr.bf16.mxu0 %v2749_v56  ;;  %1970 = vmatprep.subr.bf16.mxu1 %v2849_v38 }
 0x65a   :  { %1419 = vmatprep.mubr.bf16.mxu0 %v2850_v6  ;;  %1984 = vmatprep.mubr.msk.bf16.mxu1 %vm2319_vm0, %v2849_v38  ;;  %v2191_v6 = vld [vmem:[#allocation9 + $0x60] ss:$12 sps:$4 sm:$0xff]  }
 0x65c   :  { %1390 = vmatpush1.bf16.msra.mxu0 %v2185_v9  ;;  %1971 = vmatpush3.bf16.msra.mxu1 %v2186_v12 }
 0x65d   :  { %1391 = vmatprep.subr.bf16.mxu0 %v2187_v4  ;;  %1972 = vmatprep.subr.bf16.mxu1 %v2849_v38 }
 0x660   :  { %1392 = vmatpush1.bf16.msra.mxu0 %v2188_v53  ;;  %1973 = vmatpush3.bf16.msra.mxu1 %v2189_v61 }
 0x661   :  { %1393 = vmatprep.subr.bf16.mxu0 %v2190_v0  ;;  %1974 = vmatprep.subr.bf16.mxu1 %v2849_v38 }
 0x664   :  { %1394 = vmatpush1.bf16.msra.mxu0 %v2191_v6  ;;  %1975 = vmatpush3.bf16.msra.mxu1 %v2192_v2 }
 0x665   :  { %1395 = vmatprep.subr.bf16.mxu0 %v2193_v21  ;;  %1976 = vmatprep.subr.bf16.mxu1 %v2849_v38 }
 0x668   :  { %1396 = vmatpush1.bf16.msra.mxu0 %v2194_v35  ;;  %1977 = vmatpush3.bf16.msra.mxu1 %v2445_v49  ;;  %v2200_v49 = vld [vmem:[#allocation9] ss:$12 sps:$4 sm:$0xff]  }
 0x669   :  { %1397 = vmatprep.subr.bf16.mxu0 %v2195_v63  ;;  %1978 = vmatprep.subr.bf16.mxu1 %v2849_v38 }
 0x66c   :  { %1398 = vmatpush1.bf16.msra.mxu0 %v2196_v24  ;;  %1979 = vmatpush3.bf16.msra.mxu1 %v2454_v51  ;;  %v2854_v24 = vld [vmem:[#allocation18_spill] sm:$0xff] }
 0x66d   :  { %1399 = vmatprep.subr.bf16.mxu0 %v2197_v28  ;;  %1980 = vmatprep.subr.bf16.mxu1 %v2849_v38 }
 0x670   :  { %1400 = vmatpush1.bf16.msra.mxu0 %v2198_v17  ;;  %1981 = vmatpush3.bf16.msra.mxu1 %v2460_v52 }
 0x671   :  { %1401 = vmatprep.subr.bf16.mxu0 %v2199_v13  ;;  %1982 = vmatprep.subr.bf16.mxu1 %v2849_v38 }
 0x674   :  { %1402 = vmatpush1.bf16.msra.mxu0 %v2200_v49  ;;  %1983 = vmatpush3.bf16.msra.mxu1 %v2467_v54 }
 0x675   :  { %1988 = vmatprep.subr.bf16.mxu0 %v2849_v38 }
 0x717   :  { %v1313_v22 = vpop.f32.mrf.mxu0  ;;  %v1354_v51 = vpop.f32.mrf.mxu1 }
 0x718   :  { %v1360_v3 = vadd.f32 %v1313_v22, %v2547_v7  ;;  %v1374_v32 = vadd.f32 %v2561_v62, %v1354_v51 }
 0x719   :  { %v1315_v43 = vpop.f32.mrf.mxu0  ;;  %v1966_v57 = vpop.f32.mrf.mxu1 }
 0x71a   :  { %v1697_v14 = vmul.f32 -1.442695, %v1360_v3  ;;  %v1367_v10 = vadd.f32 %v1315_v43, %v2851_v1  ;;  %v1701_v43 = vld [vmem:[%s2839_s6] ss:$0 sm:$0xff] }
 0x71b   :  { %v1317_v8 = vpop.f32.mrf.mxu0  ;;  %v1357_v15 = vpop.f32.mrf.mxu1 }
 0x71c   :  { %2157 = vpow2.f32 %v1697_v14  ;;  %v1698_v16 = vmul.f32 -1.442695, %v1367_v10 }
 0x71d   :  { %v1318_v52 = vpop.f32.mrf.mxu0  ;;  %v1967_v31 = vpop.f32.mrf.mxu1 }
 0x71e   :  { %2159 = vpow2.f32 %v1698_v16 }
 0x729   :  { %v2158_v56 = vpop.eup %2157 }
 0x72a   :  { %v1364_v54 = vadd.f32 1.0, %v2158_v56 }
 0x72b   :  { %v2160_v29 = vpop.eup %2159 }
 0x72c   :  { %2161 = vrcp.f32 %v1364_v54  ;;  %v1371_v30 = vadd.f32 1.0, %v2160_v29 }
 0x72e   :  { %2163 = vrcp.f32 %v1371_v30 }
 0x739   :  { %v2162_v7 = vpop.eup %2161 }
 0x73a   :  { %v1375_v33 = vmul.f32 %v2162_v7, %v1374_v32 }
 0x73b   :  { %v2164_v37 = vpop.eup %2163 }
 0x73c   :  { %v1376_v36 = vadd.f32 %v1375_v33, %v2852_v34  ;;  %v1378_v39 = vsub.f32 1.0, %v2164_v37  ;;  %v1380_v42 = vmul.f32 %v2164_v37, %v2788_v27 }
 0x73e   :  { %2165 = vtanh.f32 %v1376_v36 }
 0x74b   :  { %v2166_v40 = vpop.eup %2165 }
 0x74c   :  { %v1379_v41 = vmul.f32 %v2166_v40, %v1378_v39 }
 0x74e   :  { %v1381_v44 = vadd.f32 %v1380_v42, %v1379_v41 }
 0x750   :  { %v1386_v45 = vpack.c.bf16 %v1381_v44, %v1381_v44 }
 0x752   :  { %1420 = vmatmul.mubr.bf16.vlgmr.msra.gmra.mxu0 %v1386_v45  ;;  %1985 = vmatmul.mubr.bf16.vlgmr.msra.gmra.mxu1 %v1386_v45 }
 0x753   :  { %2004 = vmatprep.mubr.msk.bf16.mxu0 %vm2319_vm0, %v2849_v38  ;;  %1989 = vmatpush3.bf16.msra.mxu0 %v2089_v46 }
 0x754   :  { %1990 = vmatprep.subr.bf16.mxu0 %v2849_v38 }
 0x757   :  { %1991 = vmatpush3.bf16.msra.mxu0 %v2090_v47 }
 0x758   :  { %1992 = vmatprep.subr.bf16.mxu0 %v2849_v38 }
 0x75b   :  { %1993 = vmatpush3.bf16.msra.mxu0 %v2091_v48 }
 0x75c   :  { %1994 = vmatprep.subr.bf16.mxu0 %v2849_v38 }
 0x75f   :  { %1995 = vmatpush3.bf16.msra.mxu0 %v2092_v50 }
 0x760   :  { %1996 = vmatprep.subr.bf16.mxu0 %v2849_v38 }
 0x763   :  { %1997 = vmatpush3.bf16.msra.mxu0 %v2093_v5 }
 0x764   :  { %1998 = vmatprep.subr.bf16.mxu0 %v2849_v38 }
 0x767   :  { %1999 = vmatpush3.bf16.msra.mxu0 %v2094_v55 }
 0x768   :  { %2000 = vmatprep.subr.bf16.mxu0 %v2849_v38 }
 0x76b   :  { %2001 = vmatpush3.bf16.msra.mxu0 %v2095_v59 }
 0x76c   :  { %2002 = vmatprep.subr.bf16.mxu0 %v2849_v38 }
 0x76f   :  { %2003 = vmatpush3.bf16.msra.mxu0 %v2096_v23 }
 0x812   :  { %v1421_v18 = vpop.f32.mrf.mxu0  ;;  %v1462_v11 = vpop.f32.mrf.mxu1 }
 0x813   :  { %v1468_v26 = vadd.f32 %v1421_v18, %v2853_v20  ;;  %v1482_v21 = vadd.f32 %v2561_v62, %v1462_v11 }
 0x814   :  { %v1423_v60 = vpop.f32.mrf.mxu0  ;;  %v1986_v27 = vpop.f32.mrf.mxu1 }
 0x815   :  { %v1699_v19 = vmul.f32 -1.442695, %v1468_v26  ;;  %v1475_v53 = vadd.f32 %v1423_v60, %v2556_v25 }
 0x816   :  { %v1425_v58 = vpop.f32.mrf.mxu0  ;;  %v1465_v9 = vpop.f32.mrf.mxu1 }
 0x817   :  { %2167 = vpow2.f32 %v1699_v19  ;;  %v1700_v61 = vmul.f32 -1.442695, %v1475_v53 }
 0x818   :  { %v1426_v12 = vpop.f32.mrf.mxu0  ;;  %v1987_v4 = vpop.f32.mrf.mxu1 }
 0x819   :  { %2169 = vpow2.f32 %v1700_v61 }
 0x824   :  { %v2168_v0 = vpop.eup %2167 }
 0x825   :  { %v1472_v6 = vadd.f32 1.0, %v2168_v0 }
 0x826   :  { %v2170_v38 = vpop.eup %2169 }
 0x827   :  { %2171 = vrcp.f32 %v1472_v6  ;;  %v1479_v2 = vadd.f32 1.0, %v2170_v38 }
 0x829   :  { %2173 = vrcp.f32 %v1479_v2 }
 0x834   :  { %v2172_v35 = vpop.eup %2171 }
 0x835   :  { %v1483_v63 = vmul.f32 %v2172_v35, %v1482_v21 }
 0x836   :  { %v2174_v17 = vpop.eup %2173 }
 0x837   :  { %v1484_v28 = vadd.f32 %v1483_v63, %v2854_v24  ;;  %v1486_v13 = vsub.f32 1.0, %v2174_v17  ;;  %v1488_v25 = vmul.f32 %v2174_v17, %v1381_v44 }
 0x839   :  { %2175 = vtanh.f32 %v1484_v28 }
 0x846   :  { %v2176_v49 = vpop.eup %2175 }
 0x847   :  { %v1487_v22 = vmul.f32 %v2176_v49, %v1486_v13 }
 0x849   :  { %v1489_v51 = vadd.f32 %v1488_v25, %v1487_v22 }
 0x84b   :  { %v1495_v3 = vpack.c.bf16 %v1489_v51, %v1489_v51 }
 0x84d   :  { %2005 = vmatmul.mubr.bf16.vlgmr.msra.gmra.mxu0 %v1495_v3 }
 0x90d   :  { %v1601_v57 = vpop.f32.mrf.mxu0 }
 0x90e   :  { %v1602_v62 = vadd.f32 %v1701_v43, %v1601_v57 }
 0x90f   :  { %v2006_v14 = vpop.f32.mrf.mxu0 }
 0x910   :  { %v1710_v8 = vmul.f32 -1.442695, %v1602_v62 }
 0x911   :  { %v1604_v15 = vpop.f32.mrf.mxu0 }
 0x912   :  { %2177 = vpow2.f32 %v1710_v8 }
 0x913   :  { %v2007_v52 = vpop.f32.mrf.mxu0 }
 0x91f   :  { %v2178_v31 = vpop.eup %2177 }
 0x920   :  { %v1610_v1 = vadd.f32 1.0, %v2178_v31 }
 0x922   :  { %2179 = vrcp.f32 %v1610_v1 }
 0x92f   :  { %v2180_v10 = vpop.eup %2179 }
 0x930   :  { %v1613_v16 = vmul.f32 %v2180_v10, %v1602_v62 }
 0x932   :  { %1614 = vst [vmem:[#allocation12] sm:$0xff] %v1613_v16 }
 0x933   :  { %2292 = shalt.err (!%p2289_p10)
}
 0x934   :  { %1624 = dma.vmem_to_hbm [thread:$0]  %s1622_s26, 128, %s2840_s7, [#allocation6]  }
 0x935   :  { %2307 = dma.done.wait [#allocation6], 128  }
 0x936   :  { %2308 = vsyncadd [#allocation6], 4294967168 }
 0x937   :  { %1628 = vsyncpa [#allocation5], 1 }
 0x938   :  { %1629 = vsyncpa [#allocation8], 1 }
 0x939   :  { %1630 = vsyncpa [#allocation11], 1 }
 0x93a   :  { %1631 = vsyncpa [#allocation6], 1 }

// kernel: tpu_custom_call.1
= control target key start
LH: loop header
LB: loop body
LE: loop exit
PB: predicated region body
PF: predicated region fallthrough
CT: control target
= control target key end

     0   :  { %12 = vsyncpa [#allocation5], 0  ;;  %s2833_s0 = inlined_call_operand.hbm [shape: bf16[8,8,128], index: 0, kind: input, shape index: {}]   ;;  %s2834_s1 = inlined_call_operand.hbm [shape: bf16[128,384], index: 1, kind: input, shape index: {}]   ;;  %s2835_s2 = inlined_call_operand.hbm [shape: bf16[128,384], index: 2, kind: input, shape index: {}]   ;;  %s2836_s3 = inlined_call_operand.vmem [shape: f32[1,384], index: 3, kind: input, shape index: {}]   ;;  %s2837_s4 = inlined_call_operand.vmem [shape: f32[1,128], index: 4, kind: input, shape index: {}]   ;;  %s2838_s5 = inlined_call_operand.hbm [shape: bf16[128,128], index: 5, kind: input, shape index: {}]   ;;  %s2839_s6 = inlined_call_operand.vmem [shape: f32[1,128], index: 6, kind: input, shape index: {}]   ;;  %s2840_s7 = inlined_call_operand.hbm [shape: f32[8,128], index: 7, kind: output, shape index: {}]  }
   0x1   :  { %13 = vsyncpa [#allocation8], 0 }
   0x2   :  { %14 = vsyncpa [#allocation11], 0 }
   0x3   :  { %15 = vsyncpa [#allocation6], 0  ;;  %s2309_s24 = smov [#allocation7]  }
   0x4   :  { %s33_s25 = sshll.u32 %s2309_s24, 4  ;;  %s34_s25 = int_to_ptr.vmem [resolvable:$true] %s33_s25 }
   0x5   :  { %s2209_s26 = scalar_lea.vmem %s34_s25, 3072  ;;  %p2214_p1 = scmp.lt.s32.totalorder %s34_s25, %s34_s25 }
   0x6   :  { %p2210_p0 = scmp.ne.s32.totalorder %s34_s25, %s2209_s26  ;;  %p2215_p2 = scmp.lt.s32.totalorder %s2209_s26, %s2209_s26 }
   0x8   :  { %p2216_p3 = por %p2215_p2, %p2214_p1 }
   0xa   :  { %p2217_p4 = pnand %p2216_p3, %p2210_p0 }
   0xc   :  { %2220 = shalt.err (!%p2217_p4)
}
   0xd   :  { %s2310_s27 = smov 192   ;;  %s2311_s28 = smov 12  }
   0xe   :  { %39 = dma.hbm_to_vmem [thread:$0]  %s2834_s1, 3072, %s34_s25, [#allocation8], %s2310_s27, %s2310_s27, %s2311_s28  }
   0xf   :  { %s2312_s8 = smov [#allocation4]  }
  0x10   :  { %s21_s9 = sshll.u32 %s2312_s8, 4  ;;  %s22_s9 = int_to_ptr.vmem [resolvable:$true] %s21_s9 }
  0x11   :  { %s2229_s10 = scalar_lea.vmem %s22_s9, 512  ;;  %p2234_p6 = scmp.lt.s32.totalorder %s22_s9, %s22_s9 }
  0x12   :  { %p2230_p5 = scmp.ne.s32.totalorder %s22_s9, %s2229_s10  ;;  %p2235_p7 = scmp.lt.s32.totalorder %s2229_s10, %s2229_s10 }
  0x14   :  { %p2236_p8 = por %p2235_p7, %p2234_p6 }
  0x16   :  { %p2237_p9 = pnand %p2236_p8, %p2230_p5 }
  0x18   :  { %2240 = shalt.err (!%p2237_p9)
}
  0x19   :  { %s2313_s11 = smov 64   ;;  %s2314_s12 = smov 4  }
  0x1a   :  { %27 = dma.hbm_to_vmem [thread:$0]  %s2833_s0, 512, %s22_s9, [#allocation5], %s2313_s11, %s2313_s11, %s2314_s12  }
  0x1b   :  { %s2315_s15 = smov [#allocation9]   ;;  %s2316_s17 = smov [#allocation10]  }
  0x1c   :  { %s45_s16 = sshll.u32 %s2315_s15, 4  ;;  %s61_s1 = sshll.u32 %s2316_s17, 4  ;;  %s46_s16 = int_to_ptr.vmem [resolvable:$true] %s45_s16  ;;  %s62_s1 = int_to_ptr.vmem [resolvable:$true] %s61_s1 }
  0x1d   :  { %s2249_s18 = scalar_lea.vmem %s46_s16, 3072  ;;  %p2254_p11 = scmp.lt.s32.totalorder %s46_s16, %s46_s16 }
  0x1e   :  { %p2250_p10 = scmp.ne.s32.totalorder %s46_s16, %s2249_s18  ;;  %p2255_p12 = scmp.lt.s32.totalorder %s2249_s18, %s2249_s18 }
  0x20   :  { %p2256_p13 = por %p2255_p12, %p2254_p11 }
  0x22   :  { %p2257_p0 = pnand %p2256_p13, %p2250_p10 }
  0x24   :  { %2260 = shalt.err (!%p2257_p0)
}
  0x25   :  { %51 = dma.hbm_to_vmem [thread:$0]  %s2835_s2, 3072, %s46_s16, [#allocation8], %s2310_s27, %s2310_s27, %s2311_s28  }
  0x26   :  { %s2269_s0 = scalar_lea.vmem %s62_s1, 1024  ;;  %p2274_p2 = scmp.lt.s32.totalorder %s62_s1, %s62_s1 }
  0x27   :  { %p2270_p1 = scmp.ne.s32.totalorder %s62_s1, %s2269_s0  ;;  %p2275_p3 = scmp.lt.s32.totalorder %s2269_s0, %s2269_s0 }
  0x29   :  { %p2276_p4 = por %p2275_p3, %p2274_p2 }
  0x2b   :  { %p2277_p5 = pnand %p2276_p4, %p2270_p1 }
  0x2d   :  { %2280 = shalt.err (!%p2277_p5)
}
  0x2e   :  { %67 = dma.hbm_to_vmem [thread:$0]  %s2838_s5, 1024, %s62_s1, [#allocation11], %s2313_s11, %s2313_s11, %s2314_s12  }
  0x2f   :  { %2301 = dma.done.wait [#allocation5], 512  }
  0x30   :  { %2302 = vsyncadd [#allocation5], 4294966784 }
  0x31   :  { %2303 = dma.done.wait [#allocation8], 6144  }
  0x32   :  { %2304 = vsyncadd [#allocation8], 4294961152 }
  0x33   :  { %2305 = dma.done.wait [#allocation11], 1024  }
  0x34   :  { %2306 = vsyncadd [#allocation11], 4294966272  ;;  %v2841_v0 = vmov 0   ;;  %v2021_v1 = vld [vmem:[#allocation7 + $0xac] ss:$12 sps:$4 sm:$0xff]   ;;  %v2047_v12 = vld [vmem:[#allocation4] sm:$0xff]   ;;  %v130_v55 = vlaneseq }
  0x35   :  { %329 = vmatprep.mubr.bf16.mxu0 %v2841_v0  ;;  %v2023_v2 = vld [vmem:[#allocation7 + $0xa8] ss:$12 sps:$4 sm:$0xff]   ;;  %297 = vmatprep.subr.bf16.mxu0 %v2021_v1  ;;  %v2026_v4 = vld [vmem:[#allocation7 + $0x90] ss:$12 sps:$4 sm:$0xff]   ;;  %v2029_v6 = vld [vmem:[#allocation7 + $0x78] ss:$12 sps:$4 sm:$0xff]  }
  0x36   :  { %v2024_v3 = vld [vmem:[#allocation7 + $0x94] ss:$12 sps:$4 sm:$0xff]   ;;  %298 = vmatpush1.bf16.msra.mxu0 %v2023_v2  ;;  %v2027_v5 = vld [vmem:[#allocation7 + $0x7c] ss:$12 sps:$4 sm:$0xff]   ;;  %v2030_v7 = vld [vmem:[#allocation7 + $0x64] ss:$12 sps:$4 sm:$0xff]   ;;  %1820 = vmatprep.mubr.bf16.mxu1 %v2047_v12 }
  0x37   :  { %299 = vmatprep.subr.bf16.mxu0 %v2024_v3  ;;  %v2042_v8 = vld [vmem:[#allocation7 + $0xb0] ss:$12 sps:$4 sm:$0xff]   ;;  %v2032_v9 = vld [vmem:[#allocation7 + $0x60] ss:$12 sps:$4 sm:$0xff]   ;;  %v2046_v11 = vld [vmem:[#allocation7 + $0x98] ss:$12 sps:$4 sm:$0xff]  }
  0x38   :  { %v2033_v10 = vld [vmem:[#allocation7 + $0x4c] ss:$12 sps:$4 sm:$0xff]   ;;  %1804 = vmatprep.subr.bf16.mxu1 %v2042_v8  ;;  %v2035_v13 = vld [vmem:[#allocation7 + $0x48] ss:$12 sps:$4 sm:$0xff]   ;;  %v2038_v17 = vld [vmem:[#allocation7 + $0x30] ss:$12 sps:$4 sm:$0xff]  }
  0x39   :  { %1805 = vmatpush3.bf16.msra.mxu1 %v2042_v8  ;;  %v2051_v14 = vld [vmem:[#allocation7 + $0x80] ss:$12 sps:$4 sm:$0xff]   ;;  %v2055_v16 = vld [vmem:[#allocation7 + $0x68] ss:$12 sps:$4 sm:$0xff]   ;;  %v2060_v19 = vld [vmem:[#allocation7 + $0x50] ss:$12 sps:$4 sm:$0xff]  }
  0x3a   :  { %300 = vmatpush1.bf16.msra.mxu0 %v2026_v4  ;;  %1806 = vmatprep.subr.bf16.mxu1 %v2046_v11  ;;  %v2036_v15 = vld [vmem:[#allocation7 + $0x34] ss:$12 sps:$4 sm:$0xff]   ;;  %v2039_v18 = vld [vmem:[#allocation7 + $0x1c] ss:$12 sps:$4 sm:$0xff]   ;;  %v2041_v20 = vld [vmem:[#allocation7 + $0x18] ss:$12 sps:$4 sm:$0xff]  }
  0x3b   :  { %301 = vmatprep.subr.bf16.mxu0 %v2027_v5  ;;  %v2043_v21 = vld [vmem:[#allocation7 + $0x4] ss:$12 sps:$4 sm:$0xff]   ;;  %v2045_v23 = vld [vmem:[#allocation7] ss:$12 sps:$4 sm:$0xff]   ;;  %v2383_v26 = vld [vmem:[#allocation9 + $0xa8] ss:$12 sps:$4 sm:$0xff]  }
  0x3c   :  { %v2064_v22 = vld [vmem:[#allocation7 + $0x38] ss:$12 sps:$4 sm:$0xff]   ;;  %v2069_v25 = vld [vmem:[#allocation7 + $0x20] ss:$12 sps:$4 sm:$0xff]   ;;  %v2073_v28 = vld [vmem:[#allocation7 + $0x8] ss:$12 sps:$4 sm:$0xff]  }
  0x3d   :  { %1807 = vmatpush3.bf16.msra.mxu1 %v2046_v11  ;;  %v2381_v24 = vld [vmem:[#allocation9 + $0xac] ss:$12 sps:$4 sm:$0xff]   ;;  %v2386_v27 = vld [vmem:[#allocation9 + $0x94] ss:$12 sps:$4 sm:$0xff]   ;;  %v2389_v29 = vld [vmem:[#allocation9 + $0x90] ss:$12 sps:$4 sm:$0xff]  }
  0x3e   :  { %302 = vmatpush1.bf16.msra.mxu0 %v2029_v6  ;;  %1808 = vmatprep.subr.bf16.mxu1 %v2051_v14  ;;  %v2393_v30 = vld [vmem:[#allocation9 + $0x7c] ss:$12 sps:$4 sm:$0xff]   ;;  %v2396_v32 = vld [vmem:[#allocation9 + $0x78] ss:$12 sps:$4 sm:$0xff]   ;;  %v2401_v34 = vld [vmem:[#allocation9 + $0x60] ss:$12 sps:$4 sm:$0xff]  }
  0x3f   :  { %303 = vmatprep.subr.bf16.mxu0 %v2030_v7  ;;  %v2056_v31 = vld [vmem:[#allocation4 + $0x8] sm:$0xff]   ;;  %v2399_v33 = vld [vmem:[#allocation9 + $0x64] ss:$12 sps:$4 sm:$0xff]   ;;  %v2843_v38 = vmov 0.0   ;;  %v2419_v41 = vld [vmem:[#allocation9 + $0x34] ss:$12 sps:$4 sm:$0xff]  }
  0x40   :  { %v2065_v35 = vld [vmem:[#allocation4 + $0x10] sm:$0xff]   ;;  %v2405_v37 = vld [vmem:[#allocation9 + $0x4c] ss:$12 sps:$4 sm:$0xff]   ;;  %v2430_v45 = vld [vmem:[#allocation9 + $0x1c] ss:$12 sps:$4 sm:$0xff]   ;;  %vm2319_vm0 = vmmov 0  }
  0x41   :  { %1809 = vmatpush3.bf16.msra.mxu1 %v2051_v14  ;;  %v2403_v36 = vld [vmem:[#allocation9 + $0xb0] ss:$12 sps:$4 sm:$0xff]   ;;  %v2410_v39 = vld [vmem:[#allocation9 + $0x98] ss:$12 sps:$4 sm:$0xff]   ;;  %v2416_v40 = vld [vmem:[#allocation9 + $0x48] ss:$12 sps:$4 sm:$0xff]  }
  0x42   :  { %304 = vmatpush1.bf16.msra.mxu0 %v2032_v9  ;;  %1810 = vmatprep.subr.bf16.mxu1 %v2055_v16  ;;  %v2422_v42 = vld [vmem:[#allocation9 + $0x80] ss:$12 sps:$4 sm:$0xff]   ;;  %v2074_v43 = vld [vmem:[#allocation4 + $0x18] sm:$0xff]   ;;  %v2433_v46 = vld [vmem:[#allocation9 + $0x68] ss:$12 sps:$4 sm:$0xff]   ;;  %v2320_v53 = vmov 0.0|0.0  }
  0x43   :  { %305 = vmatprep.subr.bf16.mxu0 %v2033_v10  ;;  %v2426_v44 = vld [vmem:[#allocation9 + $0x30] ss:$12 sps:$4 sm:$0xff]   ;;  %v2439_v47 = vld [vmem:[#allocation9 + $0x18] ss:$12 sps:$4 sm:$0xff]   ;;  %v2449_v50 = vld [vmem:[#allocation9] ss:$12 sps:$4 sm:$0xff]  }
  0x44   :  { %v2442_v48 = vld [vmem:[#allocation9 + $0x4] ss:$12 sps:$4 sm:$0xff]   ;;  %v2460_v52 = vld [vmem:[#allocation9 + $0x20] ss:$12 sps:$4 sm:$0xff]   ;;  %v2467_v54 = vld [vmem:[#allocation9 + $0x8] ss:$12 sps:$4 sm:$0xff]  }
  0x45   :  { %1811 = vmatpush3.bf16.msra.mxu1 %v2055_v16  ;;  %v2445_v49 = vld [vmem:[#allocation9 + $0x50] ss:$12 sps:$4 sm:$0xff]   ;;  %v2454_v51 = vld [vmem:[#allocation9 + $0x38] ss:$12 sps:$4 sm:$0xff]   ;;  %v131_v56 = vshrl.u32 %v130_v55, 7  ;;  %s2321_s25 = smov [#allocation12]  }
  0x46   :  { %306 = vmatpush1.bf16.msra.mxu0 %v2035_v13  ;;  %1812 = vmatprep.subr.bf16.mxu1 %v2060_v19  ;;  %v128_v58 = vld [vmem:[%s2836_s3] sm:$0x7]  ;;  %s1621_s26 = sshll.u32 %s2321_s25, 4  ;;  %s1622_s26 = int_to_ptr.vmem [resolvable:$true] %s1621_s26 }
  0x47   :  { %307 = vmatprep.subr.bf16.mxu0 %v2036_v15  ;;  %v132_v57 = vsub.s32 0, %v131_v56  ;;  %v136_v60 = vsub.s32 1, %v131_v56  ;;  %v140_v63 = vsub.s32 2, %v131_v56  ;;  %s2281_s27 = scalar_lea.vmem %s1622_s26, 128  ;;  %p2286_p7 = scmp.lt.s32.totalorder %s1622_s26, %s1622_s26 }
  0x48   :  { %p2282_p6 = scmp.ne.s32.totalorder %s1622_s26, %s2281_s27  ;;  %p2287_p8 = scmp.lt.s32.totalorder %s2281_s27, %s2281_s27 }
  0x49   :  { %1813 = vmatpush3.bf16.msra.mxu1 %v2060_v19  ;;  %v133_v62 = vrot.slane %v128_v58, %v132_v57  ;;  %v137_v2 = vrot.slane %v128_v58, %v136_v60  ;;  %v2511_v6 = vrot.slane %v128_v58, %v140_v63 }
  0x4a   :  { %308 = vmatpush1.bf16.msra.mxu0 %v2038_v17  ;;  %1814 = vmatprep.subr.bf16.mxu1 %v2064_v22  ;;  %p2288_p9 = por %p2287_p8, %p2286_p7 }
  0x4b   :  { %309 = vmatprep.subr.bf16.mxu0 %v2039_v18 }
  0x4c   :  { %p2289_p10 = pnand %p2288_p9, %p2282_p6 }
  0x4d   :  { %1815 = vmatpush3.bf16.msra.mxu1 %v2064_v22 }
  0x4e   :  { %310 = vmatpush1.bf16.msra.mxu0 %v2041_v20  ;;  %1816 = vmatprep.subr.bf16.mxu1 %v2069_v25 }
  0x4f   :  { %311 = vmatprep.subr.bf16.mxu0 %v2043_v21 }
  0x51   :  { %1817 = vmatpush3.bf16.msra.mxu1 %v2069_v25 }
  0x52   :  { %312 = vmatpush1.bf16.msra.mxu0 %v2045_v23  ;;  %1818 = vmatprep.subr.bf16.mxu1 %v2073_v28 }
  0x53   :  { %631 = vmatprep.subr.bf16.mxu0 %v2381_v24 }
  0x55   :  { %330 = vmatmul.mubr.bf16.vlgmr.msra.gmra.mxu0 %v2047_v12  ;;  %1819 = vmatpush3.bf16.msra.mxu1 %v2073_v28 }
  0x56   :  { %632 = vmatpush1.bf16.msra.mxu0 %v2383_v26  ;;  %339 = vmatprep.mubr.bf16.mxu0 %v2841_v0 }
  0x57   :  { %633 = vmatprep.subr.bf16.mxu0 %v2386_v27  ;;  %1828 = vmatprep.subr.bf16.mxu1 %v2843_v38 }
  0x58   :  { %1821 = vmatmul.mubr.bf16.vlgmr.msra.gmra.mxu1 %v2056_v31 }
  0x59   :  { %1829 = vmatpush3.bf16.msra.mxu1 %v2403_v36  ;;  %1824 = vmatprep.mubr.bf16.mxu1 %v2065_v35 }
  0x5a   :  { %634 = vmatpush1.bf16.msra.mxu0 %v2389_v29  ;;  %1830 = vmatprep.subr.bf16.mxu1 %v2843_v38 }
  0x5b   :  { %635 = vmatprep.subr.bf16.mxu0 %v2393_v30 }
  0x5d   :  { %340 = vmatmul.mubr.bf16.gmra.mxu0 %v2056_v31  ;;  %1831 = vmatpush3.bf16.msra.mxu1 %v2410_v39 }
  0x5e   :  { %636 = vmatpush1.bf16.msra.mxu0 %v2396_v32  ;;  %349 = vmatprep.mubr.bf16.mxu0 %v2841_v0 }
  0x5f   :  { %637 = vmatprep.subr.bf16.mxu0 %v2399_v33  ;;  %1832 = vmatprep.subr.bf16.mxu1 %v2843_v38 }
  0x60   :  { %1825 = vmatmul.mubr.bf16.gmra.mxu1 %v2074_v43 }
  0x61   :  { %1833 = vmatpush3.bf16.msra.mxu1 %v2422_v42  ;;  %1844 = vmatprep.mubr.msk.bf16.mxu1 %vm2319_vm0, %v2843_v38 }
  0x62   :  { %638 = vmatpush1.bf16.msra.mxu0 %v2401_v34  ;;  %1834 = vmatprep.subr.bf16.mxu1 %v2843_v38 }
  0x63   :  { %639 = vmatprep.subr.bf16.mxu0 %v2405_v37 }
  0x65   :  { %350 = vmatmul.mubr.bf16.gmra.mxu0 %v2065_v35  ;;  %1835 = vmatpush3.bf16.msra.mxu1 %v2433_v46 }
  0x66   :  { %640 = vmatpush1.bf16.msra.mxu0 %v2416_v40  ;;  %359 = vmatprep.mubr.bf16.mxu0 %v2841_v0 }
  0x67   :  { %641 = vmatprep.subr.bf16.mxu0 %v2419_v41  ;;  %1836 = vmatprep.subr.bf16.mxu1 %v2843_v38 }
  0x69   :  { %1837 = vmatpush3.bf16.msra.mxu1 %v2445_v49 }
  0x6a   :  { %642 = vmatpush1.bf16.msra.mxu0 %v2426_v44  ;;  %1838 = vmatprep.subr.bf16.mxu1 %v2843_v38 }
  0x6b   :  { %643 = vmatprep.subr.bf16.mxu0 %v2430_v45 }
  0x6d   :  { %360 = vmatmul.mubr.bf16.gmra.mxu0 %v2074_v43  ;;  %1839 = vmatpush3.bf16.msra.mxu1 %v2454_v51 }
  0x6e   :  { %644 = vmatpush1.bf16.msra.mxu0 %v2439_v47  ;;  %663 = vmatprep.mubr.bf16.mxu0 %v2841_v0 }
  0x6f   :  { %645 = vmatprep.subr.bf16.mxu0 %v2442_v48  ;;  %1840 = vmatprep.subr.bf16.mxu1 %v2843_v38 }
  0x71   :  { %1841 = vmatpush3.bf16.msra.mxu1 %v2460_v52 }
  0x72   :  { %646 = vmatpush1.bf16.msra.mxu0 %v2449_v50  ;;  %1842 = vmatprep.subr.bf16.mxu1 %v2843_v38 }
  0x73   :  { %739 = vmatprep.subr.bf16.mxu0 %v2381_v24 }
  0x75   :  { %664 = vmatmul.mubr.bf16.vlgmr.msra.gmra.mxu0 %v2320_v53  ;;  %1843 = vmatpush3.bf16.msra.mxu1 %v2467_v54 }
  0x76   :  { %740 = vmatpush1.bf16.msra.mxu0 %v2383_v26  ;;  %771 = vmatprep.mubr.bf16.mxu0 %v2841_v0 }
  0x77   :  { %741 = vmatprep.subr.bf16.mxu0 %v2386_v27  ;;  %1848 = vmatprep.subr.bf16.mxu1 %v2843_v38 }
  0x78   :  { %1845 = vmatmul.mubr.bf16.vlgmr.msra.gmra.mxu1 %v2320_v53 }
  0x79   :  { %1849 = vmatpush3.bf16.msra.mxu1 %v2403_v36  ;;  %1864 = vmatprep.mubr.msk.bf16.mxu1 %vm2319_vm0, %v2843_v38 }
  0x7a   :  { %742 = vmatpush1.bf16.msra.mxu0 %v2389_v29  ;;  %1850 = vmatprep.subr.bf16.mxu1 %v2843_v38 }
  0x7b   :  { %743 = vmatprep.subr.bf16.mxu0 %v2393_v30 }
  0x7d   :  { %1851 = vmatpush3.bf16.msra.mxu1 %v2410_v39 }
  0x7e   :  { %744 = vmatpush1.bf16.msra.mxu0 %v2396_v32  ;;  %1852 = vmatprep.subr.bf16.mxu1 %v2843_v38 }
  0x7f   :  { %745 = vmatprep.subr.bf16.mxu0 %v2399_v33 }
  0x81   :  { %1853 = vmatpush3.bf16.msra.mxu1 %v2422_v42 }
  0x82   :  { %746 = vmatpush1.bf16.msra.mxu0 %v2401_v34  ;;  %1854 = vmatprep.subr.bf16.mxu1 %v2843_v38 }
  0x83   :  { %747 = vmatprep.subr.bf16.mxu0 %v2405_v37 }
  0x85   :  { %1855 = vmatpush3.bf16.msra.mxu1 %v2433_v46 }
  0x86   :  { %748 = vmatpush1.bf16.msra.mxu0 %v2416_v40  ;;  %1856 = vmatprep.subr.bf16.mxu1 %v2843_v38 }
  0x87   :  { %749 = vmatprep.subr.bf16.mxu0 %v2419_v41 }
  0x89   :  { %1857 = vmatpush3.bf16.msra.mxu1 %v2445_v49 }
  0x8a   :  { %750 = vmatpush1.bf16.msra.mxu0 %v2426_v44  ;;  %1858 = vmatprep.subr.bf16.mxu1 %v2843_v38 }
  0x8b   :  { %751 = vmatprep.subr.bf16.mxu0 %v2430_v45 }
  0x8d   :  { %1859 = vmatpush3.bf16.msra.mxu1 %v2454_v51 }
  0x8e   :  { %752 = vmatpush1.bf16.msra.mxu0 %v2439_v47  ;;  %1860 = vmatprep.subr.bf16.mxu1 %v2843_v38 }
  0x8f   :  { %753 = vmatprep.subr.bf16.mxu0 %v2442_v48 }
  0x91   :  { %1861 = vmatpush3.bf16.msra.mxu1 %v2460_v52 }
  0x92   :  { %754 = vmatpush1.bf16.msra.mxu0 %v2449_v50  ;;  %1862 = vmatprep.subr.bf16.mxu1 %v2843_v38 }
  0x93   :  { %847 = vmatprep.subr.bf16.mxu0 %v2381_v24 }
  0x95   :  { %1863 = vmatpush3.bf16.msra.mxu1 %v2467_v54 }
  0x96   :  { %1868 = vmatprep.subr.bf16.mxu1 %v2843_v38 }
 0x115   :  { %v331_v59 = vpop.f32.mrf.mxu0 }
 0x117   :  { %v333_v61 = vpop.f32.mrf.mxu0 }
 0x118   :  { %v1822_v10 = vpop.f32.mrf.mxu1 }
 0x119   :  { %v335_v1 = vpop.f32.mrf.mxu0  ;;  %v2518_v12 = vadd.f32 %v1822_v10, %v2511_v6 }
 0x11a   :  { %v2507_v3 = vadd.f32 %v335_v1, %v133_v62  ;;  %v404_v14 = vpop.f32.mrf.mxu1 }
 0x11b   :  { %v337_v4 = vpop.f32.mrf.mxu0 }
 0x11c   :  { %v2509_v5 = vadd.f32 %v337_v4, %v137_v2  ;;  %v1823_v17 = vpop.f32.mrf.mxu1 }
 0x11d   :  { %v341_v7 = vpop.f32.mrf.mxu0  ;;  %v2525_v19 = vadd.f32 %v1823_v17, %v2511_v6 }
 0x11e   :  { %v2513_v8 = vadd.f32 %v341_v7, %v133_v62  ;;  %v407_v21 = vpop.f32.mrf.mxu1 }
 0x11f   :  { %v343_v9 = vpop.f32.mrf.mxu0  ;;  %v2530_v23 = vadd.f32 %v407_v21, %v2511_v6  ;;  %v332_v21 = vadd.f32 %v331_v59, %v133_v62 }
 0x120   :  { %v2515_v11 = vadd.f32 %v343_v9, %v137_v2  ;;  %v1826_v28 = vpop.f32.mrf.mxu1 }
 0x121   :  { %v345_v13 = vpop.f32.mrf.mxu0  ;;  %v2535_v35 = vadd.f32 %v1826_v28, %v2511_v6 }
 0x122   :  { %v2520_v15 = vadd.f32 %v345_v13, %v133_v62  ;;  %v420_v53 = vpop.f32.mrf.mxu1 }
 0x123   :  { %v347_v16 = vpop.f32.mrf.mxu0  ;;  %2845 = vst [vmem:[#allocation17_spill] sm:$0xff] %v2535_v35  ;;  %v2540_v56 = vadd.f32 %v420_v53, %v2511_v6 }
 0x124   :  { %v2522_v18 = vadd.f32 %v347_v16, %v137_v2  ;;  %v1827_v58 = vpop.f32.mrf.mxu1 }
 0x125   :  { %v351_v20 = vpop.f32.mrf.mxu0  ;;  %v2545_v63 = vadd.f32 %v1827_v58, %v2511_v6 }
 0x126   :  { %v2527_v22 = vadd.f32 %v351_v20, %v133_v62  ;;  %v423_v4 = vpop.f32.mrf.mxu1 }
 0x127   :  { %v353_v25 = vpop.f32.mrf.mxu0  ;;  %2846 = vst [vmem:[#allocation18_spill] sm:$0xff] %v2545_v63  ;;  %v2550_v9 = vadd.f32 %v423_v4, %v2511_v6 }
 0x128   :  { %v2532_v31 = vadd.f32 %v353_v25, %v137_v2 }
 0x129   :  { %v355_v43 = vpop.f32.mrf.mxu0 }
 0x12a   :  { %v2537_v55 = vadd.f32 %v355_v43, %v133_v62 }
 0x12b   :  { %v357_v57 = vpop.f32.mrf.mxu0 }
 0x12c   :  { %v2542_v60 = vadd.f32 %v357_v57, %v137_v2 }
 0x12d   :  { %v361_v1 = vpop.f32.mrf.mxu0 }
 0x12e   :  { %v2547_v7 = vadd.f32 %v361_v1, %v133_v62  ;;  %v334_v1 = vadd.f32 %v333_v61, %v137_v2 }
 0x12f   :  { %v363_v10 = vpop.f32.mrf.mxu0 }
 0x130   :  { %v2552_v13 = vadd.f32 %v363_v10, %v137_v2 }
 0x131   :  { %v365_v16 = vpop.f32.mrf.mxu0 }
 0x132   :  { %2847 = vst [vmem:[#allocation19_spill] sm:$0xff] %v2552_v13  ;;  %v2554_v17 = vadd.f32 %v365_v16, %v133_v62  ;;  %v2561_v62 = vld [vmem:[%s2837_s4] ss:$0 sm:$0xff] }
 0x133   :  { %v367_v20 = vpop.f32.mrf.mxu0 }
 0x134   :  { %2848 = vst [vmem:[#allocation20_spill] sm:$0xff] %v2554_v17  ;;  %v2556_v25 = vadd.f32 %v367_v20, %v137_v2  ;;  %v405_v2 = vadd.f32 %v404_v14, %v2511_v6  ;;  %v2850_v6 = vmov 0  }
 0x135   :  { %v665_v28 = vpop.f32.mrf.mxu0 }
 0x136   :  { %v712_v43 = vadd.f32 %v665_v28, %v332_v21 }
 0x137   :  { %v667_v53 = vpop.f32.mrf.mxu0 }
 0x138   :  { %v1685_v57 = vmul.f32 -1.442695, %v712_v43  ;;  %v719_v4 = vadd.f32 %v667_v53, %v334_v1  ;;  %v706_v38 = vpop.f32.mrf.mxu1 }
 0x139   :  { %v669_v58 = vpop.f32.mrf.mxu0  ;;  %v726_v61 = vadd.f32 %v2561_v62, %v706_v38  ;;  %v2849_v38 = vmov 0.0  }
 0x13a   :  { %2097 = vpow2.f32 %v1685_v57  ;;  %v1686_v63 = vmul.f32 -1.442695, %v719_v4  ;;  %v1846_v10 = vpop.f32.mrf.mxu1 }
 0x13b   :  { %v670_v0 = vpop.f32.mrf.mxu0 }
 0x13c   :  { %v709_v35 = vpop.f32.mrf.mxu1  ;;  %2099 = vpow2.f32 %v1686_v63 }
 0x13e   :  { %v1847_v16 = vpop.f32.mrf.mxu1 }
 0x147   :  { %v2098_v17 = vpop.eup %2097 }
 0x148   :  { %v716_v13 = vadd.f32 1.0, %v2098_v17 }
 0x149   :  { %v2100_v59 = vpop.eup %2099 }
 0x14a   :  { %2101 = vrcp.f32 %v716_v13  ;;  %v723_v20 = vadd.f32 1.0, %v2100_v59 }
 0x14c   :  { %2103 = vrcp.f32 %v723_v20 }
 0x157   :  { %v2102_v0 = vpop.eup %2101 }
 0x158   :  { %v727_v21 = vmul.f32 %v2102_v0, %v726_v61 }
 0x159   :  { %v2104_v63 = vpop.eup %2103 }
 0x15a   :  { %v728_v35 = vadd.f32 %v727_v21, %v405_v2  ;;  %v730_v28 = vsub.f32 1.0, %v2104_v63  ;;  %v732_v43 = vmul.f32 0.0, %v2104_v63 }
 0x15c   :  { %2105 = vtanh.f32 %v728_v35 }
 0x169   :  { %v2106_v17 = vpop.eup %2105 }
 0x16a   :  { %v731_v13 = vmul.f32 %v2106_v17, %v730_v28 }
 0x16c   :  { %v2565_v53 = vadd.f32 %v732_v43, %v731_v13 }
 0x16e   :  { %v738_v57 = vpack.c.bf16 %v2565_v53, %v2565_v53 }
 0x170   :  { %772 = vmatmul.mubr.bf16.vlgmr.msra.gmra.mxu0 %v738_v57  ;;  %1865 = vmatmul.mubr.bf16.vlgmr.msra.gmra.mxu1 %v738_v57 }
 0x171   :  { %848 = vmatpush1.bf16.msra.mxu0 %v2383_v26  ;;  %1869 = vmatpush3.bf16.msra.mxu1 %v2403_v36 }
 0x172   :  { %849 = vmatprep.subr.bf16.mxu0 %v2386_v27  ;;  %1870 = vmatprep.subr.bf16.mxu1 %v2849_v38 }
 0x173   :  { %879 = vmatprep.mubr.bf16.mxu0 %v2850_v6  ;;  %1884 = vmatprep.mubr.msk.bf16.mxu1 %vm2319_vm0, %v2849_v38 }
 0x175   :  { %850 = vmatpush1.bf16.msra.mxu0 %v2389_v29  ;;  %1871 = vmatpush3.bf16.msra.mxu1 %v2410_v39 }
 0x176   :  { %851 = vmatprep.subr.bf16.mxu0 %v2393_v30  ;;  %1872 = vmatprep.subr.bf16.mxu1 %v2849_v38 }
 0x179   :  { %852 = vmatpush1.bf16.msra.mxu0 %v2396_v32  ;;  %1873 = vmatpush3.bf16.msra.mxu1 %v2422_v42 }
 0x17a   :  { %853 = vmatprep.subr.bf16.mxu0 %v2399_v33  ;;  %1874 = vmatprep.subr.bf16.mxu1 %v2849_v38 }
 0x17d   :  { %854 = vmatpush1.bf16.msra.mxu0 %v2401_v34  ;;  %1875 = vmatpush3.bf16.msra.mxu1 %v2433_v46 }
 0x17e   :  { %855 = vmatprep.subr.bf16.mxu0 %v2405_v37  ;;  %1876 = vmatprep.subr.bf16.mxu1 %v2849_v38 }
 0x181   :  { %856 = vmatpush1.bf16.msra.mxu0 %v2416_v40  ;;  %1877 = vmatpush3.bf16.msra.mxu1 %v2445_v49 }
 0x182   :  { %857 = vmatprep.subr.bf16.mxu0 %v2419_v41  ;;  %1878 = vmatprep.subr.bf16.mxu1 %v2849_v38 }
 0x185   :  { %858 = vmatpush1.bf16.msra.mxu0 %v2426_v44  ;;  %1879 = vmatpush3.bf16.msra.mxu1 %v2454_v51 }
 0x186   :  { %859 = vmatprep.subr.bf16.mxu0 %v2430_v45  ;;  %1880 = vmatprep.subr.bf16.mxu1 %v2849_v38 }
 0x189   :  { %860 = vmatpush1.bf16.msra.mxu0 %v2439_v47  ;;  %1881 = vmatpush3.bf16.msra.mxu1 %v2460_v52 }
 0x18a   :  { %861 = vmatprep.subr.bf16.mxu0 %v2442_v48  ;;  %1882 = vmatprep.subr.bf16.mxu1 %v2849_v38 }
 0x18d   :  { %862 = vmatpush1.bf16.msra.mxu0 %v2449_v50  ;;  %1883 = vmatpush3.bf16.msra.mxu1 %v2467_v54 }
 0x18e   :  { %955 = vmatprep.subr.bf16.mxu0 %v2381_v24  ;;  %1888 = vmatprep.subr.bf16.mxu1 %v2849_v38 }
 0x230   :  { %v773_v14 = vpop.f32.mrf.mxu0  ;;  %v814_v58 = vpop.f32.mrf.mxu1 }
 0x231   :  { %v820_v1 = vadd.f32 %v773_v14, %v2507_v3  ;;  %v834_v13 = vadd.f32 %v2561_v62, %v814_v58 }
 0x232   :  { %v775_v4 = vpop.f32.mrf.mxu0  ;;  %v1866_v10 = vpop.f32.mrf.mxu1 }
 0x233   :  { %v1687_v16 = vmul.f32 -1.442695, %v820_v1  ;;  %v827_v2 = vadd.f32 %v775_v4, %v2509_v5 }
 0x234   :  { %v777_v59 = vpop.f32.mrf.mxu0  ;;  %v817_v20 = vpop.f32.mrf.mxu1 }
 0x235   :  { %2107 = vpow2.f32 %v1687_v16  ;;  %v1688_v21 = vmul.f32 -1.442695, %v827_v2 }
 0x236   :  { %v778_v61 = vpop.f32.mrf.mxu0  ;;  %v1867_v0 = vpop.f32.mrf.mxu1 }
 0x237   :  { %2109 = vpow2.f32 %v1688_v21 }
 0x242   :  { %v2108_v35 = vpop.eup %2107 }
 0x243   :  { %v824_v63 = vadd.f32 1.0, %v2108_v35 }
 0x244   :  { %v2110_v28 = vpop.eup %2109 }
 0x245   :  { %2111 = vrcp.f32 %v824_v63  ;;  %v831_v17 = vadd.f32 1.0, %v2110_v28 }
 0x247   :  { %2113 = vrcp.f32 %v831_v17 }
 0x252   :  { %v2112_v3 = vpop.eup %2111 }
 0x253   :  { %v835_v43 = vmul.f32 %v2112_v3, %v834_v13 }
 0x254   :  { %v2114_v14 = vpop.eup %2113 }
 0x255   :  { %v836_v57 = vadd.f32 %v835_v43, %v2530_v23  ;;  %v838_v1 = vsub.f32 1.0, %v2114_v14  ;;  %v840_v5 = vmul.f32 %v2114_v14, %v2565_v53 }
 0x257   :  { %2115 = vtanh.f32 %v836_v57 }
 0x264   :  { %v2116_v10 = vpop.eup %2115 }
 0x265   :  { %v839_v16 = vmul.f32 %v2116_v10, %v838_v1 }
 0x267   :  { %v2609_v4 = vadd.f32 %v840_v5, %v839_v16 }
 0x269   :  { %v846_v59 = vpack.c.bf16 %v2609_v4, %v2609_v4 }
 0x26b   :  { %880 = vmatmul.mubr.bf16.vlgmr.msra.gmra.mxu0 %v846_v59  ;;  %1885 = vmatmul.mubr.bf16.vlgmr.msra.gmra.mxu1 %v846_v59 }
 0x26c   :  { %956 = vmatpush1.bf16.msra.mxu0 %v2383_v26  ;;  %1889 = vmatpush3.bf16.msra.mxu1 %v2403_v36 }
 0x26d   :  { %957 = vmatprep.subr.bf16.mxu0 %v2386_v27  ;;  %1890 = vmatprep.subr.bf16.mxu1 %v2849_v38 }
 0x26e   :  { %987 = vmatprep.mubr.bf16.mxu0 %v2850_v6  ;;  %1904 = vmatprep.mubr.msk.bf16.mxu1 %vm2319_vm0, %v2849_v38 }
 0x270   :  { %958 = vmatpush1.bf16.msra.mxu0 %v2389_v29  ;;  %1891 = vmatpush3.bf16.msra.mxu1 %v2410_v39 }
 0x271   :  { %959 = vmatprep.subr.bf16.mxu0 %v2393_v30  ;;  %1892 = vmatprep.subr.bf16.mxu1 %v2849_v38 }
 0x274   :  { %960 = vmatpush1.bf16.msra.mxu0 %v2396_v32  ;;  %1893 = vmatpush3.bf16.msra.mxu1 %v2422_v42 }
 0x275   :  { %961 = vmatprep.subr.bf16.mxu0 %v2399_v33  ;;  %1894 = vmatprep.subr.bf16.mxu1 %v2849_v38 }
 0x278   :  { %962 = vmatpush1.bf16.msra.mxu0 %v2401_v34  ;;  %1895 = vmatpush3.bf16.msra.mxu1 %v2433_v46 }
 0x279   :  { %963 = vmatprep.subr.bf16.mxu0 %v2405_v37  ;;  %1896 = vmatprep.subr.bf16.mxu1 %v2849_v38 }
 0x27c   :  { %964 = vmatpush1.bf16.msra.mxu0 %v2416_v40  ;;  %1897 = vmatpush3.bf16.msra.mxu1 %v2445_v49 }
 0x27d   :  { %965 = vmatprep.subr.bf16.mxu0 %v2419_v41  ;;  %1898 = vmatprep.subr.bf16.mxu1 %v2849_v38 }
 0x280   :  { %966 = vmatpush1.bf16.msra.mxu0 %v2426_v44  ;;  %1899 = vmatpush3.bf16.msra.mxu1 %v2454_v51 }
 0x281   :  { %967 = vmatprep.subr.bf16.mxu0 %v2430_v45  ;;  %1900 = vmatprep.subr.bf16.mxu1 %v2849_v38 }
 0x284   :  { %968 = vmatpush1.bf16.msra.mxu0 %v2439_v47  ;;  %1901 = vmatpush3.bf16.msra.mxu1 %v2460_v52 }
 0x285   :  { %969 = vmatprep.subr.bf16.mxu0 %v2442_v48  ;;  %1902 = vmatprep.subr.bf16.mxu1 %v2849_v38 }
 0x288   :  { %970 = vmatpush1.bf16.msra.mxu0 %v2449_v50  ;;  %1903 = vmatpush3.bf16.msra.mxu1 %v2467_v54 }
 0x289   :  { %1063 = vmatprep.subr.bf16.mxu0 %v2381_v24  ;;  %1908 = vmatprep.subr.bf16.mxu1 %v2849_v38 }
 0x32b   :  { %v881_v23 = vpop.f32.mrf.mxu0  ;;  %v922_v53 = vpop.f32.mrf.mxu1 }
 0x32c   :  { %v928_v58 = vadd.f32 %v881_v23, %v2513_v8  ;;  %v942_v14 = vadd.f32 %v2561_v62, %v922_v53 }
 0x32d   :  { %v883_v20 = vpop.f32.mrf.mxu0  ;;  %v1886_v61 = vpop.f32.mrf.mxu1 }
 0x32e   :  { %v1689_v0 = vmul.f32 -1.442695, %v928_v58  ;;  %v935_v28 = vadd.f32 %v883_v20, %v2515_v11 }
 0x32f   :  { %v885_v2 = vpop.f32.mrf.mxu0  ;;  %v925_v21 = vpop.f32.mrf.mxu1 }
 0x330   :  { %2117 = vpow2.f32 %v1689_v0  ;;  %v1690_v17 = vmul.f32 -1.442695, %v935_v28 }
 0x331   :  { %v886_v35 = vpop.f32.mrf.mxu0  ;;  %v1887_v63 = vpop.f32.mrf.mxu1 }
 0x332   :  { %2119 = vpow2.f32 %v1690_v17 }
 0x33d   :  { %v2118_v13 = vpop.eup %2117 }
 0x33e   :  { %v932_v3 = vadd.f32 1.0, %v2118_v13 }
 0x33f   :  { %v2120_v43 = vpop.eup %2119 }
 0x340   :  { %2121 = vrcp.f32 %v932_v3  ;;  %v939_v57 = vadd.f32 1.0, %v2120_v43 }
 0x342   :  { %2123 = vrcp.f32 %v939_v57 }
 0x34d   :  { %v2122_v8 = vpop.eup %2121 }
 0x34e   :  { %v943_v1 = vmul.f32 %v2122_v8, %v942_v14 }
 0x34f   :  { %v2124_v16 = vpop.eup %2123 }
 0x350   :  { %v944_v10 = vadd.f32 %v943_v1, %v2518_v12  ;;  %v946_v5 = vsub.f32 1.0, %v2124_v16  ;;  %v948_v11 = vmul.f32 %v2124_v16, %v2609_v4 }
 0x352   :  { %2125 = vtanh.f32 %v944_v10 }
 0x35f   :  { %v2126_v59 = vpop.eup %2125 }
 0x360   :  { %v947_v23 = vmul.f32 %v2126_v59, %v946_v5 }
 0x362   :  { %v2653_v58 = vadd.f32 %v948_v11, %v947_v23 }
 0x364   :  { %v954_v20 = vpack.c.bf16 %v2653_v58, %v2653_v58 }
 0x366   :  { %988 = vmatmul.mubr.bf16.vlgmr.msra.gmra.mxu0 %v954_v20  ;;  %1905 = vmatmul.mubr.bf16.vlgmr.msra.gmra.mxu1 %v954_v20 }
 0x367   :  { %1064 = vmatpush1.bf16.msra.mxu0 %v2383_v26  ;;  %1909 = vmatpush3.bf16.msra.mxu1 %v2403_v36 }
 0x368   :  { %1065 = vmatprep.subr.bf16.mxu0 %v2386_v27  ;;  %1910 = vmatprep.subr.bf16.mxu1 %v2849_v38 }
 0x369   :  { %1095 = vmatprep.mubr.bf16.mxu0 %v2850_v6  ;;  %1924 = vmatprep.mubr.msk.bf16.mxu1 %vm2319_vm0, %v2849_v38 }
 0x36b   :  { %1066 = vmatpush1.bf16.msra.mxu0 %v2389_v29  ;;  %1911 = vmatpush3.bf16.msra.mxu1 %v2410_v39 }
 0x36c   :  { %1067 = vmatprep.subr.bf16.mxu0 %v2393_v30  ;;  %1912 = vmatprep.subr.bf16.mxu1 %v2849_v38 }
 0x36f   :  { %1068 = vmatpush1.bf16.msra.mxu0 %v2396_v32  ;;  %1913 = vmatpush3.bf16.msra.mxu1 %v2422_v42 }
 0x370   :  { %1069 = vmatprep.subr.bf16.mxu0 %v2399_v33  ;;  %1914 = vmatprep.subr.bf16.mxu1 %v2849_v38 }
 0x373   :  { %1070 = vmatpush1.bf16.msra.mxu0 %v2401_v34  ;;  %1915 = vmatpush3.bf16.msra.mxu1 %v2433_v46 }
 0x374   :  { %1071 = vmatprep.subr.bf16.mxu0 %v2405_v37  ;;  %1916 = vmatprep.subr.bf16.mxu1 %v2849_v38 }
 0x377   :  { %1072 = vmatpush1.bf16.msra.mxu0 %v2416_v40  ;;  %1917 = vmatpush3.bf16.msra.mxu1 %v2445_v49 }
 0x378   :  { %1073 = vmatprep.subr.bf16.mxu0 %v2419_v41  ;;  %1918 = vmatprep.subr.bf16.mxu1 %v2849_v38 }
 0x37b   :  { %1074 = vmatpush1.bf16.msra.mxu0 %v2426_v44  ;;  %1919 = vmatpush3.bf16.msra.mxu1 %v2454_v51 }
 0x37c   :  { %1075 = vmatprep.subr.bf16.mxu0 %v2430_v45  ;;  %1920 = vmatprep.subr.bf16.mxu1 %v2849_v38 }
 0x37f   :  { %1076 = vmatpush1.bf16.msra.mxu0 %v2439_v47  ;;  %1921 = vmatpush3.bf16.msra.mxu1 %v2460_v52 }
 0x380   :  { %1077 = vmatprep.subr.bf16.mxu0 %v2442_v48  ;;  %1922 = vmatprep.subr.bf16.mxu1 %v2849_v38 }
 0x383   :  { %1078 = vmatpush1.bf16.msra.mxu0 %v2449_v50  ;;  %1923 = vmatpush3.bf16.msra.mxu1 %v2467_v54 }
 0x384   :  { %1171 = vmatprep.subr.bf16.mxu0 %v2381_v24  ;;  %1928 = vmatprep.subr.bf16.mxu1 %v2849_v38 }
 0x426   :  { %v989_v12 = vpop.f32.mrf.mxu0  ;;  %v1030_v4 = vpop.f32.mrf.mxu1 }
 0x427   :  { %v1036_v53 = vadd.f32 %v989_v12, %v2520_v15  ;;  %v1050_v8 = vadd.f32 %v2561_v62, %v1030_v4 }
 0x428   :  { %v991_v61 = vpop.f32.mrf.mxu0  ;;  %v1906_v0 = vpop.f32.mrf.mxu1 }
 0x429   :  { %v1691_v2 = vmul.f32 -1.442695, %v1036_v53  ;;  %v1043_v17 = vadd.f32 %v991_v61, %v2522_v18 }
 0x42a   :  { %v993_v21 = vpop.f32.mrf.mxu0  ;;  %v1033_v35 = vpop.f32.mrf.mxu1 }
 0x42b   :  { %2127 = vpow2.f32 %v1691_v2  ;;  %v1692_v13 = vmul.f32 -1.442695, %v1043_v17 }
 0x42c   :  { %v994_v63 = vpop.f32.mrf.mxu0  ;;  %v1907_v28 = vpop.f32.mrf.mxu1 }
 0x42d   :  { %2129 = vpow2.f32 %v1692_v13 }
 0x438   :  { %v2128_v3 = vpop.eup %2127 }
 0x439   :  { %v1040_v43 = vadd.f32 1.0, %v2128_v3 }
 0x43a   :  { %v2130_v57 = vpop.eup %2129 }
 0x43b   :  { %2131 = vrcp.f32 %v1040_v43  ;;  %v1047_v14 = vadd.f32 1.0, %v2130_v57 }
 0x43d   :  { %2133 = vrcp.f32 %v1047_v14 }
 0x448   :  { %v2132_v15 = vpop.eup %2131 }
 0x449   :  { %v1051_v1 = vmul.f32 %v2132_v15, %v1050_v8 }
 0x44a   :  { %v2134_v16 = vpop.eup %2133 }
 0x44b   :  { %v1052_v10 = vadd.f32 %v1051_v1, %v2525_v19  ;;  %v1054_v5 = vsub.f32 1.0, %v2134_v16  ;;  %v1056_v18 = vmul.f32 %v2134_v16, %v2653_v58  ;;  %v2745_v16 = vld [vmem:[#allocation9 + $0xa8] ss:$12 sps:$4 sm:$0xff]  }
 0x44d   :  { %2135 = vtanh.f32 %v1052_v10 }
 0x45a   :  { %v2136_v59 = vpop.eup %2135 }
 0x45b   :  { %v1055_v23 = vmul.f32 %v2136_v59, %v1054_v5 }
 0x45d   :  { %v2697_v11 = vadd.f32 %v1056_v18, %v1055_v23 }
 0x45f   :  { %v1062_v20 = vpack.c.bf16 %v2697_v11, %v2697_v11 }
 0x461   :  { %1096 = vmatmul.mubr.bf16.vlgmr.msra.gmra.mxu0 %v1062_v20  ;;  %1925 = vmatmul.mubr.bf16.vlgmr.msra.gmra.mxu1 %v1062_v20 }
 0x462   :  { %1172 = vmatpush1.bf16.msra.mxu0 %v2383_v26  ;;  %1929 = vmatpush3.bf16.msra.mxu1 %v2403_v36 }
 0x463   :  { %1173 = vmatprep.subr.bf16.mxu0 %v2386_v27  ;;  %1930 = vmatprep.subr.bf16.mxu1 %v2849_v38 }
 0x464   :  { %1203 = vmatprep.mubr.bf16.mxu0 %v2850_v6  ;;  %1944 = vmatprep.mubr.msk.bf16.mxu1 %vm2319_vm0, %v2849_v38 }
 0x466   :  { %1174 = vmatpush1.bf16.msra.mxu0 %v2389_v29  ;;  %1931 = vmatpush3.bf16.msra.mxu1 %v2410_v39 }
 0x467   :  { %1175 = vmatprep.subr.bf16.mxu0 %v2393_v30  ;;  %1932 = vmatprep.subr.bf16.mxu1 %v2849_v38 }
 0x46a   :  { %1176 = vmatpush1.bf16.msra.mxu0 %v2396_v32  ;;  %1933 = vmatpush3.bf16.msra.mxu1 %v2422_v42 }
 0x46b   :  { %1177 = vmatprep.subr.bf16.mxu0 %v2399_v33  ;;  %1934 = vmatprep.subr.bf16.mxu1 %v2849_v38 }
 0x46e   :  { %1178 = vmatpush1.bf16.msra.mxu0 %v2401_v34  ;;  %1935 = vmatpush3.bf16.msra.mxu1 %v2433_v46 }
 0x46f   :  { %1179 = vmatprep.subr.bf16.mxu0 %v2405_v37  ;;  %1936 = vmatprep.subr.bf16.mxu1 %v2849_v38 }
 0x472   :  { %1180 = vmatpush1.bf16.msra.mxu0 %v2416_v40  ;;  %1937 = vmatpush3.bf16.msra.mxu1 %v2445_v49 }
 0x473   :  { %1181 = vmatprep.subr.bf16.mxu0 %v2419_v41  ;;  %1938 = vmatprep.subr.bf16.mxu1 %v2849_v38 }
 0x476   :  { %1182 = vmatpush1.bf16.msra.mxu0 %v2426_v44  ;;  %1939 = vmatpush3.bf16.msra.mxu1 %v2454_v51 }
 0x477   :  { %1183 = vmatprep.subr.bf16.mxu0 %v2430_v45  ;;  %1940 = vmatprep.subr.bf16.mxu1 %v2849_v38 }
 0x47a   :  { %1184 = vmatpush1.bf16.msra.mxu0 %v2439_v47  ;;  %1941 = vmatpush3.bf16.msra.mxu1 %v2460_v52 }
 0x47b   :  { %1185 = vmatprep.subr.bf16.mxu0 %v2442_v48  ;;  %1942 = vmatprep.subr.bf16.mxu1 %v2849_v38 }
 0x47e   :  { %1186 = vmatpush1.bf16.msra.mxu0 %v2449_v50  ;;  %1943 = vmatpush3.bf16.msra.mxu1 %v2467_v54 }
 0x47f   :  { %1279 = vmatprep.subr.bf16.mxu0 %v2381_v24  ;;  %1948 = vmatprep.subr.bf16.mxu1 %v2849_v38 }
 0x521   :  { %v1097_v26 = vpop.f32.mrf.mxu0  ;;  %v1138_v27 = vpop.f32.mrf.mxu1 }
 0x522   :  { %v1144_v19 = vadd.f32 %v1097_v26, %v2527_v22  ;;  %v1158_v13 = vadd.f32 %v2561_v62, %v1138_v27 }
 0x523   :  { %v1099_v58 = vpop.f32.mrf.mxu0  ;;  %v1926_v12 = vpop.f32.mrf.mxu1 }
 0x524   :  { %v1693_v4 = vmul.f32 -1.442695, %v1144_v19  ;;  %v1151_v21 = vadd.f32 %v1099_v58, %v2532_v31  ;;  %v2184_v58 = vld [vmem:[#allocation9 + $0xb0] ss:$12 sps:$4 sm:$0xff]   ;;  %v2186_v12 = vld [vmem:[#allocation9 + $0x98] ss:$12 sps:$4 sm:$0xff]  }
 0x525   :  { %v1101_v53 = vpop.f32.mrf.mxu0  ;;  %v1141_v61 = vpop.f32.mrf.mxu1 }
 0x526   :  { %2137 = vpow2.f32 %v1693_v4  ;;  %v1694_v35 = vmul.f32 -1.442695, %v1151_v21  ;;  %v2187_v4 = vld [vmem:[#allocation9 + $0x7c] ss:$12 sps:$4 sm:$0xff]   ;;  %v2188_v53 = vld [vmem:[#allocation9 + $0x78] ss:$12 sps:$4 sm:$0xff]  }
 0x527   :  { %v1102_v0 = vpop.f32.mrf.mxu0  ;;  %v1927_v2 = vpop.f32.mrf.mxu1  ;;  %v2189_v61 = vld [vmem:[#allocation9 + $0x80] ss:$12 sps:$4 sm:$0xff]  }
 0x528   :  { %2139 = vpow2.f32 %v1694_v35  ;;  %v2190_v0 = vld [vmem:[#allocation9 + $0x64] ss:$12 sps:$4 sm:$0xff]   ;;  %v2192_v2 = vld [vmem:[#allocation9 + $0x68] ss:$12 sps:$4 sm:$0xff]   ;;  %v2193_v21 = vld [vmem:[#allocation9 + $0x4c] ss:$12 sps:$4 sm:$0xff]  }
 0x529   :  { %v2194_v35 = vld [vmem:[#allocation9 + $0x48] ss:$12 sps:$4 sm:$0xff]  }
 0x533   :  { %v2138_v63 = vpop.eup %2137 }
 0x534   :  { %v1148_v24 = vadd.f32 1.0, %v2138_v63  ;;  %v2195_v63 = vld [vmem:[#allocation9 + $0x34] ss:$12 sps:$4 sm:$0xff]  }
 0x535   :  { %v2140_v28 = vpop.eup %2139 }
 0x536   :  { %2141 = vrcp.f32 %v1148_v24  ;;  %v1155_v17 = vadd.f32 1.0, %v2140_v28  ;;  %v2196_v24 = vld [vmem:[#allocation9 + $0x30] ss:$12 sps:$4 sm:$0xff]  }
 0x537   :  { %v2197_v28 = vld [vmem:[#allocation9 + $0x1c] ss:$12 sps:$4 sm:$0xff]  }
 0x538   :  { %2143 = vrcp.f32 %v1155_v17  ;;  %v2198_v17 = vld [vmem:[#allocation9 + $0x18] ss:$12 sps:$4 sm:$0xff]  }
 0x543   :  { %v2142_v22 = vpop.eup %2141 }
 0x544   :  { %v1159_v3 = vmul.f32 %v2142_v22, %v1158_v13  ;;  %v2199_v13 = vld [vmem:[#allocation9 + $0x4] ss:$12 sps:$4 sm:$0xff]  }
 0x545   :  { %v2144_v57 = vpop.eup %2143 }
 0x546   :  { %v1160_v43 = vadd.f32 %v1159_v3, %v2540_v56  ;;  %v1162_v14 = vsub.f32 1.0, %v2144_v57  ;;  %v1164_v31 = vmul.f32 %v2144_v57, %v2697_v11  ;;  %v2749_v56 = vld [vmem:[#allocation9 + $0x94] ss:$12 sps:$4 sm:$0xff]  }
 0x548   :  { %2145 = vtanh.f32 %v1160_v43 }
 0x555   :  { %v2146_v8 = vpop.eup %2145 }
 0x556   :  { %v1163_v15 = vmul.f32 %v2146_v8, %v1162_v14 }
 0x558   :  { %v2741_v1 = vadd.f32 %v1164_v31, %v1163_v15 }
 0x55a   :  { %v1170_v10 = vpack.c.bf16 %v2741_v1, %v2741_v1 }
 0x55c   :  { %1204 = vmatmul.mubr.bf16.vlgmr.msra.gmra.mxu0 %v1170_v10  ;;  %1945 = vmatmul.mubr.bf16.vlgmr.msra.gmra.mxu1 %v1170_v10 }
 0x55d   :  { %1280 = vmatpush1.bf16.msra.mxu0 %v2745_v16  ;;  %1949 = vmatpush3.bf16.msra.mxu1 %v2403_v36 }
 0x55e   :  { %1281 = vmatprep.subr.bf16.mxu0 %v2749_v56  ;;  %1950 = vmatprep.subr.bf16.mxu1 %v2849_v38 }
 0x55f   :  { %1311 = vmatprep.mubr.bf16.mxu0 %v2850_v6  ;;  %1964 = vmatprep.mubr.msk.bf16.mxu1 %vm2319_vm0, %v2849_v38 }
 0x561   :  { %1282 = vmatpush1.bf16.msra.mxu0 %v2389_v29  ;;  %1951 = vmatpush3.bf16.msra.mxu1 %v2410_v39  ;;  %v2183_v29 = vld [vmem:[#allocation9 + $0xac] ss:$12 sps:$4 sm:$0xff]  }
 0x562   :  { %1283 = vmatprep.subr.bf16.mxu0 %v2393_v30  ;;  %1952 = vmatprep.subr.bf16.mxu1 %v2849_v38 }
 0x565   :  { %1284 = vmatpush1.bf16.msra.mxu0 %v2396_v32  ;;  %1953 = vmatpush3.bf16.msra.mxu1 %v2422_v42 }
 0x566   :  { %1285 = vmatprep.subr.bf16.mxu0 %v2399_v33  ;;  %1954 = vmatprep.subr.bf16.mxu1 %v2849_v38 }
 0x569   :  { %1286 = vmatpush1.bf16.msra.mxu0 %v2401_v34  ;;  %1955 = vmatpush3.bf16.msra.mxu1 %v2433_v46 }
 0x56a   :  { %1287 = vmatprep.subr.bf16.mxu0 %v2405_v37  ;;  %1956 = vmatprep.subr.bf16.mxu1 %v2849_v38 }
 0x56d   :  { %1288 = vmatpush1.bf16.msra.mxu0 %v2416_v40  ;;  %1957 = vmatpush3.bf16.msra.mxu1 %v2445_v49 }
 0x56e   :  { %1289 = vmatprep.subr.bf16.mxu0 %v2419_v41  ;;  %1958 = vmatprep.subr.bf16.mxu1 %v2849_v38 }
 0x571   :  { %1290 = vmatpush1.bf16.msra.mxu0 %v2426_v44  ;;  %1959 = vmatpush3.bf16.msra.mxu1 %v2454_v51 }
 0x572   :  { %1291 = vmatprep.subr.bf16.mxu0 %v2430_v45  ;;  %1960 = vmatprep.subr.bf16.mxu1 %v2849_v38 }
 0x575   :  { %1292 = vmatpush1.bf16.msra.mxu0 %v2439_v47  ;;  %1961 = vmatpush3.bf16.msra.mxu1 %v2460_v52 }
 0x576   :  { %1293 = vmatprep.subr.bf16.mxu0 %v2442_v48  ;;  %1962 = vmatprep.subr.bf16.mxu1 %v2849_v38 }
 0x579   :  { %1294 = vmatpush1.bf16.msra.mxu0 %v2449_v50  ;;  %1963 = vmatpush3.bf16.msra.mxu1 %v2467_v54 }
 0x57a   :  { %1387 = vmatprep.subr.bf16.mxu0 %v2183_v29  ;;  %1968 = vmatprep.subr.bf16.mxu1 %v2849_v38 }
 0x61c   :  { %v1205_v30 = vpop.f32.mrf.mxu0  ;;  %v1246_v32 = vpop.f32.mrf.mxu1 }
 0x61d   :  { %v1252_v33 = vadd.f32 %v1205_v30, %v2537_v55  ;;  %v1266_v5 = vadd.f32 %v2561_v62, %v1246_v32 }
 0x61e   :  { %v1207_v34 = vpop.f32.mrf.mxu0  ;;  %v1946_v36 = vpop.f32.mrf.mxu1 }
 0x61f   :  { %v1695_v37 = vmul.f32 -1.442695, %v1252_v33  ;;  %v1259_v44 = vadd.f32 %v1207_v34, %v2542_v60  ;;  %v2852_v34 = vld [vmem:[#allocation17_spill] sm:$0xff] }
 0x620   :  { %v1209_v39 = vpop.f32.mrf.mxu0  ;;  %v1249_v40 = vpop.f32.mrf.mxu1 }
 0x621   :  { %2147 = vpow2.f32 %v1695_v37  ;;  %v1696_v45 = vmul.f32 -1.442695, %v1259_v44 }
 0x622   :  { %v1210_v41 = vpop.f32.mrf.mxu0  ;;  %v1947_v42 = vpop.f32.mrf.mxu1 }
 0x623   :  { %2149 = vpow2.f32 %v1696_v45 }
 0x62e   :  { %v2148_v46 = vpop.eup %2147 }
 0x62f   :  { %v1256_v47 = vadd.f32 1.0, %v2148_v46  ;;  %v2089_v46 = vld [vmem:[#allocation10 + $0x38] sm:$0xff]  }
 0x630   :  { %v2150_v48 = vpop.eup %2149 }
 0x631   :  { %2151 = vrcp.f32 %v1256_v47  ;;  %v1263_v50 = vadd.f32 1.0, %v2150_v48  ;;  %v2090_v47 = vld [vmem:[#allocation10 + $0x30] sm:$0xff]   ;;  %v2091_v48 = vld [vmem:[#allocation10 + $0x28] sm:$0xff]  }
 0x633   :  { %2153 = vrcp.f32 %v1263_v50  ;;  %v2092_v50 = vld [vmem:[#allocation10 + $0x20] sm:$0xff]  }
 0x63e   :  { %v2152_v55 = vpop.eup %2151 }
 0x63f   :  { %v1267_v59 = vmul.f32 %v2152_v55, %v1266_v5  ;;  %v2093_v5 = vld [vmem:[#allocation10 + $0x18] sm:$0xff]   ;;  %v2094_v55 = vld [vmem:[#allocation10 + $0x10] sm:$0xff]  }
 0x640   :  { %v2154_v18 = vpop.eup %2153 }
 0x641   :  { %v1268_v23 = vadd.f32 %v1267_v59, %v2550_v9  ;;  %v1270_v11 = vsub.f32 1.0, %v2154_v18  ;;  %v1272_v60 = vmul.f32 %v2154_v18, %v2741_v1  ;;  %v2185_v9 = vld [vmem:[#allocation9 + $0x90] ss:$12 sps:$4 sm:$0xff]   ;;  %v2095_v59 = vld [vmem:[#allocation10 + $0x8] sm:$0xff]  }
 0x642   :  { %v2851_v1 = vld [vmem:[#allocation19_spill] sm:$0xff] }
 0x643   :  { %2155 = vtanh.f32 %v1268_v23  ;;  %v2096_v23 = vld [vmem:[#allocation10] sm:$0xff]  }
 0x650   :  { %v2156_v20 = vpop.eup %2155 }
 0x651   :  { %v1271_v26 = vmul.f32 %v2156_v20, %v1270_v11  ;;  %v2853_v20 = vld [vmem:[#allocation20_spill] sm:$0xff] }
 0x653   :  { %v2788_v27 = vadd.f32 %v1272_v60, %v1271_v26 }
 0x655   :  { %v1278_v19 = vpack.c.bf16 %v2788_v27, %v2788_v27 }
 0x657   :  { %1312 = vmatmul.mubr.bf16.vlgmr.msra.gmra.mxu0 %v1278_v19  ;;  %1965 = vmatmul.mubr.bf16.vlgmr.msra.gmra.mxu1 %v1278_v19 }
 0x658   :  { %1388 = vmatpush1.bf16.msra.mxu0 %v2745_v16  ;;  %1969 = vmatpush3.bf16.msra.mxu1 %v2184_v58 }
 0x659   :  { %1389 = vmatprep.subr.bf16.mxu0 %v2749_v56  ;;  %1970 = vmatprep.subr.bf16.mxu1 %v2849_v38 }
 0x65a   :  { %1419 = vmatprep.mubr.bf16.mxu0 %v2850_v6  ;;  %1984 = vmatprep.mubr.msk.bf16.mxu1 %vm2319_vm0, %v2849_v38  ;;  %v2191_v6 = vld [vmem:[#allocation9 + $0x60] ss:$12 sps:$4 sm:$0xff]  }
 0x65c   :  { %1390 = vmatpush1.bf16.msra.mxu0 %v2185_v9  ;;  %1971 = vmatpush3.bf16.msra.mxu1 %v2186_v12 }
 0x65d   :  { %1391 = vmatprep.subr.bf16.mxu0 %v2187_v4  ;;  %1972 = vmatprep.subr.bf16.mxu1 %v2849_v38 }
 0x660   :  { %1392 = vmatpush1.bf16.msra.mxu0 %v2188_v53  ;;  %1973 = vmatpush3.bf16.msra.mxu1 %v2189_v61 }
 0x661   :  { %1393 = vmatprep.subr.bf16.mxu0 %v2190_v0  ;;  %1974 = vmatprep.subr.bf16.mxu1 %v2849_v38 }
 0x664   :  { %1394 = vmatpush1.bf16.msra.mxu0 %v2191_v6  ;;  %1975 = vmatpush3.bf16.msra.mxu1 %v2192_v2 }
 0x665   :  { %1395 = vmatprep.subr.bf16.mxu0 %v2193_v21  ;;  %1976 = vmatprep.subr.bf16.mxu1 %v2849_v38 }
 0x668   :  { %1396 = vmatpush1.bf16.msra.mxu0 %v2194_v35  ;;  %1977 = vmatpush3.bf16.msra.mxu1 %v2445_v49  ;;  %v2200_v49 = vld [vmem:[#allocation9] ss:$12 sps:$4 sm:$0xff]  }
 0x669   :  { %1397 = vmatprep.subr.bf16.mxu0 %v2195_v63  ;;  %1978 = vmatprep.subr.bf16.mxu1 %v2849_v38 }
 0x66c   :  { %1398 = vmatpush1.bf16.msra.mxu0 %v2196_v24  ;;  %1979 = vmatpush3.bf16.msra.mxu1 %v2454_v51  ;;  %v2854_v24 = vld [vmem:[#allocation18_spill] sm:$0xff] }
 0x66d   :  { %1399 = vmatprep.subr.bf16.mxu0 %v2197_v28  ;;  %1980 = vmatprep.subr.bf16.mxu1 %v2849_v38 }
 0x670   :  { %1400 = vmatpush1.bf16.msra.mxu0 %v2198_v17  ;;  %1981 = vmatpush3.bf16.msra.mxu1 %v2460_v52 }
 0x671   :  { %1401 = vmatprep.subr.bf16.mxu0 %v2199_v13  ;;  %1982 = vmatprep.subr.bf16.mxu1 %v2849_v38 }
 0x674   :  { %1402 = vmatpush1.bf16.msra.mxu0 %v2200_v49  ;;  %1983 = vmatpush3.bf16.msra.mxu1 %v2467_v54 }
 0x675   :  { %1988 = vmatprep.subr.bf16.mxu0 %v2849_v38 }
 0x717   :  { %v1313_v22 = vpop.f32.mrf.mxu0  ;;  %v1354_v51 = vpop.f32.mrf.mxu1 }
 0x718   :  { %v1360_v3 = vadd.f32 %v1313_v22, %v2547_v7  ;;  %v1374_v32 = vadd.f32 %v2561_v62, %v1354_v51 }
 0x719   :  { %v1315_v43 = vpop.f32.mrf.mxu0  ;;  %v1966_v57 = vpop.f32.mrf.mxu1 }
 0x71a   :  { %v1697_v14 = vmul.f32 -1.442695, %v1360_v3  ;;  %v1367_v10 = vadd.f32 %v1315_v43, %v2851_v1  ;;  %v1701_v43 = vld [vmem:[%s2839_s6] ss:$0 sm:$0xff] }
 0x71b   :  { %v1317_v8 = vpop.f32.mrf.mxu0  ;;  %v1357_v15 = vpop.f32.mrf.mxu1 }
 0x71c   :  { %2157 = vpow2.f32 %v1697_v14  ;;  %v1698_v16 = vmul.f32 -1.442695, %v1367_v10 }
 0x71d   :  { %v1318_v52 = vpop.f32.mrf.mxu0  ;;  %v1967_v31 = vpop.f32.mrf.mxu1 }
 0x71e   :  { %2159 = vpow2.f32 %v1698_v16 }
 0x729   :  { %v2158_v56 = vpop.eup %2157 }
 0x72a   :  { %v1364_v54 = vadd.f32 1.0, %v2158_v56 }
 0x72b   :  { %v2160_v29 = vpop.eup %2159 }
 0x72c   :  { %2161 = vrcp.f32 %v1364_v54  ;;  %v1371_v30 = vadd.f32 1.0, %v2160_v29 }
 0x72e   :  { %2163 = vrcp.f32 %v1371_v30 }
 0x739   :  { %v2162_v7 = vpop.eup %2161 }
 0x73a   :  { %v1375_v33 = vmul.f32 %v2162_v7, %v1374_v32 }
 0x73b   :  { %v2164_v37 = vpop.eup %2163 }
 0x73c   :  { %v1376_v36 = vadd.f32 %v1375_v33, %v2852_v34  ;;  %v1378_v39 = vsub.f32 1.0, %v2164_v37  ;;  %v1380_v42 = vmul.f32 %v2164_v37, %v2788_v27 }
 0x73e   :  { %2165 = vtanh.f32 %v1376_v36 }
 0x74b   :  { %v2166_v40 = vpop.eup %2165 }
 0x74c   :  { %v1379_v41 = vmul.f32 %v2166_v40, %v1378_v39 }
 0x74e   :  { %v1381_v44 = vadd.f32 %v1380_v42, %v1379_v41 }
 0x750   :  { %v1386_v45 = vpack.c.bf16 %v1381_v44, %v1381_v44 }
 0x752   :  { %1420 = vmatmul.mubr.bf16.vlgmr.msra.gmra.mxu0 %v1386_v45  ;;  %1985 = vmatmul.mubr.bf16.vlgmr.msra.gmra.mxu1 %v1386_v45 }
 0x753   :  { %2004 = vmatprep.mubr.msk.bf16.mxu0 %vm2319_vm0, %v2849_v38  ;;  %1989 = vmatpush3.bf16.msra.mxu0 %v2089_v46 }
 0x754   :  { %1990 = vmatprep.subr.bf16.mxu0 %v2849_v38 }
 0x757   :  { %1991 = vmatpush3.bf16.msra.mxu0 %v2090_v47 }
 0x758   :  { %1992 = vmatprep.subr.bf16.mxu0 %v2849_v38 }
 0x75b   :  { %1993 = vmatpush3.bf16.msra.mxu0 %v2091_v48 }
 0x75c   :  { %1994 = vmatprep.subr.bf16.mxu0 %v2849_v38 }
 0x75f   :  { %1995 = vmatpush3.bf16.msra.mxu0 %v2092_v50 }
 0x760   :  { %1996 = vmatprep.subr.bf16.mxu0 %v2849_v38 }
 0x763   :  { %1997 = vmatpush3.bf16.msra.mxu0 %v2093_v5 }
 0x764   :  { %1998 = vmatprep.subr.bf16.mxu0 %v2849_v38 }
 0x767   :  { %1999 = vmatpush3.bf16.msra.mxu0 %v2094_v55 }
 0x768   :  { %2000 = vmatprep.subr.bf16.mxu0 %v2849_v38 }
 0x76b   :  { %2001 = vmatpush3.bf16.msra.mxu0 %v2095_v59 }
 0x76c   :  { %2002 = vmatprep.subr.bf16.mxu0 %v2849_v38 }
 0x76f   :  { %2003 = vmatpush3.bf16.msra.mxu0 %v2096_v23 }
 0x812   :  { %v1421_v18 = vpop.f32.mrf.mxu0  ;;  %v1462_v11 = vpop.f32.mrf.mxu1 }
 0x813   :  { %v1468_v26 = vadd.f32 %v1421_v18, %v2853_v20  ;;  %v1482_v21 = vadd.f32 %v2561_v62, %v1462_v11 }
 0x814   :  { %v1423_v60 = vpop.f32.mrf.mxu0  ;;  %v1986_v27 = vpop.f32.mrf.mxu1 }
 0x815   :  { %v1699_v19 = vmul.f32 -1.442695, %v1468_v26  ;;  %v1475_v53 = vadd.f32 %v1423_v60, %v2556_v25 }
 0x816   :  { %v1425_v58 = vpop.f32.mrf.mxu0  ;;  %v1465_v9 = vpop.f32.mrf.mxu1 }
 0x817   :  { %2167 = vpow2.f32 %v1699_v19  ;;  %v1700_v61 = vmul.f32 -1.442695, %v1475_v53 }
 0x818   :  { %v1426_v12 = vpop.f32.mrf.mxu0  ;;  %v1987_v4 = vpop.f32.mrf.mxu1 }
 0x819   :  { %2169 = vpow2.f32 %v1700_v61 }
 0x824   :  { %v2168_v0 = vpop.eup %2167 }
 0x825   :  { %v1472_v6 = vadd.f32 1.0, %v2168_v0 }
 0x826   :  { %v2170_v38 = vpop.eup %2169 }
 0x827   :  { %2171 = vrcp.f32 %v1472_v6  ;;  %v1479_v2 = vadd.f32 1.0, %v2170_v38 }
 0x829   :  { %2173 = vrcp.f32 %v1479_v2 }
 0x834   :  { %v2172_v35 = vpop.eup %2171 }
 0x835   :  { %v1483_v63 = vmul.f32 %v2172_v35, %v1482_v21 }
 0x836   :  { %v2174_v17 = vpop.eup %2173 }
 0x837   :  { %v1484_v28 = vadd.f32 %v1483_v63, %v2854_v24  ;;  %v1486_v13 = vsub.f32 1.0, %v2174_v17  ;;  %v1488_v25 = vmul.f32 %v2174_v17, %v1381_v44 }
 0x839   :  { %2175 = vtanh.f32 %v1484_v28 }
 0x846   :  { %v2176_v49 = vpop.eup %2175 }
 0x847   :  { %v1487_v22 = vmul.f32 %v2176_v49, %v1486_v13 }
 0x849   :  { %v1489_v51 = vadd.f32 %v1488_v25, %v1487_v22 }
 0x84b   :  { %v1495_v3 = vpack.c.bf16 %v1489_v51, %v1489_v51 }
 0x84d   :  { %2005 = vmatmul.mubr.bf16.vlgmr.msra.gmra.mxu0 %v1495_v3 }
 0x90d   :  { %v1601_v57 = vpop.f32.mrf.mxu0 }
 0x90e   :  { %v1602_v62 = vadd.f32 %v1701_v43, %v1601_v57 }
 0x90f   :  { %v2006_v14 = vpop.f32.mrf.mxu0 }
 0x910   :  { %v1710_v8 = vmul.f32 -1.442695, %v1602_v62 }
 0x911   :  { %v1604_v15 = vpop.f32.mrf.mxu0 }
 0x912   :  { %2177 = vpow2.f32 %v1710_v8 }
 0x913   :  { %v2007_v52 = vpop.f32.mrf.mxu0 }
 0x91f   :  { %v2178_v31 = vpop.eup %2177 }
 0x920   :  { %v1610_v1 = vadd.f32 1.0, %v2178_v31 }
 0x922   :  { %2179 = vrcp.f32 %v1610_v1 }
 0x92f   :  { %v2180_v10 = vpop.eup %2179 }
 0x930   :  { %v1613_v16 = vmul.f32 %v2180_v10, %v1602_v62 }
 0x932   :  { %1614 = vst [vmem:[#allocation12] sm:$0xff] %v1613_v16 }
 0x933   :  { %2292 = shalt.err (!%p2289_p10)
}
 0x934   :  { %1624 = dma.vmem_to_hbm [thread:$0]  %s1622_s26, 128, %s2840_s7, [#allocation6]  }
 0x935   :  { %2307 = dma.done.wait [#allocation6], 128  }
 0x936   :  { %2308 = vsyncadd [#allocation6], 4294967168 }
 0x937   :  { %1628 = vsyncpa [#allocation5], 1 }
 0x938   :  { %1629 = vsyncpa [#allocation8], 1 }
 0x939   :  { %1630 = vsyncpa [#allocation11], 1 }
 0x93a   :  { %1631 = vsyncpa [#allocation6], 1 }

</bundles_post_ra>
